<compile_context>
chip_gen: v6e
topology: v6e:2x2x1
jax: 0.10.0
libtpu: 0.0.40
codegen_flags: <defaults>
</compile_context>

<pallas_src>
import functools

import jax
import jax.numpy as jnp
from jax.experimental import pallas as pl
from jax.experimental.pallas import tpu as pltpu


def _round_up(x, m):
    return (x + m - 1) // m * m


# ----------------------------------------------------------------------------- #
# GRU kernel: one grid step per t_block timesteps; hidden state carried in VMEM
# scratch across the (sequential) grid axis.
# ----------------------------------------------------------------------------- #
def gru_block_kernel(ids_ref, gtab_ref, whh_ref, bhhn_ref,
                     out_ref, hfin_ref, h_scr, gi_scr,
                     *, hidden, t_block, b_pad, seq_len):
    H = hidden
    T = t_block
    blk = pl.program_id(0)
    nblk = pl.num_programs(0)

    @pl.when(blk == 0)
    def _():
        h_scr[...] = jnp.zeros_like(h_scr)

    # ---- Fused embedding + input projection --------------------------------
    # gi_table[v] = E[v] @ W_ih^T + b_ih (+ b_hh for r,z), so one row-gather per
    # (t, b) token replaces both the embedding lookup and the input projection.
    # Gather work is independent of h, so it sits off the serial recurrence chain.
    base = blk * T
    for t in range(T):
        for b in range(b_pad):
            tok = ids_ref[(base + t) * b_pad + b]              # SMEM scalar read
            gi_scr[t, b:b + 1, :] = gtab_ref[pl.ds(tok, 1), :]  # (1, 3H) VMEM row

    # ---- Loop-invariant values hoisted off the serial chain ------------------
    w_hh = whh_ref[...]                                   # (H, 3H) f32, VMEM resident
    bhh_n = jnp.broadcast_to(bhhn_ref[...], (b_pad, H))   # broadcast hoisted (no CSE in loops)

    mask_tail = (seq_len % T) != 0  # static: only the padded last block needs masking

    # ---- Serial recurrence, fully unrolled (T <= 64) -------------------------
    # TODO(synk): if a bundle dump shows Mosaic re-pushing the loop-invariant W_hh
    # into the MXU every step, switch to explicit pltpu.matmul_push_rhs /
    # matmul_acc_lhs / matmul_pop to pin the RHS across timesteps.
    h = h_scr[...]                                        # (B, H) f32
    for t in range(T):
        gi_t = gi_scr[t]                                  # (B, 3H) f32, static index
        gh = jnp.dot(h, w_hh, preferred_element_type=jnp.float32)
        # r/z sigmoids fused into one EUP issue; their b_hh already folded into gi.
        rz = jax.nn.sigmoid(gi_t[:, :2 * H] + gh[:, :2 * H])
        r = rz[:, :H]
        z = rz[:, H:]
        n = jnp.tanh(gi_t[:, 2 * H:] + r * (gh[:, 2 * H:] + bhh_n))
        h_new = n + z * (h - n)                           # == (1-z)*n + z*h
        if mask_tail:
            valid = (base + t) < seq_len                  # freeze h past the true end
            h_new = jnp.where(valid, h_new, h)
        h = h_new
        out_ref[t] = h.astype(out_ref.dtype)              # lane-dense (B, H>=128) store
    h_scr[...] = h

    @pl.when(blk == nblk - 1)
    def _():
        hfin_ref[...] = h.astype(hfin_ref.dtype)


# ----------------------------------------------------------------------------- #
# One-time parameter packing (do NOT run per forward call).
#   gi_table : (V_pad, 3*H_pad) f32  — embedding @ W_ih^T + folded biases
#   w_hh     : (H_pad, 3*H_pad) f32  — per-gate, lane-aligned, transposed
#   b_hh_n   : (1, H_pad)       f32  — n-gate recurrent bias (multiplied by r)
# ----------------------------------------------------------------------------- #
def prepare_encoder_params(params):
    emb = params["embedding"].astype(jnp.float32)          # (V, H)
    w_ih = params["w_ih"].astype(jnp.float32)              # (3H, H) PyTorch layout
    w_hh = params["w_hh"].astype(jnp.float32)              # (3H, H)
    b_ih = params["b_ih"].astype(jnp.float32)              # (3H,)
    b_hh = params["b_hh"].astype(jnp.float32)              # (3H,)

    V, H = emb.shape
    H_pad = _round_up(H, 128)      # lane-aligned hidden (per-gate)
    V_pad = _round_up(V, 8)        # sublane-aligned vocab

    def pack_w(w):
        out = jnp.zeros((H_pad, 3 * H_pad), jnp.float32)
        for g in range(3):
            out = out.at[:H, g * H_pad: g * H_pad + H].set(w[g * H:(g + 1) * H, :].T)
        return out

    wih_p = pack_w(w_ih)
    whh_p = pack_w(w_hh)

    # Fold b_ih (all gates) plus b_hh (r and z gates only) into the gi table;
    # b_hh for the n gate must stay separate because it is multiplied by r.
    bias = jnp.zeros((1, 3 * H_pad), jnp.float32)
    bias = bias.at[0, 0 * H_pad: 0 * H_pad + H].set(b_ih[:H] + b_hh[:H])
    bias = bias.at[0, 1 * H_pad: 1 * H_pad + H].set(b_ih[H:2 * H] + b_hh[H:2 * H])
    bias = bias.at[0, 2 * H_pad: 2 * H_pad + H].set(b_ih[2 * H:])
    bhh_n = jnp.zeros((1, H_pad), jnp.float32).at[0, :H].set(b_hh[2 * H:])

    emb_p = jnp.zeros((V_pad, H_pad), jnp.float32).at[:V, :H].set(emb)
    gi_table = jnp.dot(emb_p, wih_p, precision=jax.lax.Precision.HIGHEST) + bias

    return {
        "gi_table": gi_table,
        "w_hh": whh_p,
        "b_hh_n": bhh_n,
        "hidden": H,
        "hidden_pad": H_pad,
        "vocab_pad": V_pad,
    }


# ----------------------------------------------------------------------------- #
# Forward: Encoder(input) -> (output, hidden)
# ----------------------------------------------------------------------------- #
def encoder_forward(token_ids, packed):
    S, B = token_ids.shape
    H = packed["hidden"]
    H_pad = packed["hidden_pad"]
    V_pad = packed["vocab_pad"]
    B_pad = _round_up(B, 8)        # sublane-aligned batch

    # Fixed time-block size (amortizes ~0.35us/grid-step); pad awkward S instead
    # of falling back to t_block=1.
    t_block = S if S <= 64 else 64
    S_pad = _round_up(S, t_block)
    n_blocks = S_pad // t_block

    ids = jnp.zeros((S_pad, B_pad), jnp.int32).at[:S, :B].set(token_ids.astype(jnp.int32))
    ids_flat = ids.reshape(-1)     # 1-D SMEM layout avoids 2-D SMEM padding blowup

    kernel = functools.partial(gru_block_kernel, hidden=H_pad, t_block=t_block,
                               b_pad=B_pad, seq_len=S)

    grid_spec = pltpu.PrefetchScalarGridSpec(
        num_scalar_prefetch=1,                               # token ids -> SMEM
        grid=(n_blocks,),
        in_specs=[
            pl.BlockSpec((V_pad, 3 * H_pad), lambda i, ids: (0, 0)),   # gi_table (resident)
            pl.BlockSpec((H_pad, 3 * H_pad), lambda i, ids: (0, 0)),   # W_hh^T (resident)
            pl.BlockSpec((1, H_pad), lambda i, ids: (0, 0)),           # b_hh (n gate)
        ],
        out_specs=[
            pl.BlockSpec((t_block, B_pad, H_pad), lambda i, ids: (i, 0, 0)),  # per-block output
            pl.BlockSpec((B_pad, H_pad), lambda i, ids: (0, 0)),              # final hidden
        ],
        scratch_shapes=[
            pltpu.VMEM((B_pad, H_pad), jnp.float32),                   # carried hidden state
            pltpu.VMEM((t_block, B_pad, 3 * H_pad), jnp.float32),      # gathered gi block
        ],
    )

    out, hfin = pl.pallas_call(
        kernel,
        out_shape=(
            jax.ShapeDtypeStruct((S_pad, B_pad, H_pad), jnp.float32),
            jax.ShapeDtypeStruct((B_pad, H_pad), jnp.float32),
        ),
        grid_spec=grid_spec,
        compiler_params=pltpu.CompilerParams(
            # Time recurrence is strictly sequential.  VMEM footprint is ~2 MiB at
            # H=128 so the default scoped limit is plenty on v5e/v6e/v7x; resident
            # weight specs could additionally use pipeline_mode=pl.Buffered(1)
            # before scaling H on v7x's 64 MiB core.
            dimension_semantics=("arbitrary",),
        ),
    )(ids_flat, packed["gi_table"], packed["w_hh"], packed["b_hh_n"])

    return out[:S, :B, :H], hfin[None, :B, :H]


# ----------------------------------------------------------------------------- #
# Pure-JAX f32 reference (mirrors torch.nn.GRU math) for correctness check
# ----------------------------------------------------------------------------- #
def encoder_reference(token_ids, params):
    emb = params["embedding"]
    H = emb.shape[1]
    embedded = jnp.take(emb, token_ids, axis=0).astype(jnp.float32)
    w_ih_t = params["w_ih"].T.astype(jnp.float32)   # (H, 3H)
    w_hh_t = params["w_hh"].T.astype(jnp.float32)
    b_ih = params["b_ih"].astype(jnp.float32)
    b_hh = params["b_hh"].astype(jnp.float32)
    hp = jax.lax.Precision.HIGHEST

    def step(h, x):
        gi = jnp.dot(x, w_ih_t, precision=hp) + b_ih
        gh = jnp.dot(h, w_hh_t, precision=hp) + b_hh
        i_r, i_z, i_n = gi[:, :H], gi[:, H:2 * H], gi[:, 2 * H:]
        h_r, h_z, h_n = gh[:, :H], gh[:, H:2 * H], gh[:, 2 * H:]
        r = jax.nn.sigmoid(i_r + h_r)
        z = jax.nn.sigmoid(i_z + h_z)
        n = jnp.tanh(i_n + r * h_n)
        h_new = (1.0 - z) * n + z * h
        return h_new, h_new

    h0 = jnp.zeros((token_ids.shape[1], H), jnp.float32)
    h_last, outs = jax.lax.scan(step, h0, embedded)
    return outs, h_last[None]


if __name__ == "__main__":
    # Small deterministic shapes consistent with the module (hidden_size = 128).
    vocab_size = 40       # input_size = len(x_wid) + 1
    hidden = 128          # hidden_size
    seq_len = 8
    batch = 2

    key = jax.random.PRNGKey(0)
    k_emb, k_wih, k_whh, k_bih, k_bhh, k_ids = jax.random.split(key, 6)
    bound = 1.0 / (hidden ** 0.5)

    params = {
        "embedding": jax.random.normal(k_emb, (vocab_size, hidden), jnp.float32),
        # PyTorch layout: weight_ih_l0 / weight_hh_l0 are (3H, H); gate order (r, z, n).
        "w_ih": jax.random.uniform(k_wih, (3 * hidden, hidden), jnp.float32, -bound, bound),
        "w_hh": jax.random.uniform(k_whh, (3 * hidden, hidden), jnp.float32, -bound, bound),
        "b_ih": jax.random.uniform(k_bih, (3 * hidden,), jnp.float32, -bound, bound),
        "b_hh": jax.random.uniform(k_bhh, (3 * hidden,), jnp.float32, -bound, bound),
    }

    token_ids = jax.random.randint(k_ids, (seq_len, batch), 0, vocab_size, jnp.int32)

    packed = prepare_encoder_params(params)              # one-time packing
    output, hidden_state = encoder_forward(token_ids, packed)
    output = jax.block_until_ready(output)
    hidden_state = jax.block_until_ready(hidden_state)

    ref_out, ref_hidden = encoder_reference(token_ids, params)

    assert output.shape == (seq_len, batch, hidden)
    assert hidden_state.shape == (1, batch, hidden)
    max_err_o = float(jnp.max(jnp.abs(output - ref_out)))
    max_err_h = float(jnp.max(jnp.abs(hidden_state - ref_hidden)))
    assert jnp.allclose(output, ref_out, atol=3e-2, rtol=3e-2), max_err_o
    assert jnp.allclose(hidden_state, ref_hidden, atol=3e-2, rtol=3e-2), max_err_h

    print("KERNEL_OK")
</pallas_src>

<mosaic_0001>
module attributes {stable_mosaic.version = 11 : i64} {
  func.func @gru_block_kernel(%arg0: i32, %arg1: memref<64xi32, #tpu.memory_space<smem>>, %arg2: memref<40x384xf32, #tpu.memory_space<vmem>>, %arg3: memref<128x384xf32, #tpu.memory_space<vmem>>, %arg4: memref<1x128xf32, #tpu.memory_space<vmem>>, %arg5: memref<8x8x128xf32, #tpu.memory_space<vmem>>, %arg6: memref<8x128xf32, #tpu.memory_space<vmem>>, %arg7: memref<8x128xf32, #tpu.memory_space<vmem>>, %arg8: memref<8x8x384xf32, #tpu.memory_space<vmem>>) attributes {dimension_semantics = [#tpu.dimension_semantics<arbitrary>], iteration_bounds = array<i64: 1>, scalar_prefetch = 1 : i64, scratch_operands = 2 : i64, tpu.core_type = #tpu.core_type<tc>, window_params = [{pipeline_mode = #tpu.pipeline_mode<synchronous>, transform_indices = @transform_0, window_bounds = array<i64: 40, 384>}, {pipeline_mode = #tpu.pipeline_mode<synchronous>, transform_indices = @transform_1, window_bounds = array<i64: 128, 384>}, {pipeline_mode = #tpu.pipeline_mode<synchronous>, transform_indices = @transform_2, window_bounds = array<i64: 1, 128>}, {transform_indices = @transform_3, window_bounds = array<i64: 8, 8, 128>}, {pipeline_mode = #tpu.pipeline_mode<synchronous>, transform_indices = @transform_4, window_bounds = array<i64: 8, 128>}]} {
    %c0_i32 = arith.constant 0 : i32
    %0 = arith.cmpi eq, %arg0, %c0_i32 : i32
    %1 = arith.extui %0 : i1 to i32
    %c0_i32_0 = arith.constant 0 : i32
    %2 = arith.cmpi ne, %1, %c0_i32_0 : i32
    scf.if %2 {
      %cst_507 = arith.constant 0.000000e+00 : f32
      %853 = vector.broadcast %cst_507 : f32 to vector<8x128xf32>
      %c0_508 = arith.constant 0 : index
      %c0_509 = arith.constant 0 : index
      %854 = vector.load %arg7[%c0_508, %c0_509] : memref<8x128xf32, #tpu.memory_space<vmem>>, vector<8x128xf32>
      tpu.vector_store %arg7[%c0_508, %c0_509], %853 {strides = array<i32>} : memref<8x128xf32, #tpu.memory_space<vmem>>, vector<8x128xf32>,
    } else {
    }
    %c8_i32 = arith.constant 8 : i32
    %3 = arith.muli %arg0, %c8_i32 : i32
    %c0_i32_1 = arith.constant 0 : i32
    %4 = arith.addi %3, %c0_i32_1 : i32
    %c8_i32_2 = arith.constant 8 : i32
    %5 = arith.muli %4, %c8_i32_2 : i32
    %c0_i32_3 = arith.constant 0 : i32
    %6 = arith.addi %5, %c0_i32_3 : i32
    %7 = arith.index_cast %6 : i32 to index
    %8 = memref.load %arg1[%7] : memref<64xi32, #tpu.memory_space<smem>>
    %9 = arith.index_cast %8 : i32 to index
    %c0 = arith.constant 0 : index
    %10 = vector.load %arg2[%9, %c0] : memref<40x384xf32, #tpu.memory_space<vmem>>, vector<1x384xf32>
    %c0_4 = arith.constant 0 : index
    %c0_5 = arith.constant 0 : index
    %c0_6 = arith.constant 0 : index
    %11 = vector.load %arg8[%c0_4, %c0_5, %c0_6] : memref<8x8x384xf32, #tpu.memory_space<vmem>>, vector<1x1x384xf32>
    %12 = vector.shape_cast %11 : vector<1x1x384xf32> to vector<1x384xf32>
    %13 = vector.shape_cast %10 : vector<1x384xf32> to vector<1x1x384xf32>
    tpu.vector_store %arg8[%c0_4, %c0_5, %c0_6], %13 {strides = array<i32>} : memref<8x8x384xf32, #tpu.memory_space<vmem>>, vector<1x1x384xf32>,
    %c0_i32_7 = arith.constant 0 : i32
    %14 = arith.addi %3, %c0_i32_7 : i32
    %c8_i32_8 = arith.constant 8 : i32
    %15 = arith.muli %14, %c8_i32_8 : i32
    %c1_i32 = arith.constant 1 : i32
    %16 = arith.addi %15, %c1_i32 : i32
    %17 = arith.index_cast %16 : i32 to index
    %18 = memref.load %arg1[%17] : memref<64xi32, #tpu.memory_space<smem>>
    %19 = arith.index_cast %18 : i32 to index
    %c0_9 = arith.constant 0 : index
    %20 = vector.load %arg2[%19, %c0_9] : memref<40x384xf32, #tpu.memory_space<vmem>>, vector<1x384xf32>
    %c0_10 = arith.constant 0 : index
    %c1 = arith.constant 1 : index
    %c0_11 = arith.constant 0 : index
    %21 = vector.load %arg8[%c0_10, %c1, %c0_11] : memref<8x8x384xf32, #tpu.memory_space<vmem>>, vector<1x1x384xf32>
    %22 = vector.shape_cast %21 : vector<1x1x384xf32> to vector<1x384xf32>
    %23 = vector.shape_cast %20 : vector<1x384xf32> to vector<1x1x384xf32>
    tpu.vector_store %arg8[%c0_10, %c1, %c0_11], %23 {strides = array<i32>} : memref<8x8x384xf32, #tpu.memory_space<vmem>>, vector<1x1x384xf32>,
    %c0_i32_12 = arith.constant 0 : i32
    %24 = arith.addi %3, %c0_i32_12 : i32
    %c8_i32_13 = arith.constant 8 : i32
    %25 = arith.muli %24, %c8_i32_13 : i32
    %c2_i32 = arith.constant 2 : i32
    %26 = arith.addi %25, %c2_i32 : i32
    %27 = arith.index_cast %26 : i32 to index
    %28 = memref.load %arg1[%27] : memref<64xi32, #tpu.memory_space<smem>>
    %29 = arith.index_cast %28 : i32 to index
    %c0_14 = arith.constant 0 : index
    %30 = vector.load %arg2[%29, %c0_14] : memref<40x384xf32, #tpu.memory_space<vmem>>, vector<1x384xf32>
    %c0_15 = arith.constant 0 : index
    %c2 = arith.constant 2 : index
    %c0_16 = arith.constant 0 : index
    %31 = vector.load %arg8[%c0_15, %c2, %c0_16] : memref<8x8x384xf32, #tpu.memory_space<vmem>>, vector<1x1x384xf32>
    %32 = vector.shape_cast %31 : vector<1x1x384xf32> to vector<1x384xf32>
    %33 = vector.shape_cast %30 : vector<1x384xf32> to vector<1x1x384xf32>
    tpu.vector_store %arg8[%c0_15, %c2, %c0_16], %33 {strides = array<i32>} : memref<8x8x384xf32, #tpu.memory_space<vmem>>, vector<1x1x384xf32>,
    %c0_i32_17 = arith.constant 0 : i32
    %34 = arith.addi %3, %c0_i32_17 : i32
    %c8_i32_18 = arith.constant 8 : i32
    %35 = arith.muli %34, %c8_i32_18 : i32
    %c3_i32 = arith.constant 3 : i32
    %36 = arith.addi %35, %c3_i32 : i32
    %37 = arith.index_cast %36 : i32 to index
    %38 = memref.load %arg1[%37] : memref<64xi32, #tpu.memory_space<smem>>
    %39 = arith.index_cast %38 : i32 to index
    %c0_19 = arith.constant 0 : index
    %40 = vector.load %arg2[%39, %c0_19] : memref<40x384xf32, #tpu.memory_space<vmem>>, vector<1x384xf32>
    %c0_20 = arith.constant 0 : index
    %c3 = arith.constant 3 : index
    %c0_21 = arith.constant 0 : index
    %41 = vector.load %arg8[%c0_20, %c3, %c0_21] : memref<8x8x384xf32, #tpu.memory_space<vmem>>, vector<1x1x384xf32>
    %42 = vector.shape_cast %41 : vector<1x1x384xf32> to vector<1x384xf32>
    %43 = vector.shape_cast %40 : vector<1x384xf32> to vector<1x1x384xf32>
    tpu.vector_store %arg8[%c0_20, %c3, %c0_21], %43 {strides = array<i32>} : memref<8x8x384xf32, #tpu.memory_space<vmem>>, vector<1x1x384xf32>,
    %c0_i32_22 = arith.constant 0 : i32
    %44 = arith.addi %3, %c0_i32_22 : i32
    %c8_i32_23 = arith.constant 8 : i32
    %45 = arith.muli %44, %c8_i32_23 : i32
    %c4_i32 = arith.constant 4 : i32
    %46 = arith.addi %45, %c4_i32 : i32
    %47 = arith.index_cast %46 : i32 to index
    %48 = memref.load %arg1[%47] : memref<64xi32, #tpu.memory_space<smem>>
    %49 = arith.index_cast %48 : i32 to index
    %c0_24 = arith.constant 0 : index
    %50 = vector.load %arg2[%49, %c0_24] : memref<40x384xf32, #tpu.memory_space<vmem>>, vector<1x384xf32>
    %c0_25 = arith.constant 0 : index
    %c4 = arith.constant 4 : index
    %c0_26 = arith.constant 0 : index
    %51 = vector.load %arg8[%c0_25, %c4, %c0_26] : memref<8x8x384xf32, #tpu.memory_space<vmem>>, vector<1x1x384xf32>
    %52 = vector.shape_cast %51 : vector<1x1x384xf32> to vector<1x384xf32>
    %53 = vector.shape_cast %50 : vector<1x384xf32> to vector<1x1x384xf32>
    tpu.vector_store %arg8[%c0_25, %c4, %c0_26], %53 {strides = array<i32>} : memref<8x8x384xf32, #tpu.memory_space<vmem>>, vector<1x1x384xf32>,
    %c0_i32_27 = arith.constant 0 : i32
    %54 = arith.addi %3, %c0_i32_27 : i32
    %c8_i32_28 = arith.constant 8 : i32
    %55 = arith.muli %54, %c8_i32_28 : i32
    %c5_i32 = arith.constant 5 : i32
    %56 = arith.addi %55, %c5_i32 : i32
    %57 = arith.index_cast %56 : i32 to index
    %58 = memref.load %arg1[%57] : memref<64xi32, #tpu.memory_space<smem>>
    %59 = arith.index_cast %58 : i32 to index
    %c0_29 = arith.constant 0 : index
    %60 = vector.load %arg2[%59, %c0_29] : memref<40x384xf32, #tpu.memory_space<vmem>>, vector<1x384xf32>
    %c0_30 = arith.constant 0 : index
    %c5 = arith.constant 5 : index
    %c0_31 = arith.constant 0 : index
    %61 = vector.load %arg8[%c0_30, %c5, %c0_31] : memref<8x8x384xf32, #tpu.memory_space<vmem>>, vector<1x1x384xf32>
    %62 = vector.shape_cast %61 : vector<1x1x384xf32> to vector<1x384xf32>
    %63 = vector.shape_cast %60 : vector<1x384xf32> to vector<1x1x384xf32>
    tpu.vector_store %arg8[%c0_30, %c5, %c0_31], %63 {strides = array<i32>} : memref<8x8x384xf32, #tpu.memory_space<vmem>>, vector<1x1x384xf32>,
    %c0_i32_32 = arith.constant 0 : i32
    %64 = arith.addi %3, %c0_i32_32 : i32
    %c8_i32_33 = arith.constant 8 : i32
    %65 = arith.muli %64, %c8_i32_33 : i32
    %c6_i32 = arith.constant 6 : i32
    %66 = arith.addi %65, %c6_i32 : i32
    %67 = arith.index_cast %66 : i32 to index
    %68 = memref.load %arg1[%67] : memref<64xi32, #tpu.memory_space<smem>>
    %69 = arith.index_cast %68 : i32 to index
    %c0_34 = arith.constant 0 : index
    %70 = vector.load %arg2[%69, %c0_34] : memref<40x384xf32, #tpu.memory_space<vmem>>, vector<1x384xf32>
    %c0_35 = arith.constant 0 : index
    %c6 = arith.constant 6 : index
    %c0_36 = arith.constant 0 : index
    %71 = vector.load %arg8[%c0_35, %c6, %c0_36] : memref<8x8x384xf32, #tpu.memory_space<vmem>>, vector<1x1x384xf32>
    %72 = vector.shape_cast %71 : vector<1x1x384xf32> to vector<1x384xf32>
    %73 = vector.shape_cast %70 : vector<1x384xf32> to vector<1x1x384xf32>
    tpu.vector_store %arg8[%c0_35, %c6, %c0_36], %73 {strides = array<i32>} : memref<8x8x384xf32, #tpu.memory_space<vmem>>, vector<1x1x384xf32>,
    %c0_i32_37 = arith.constant 0 : i32
    %74 = arith.addi %3, %c0_i32_37 : i32
    %c8_i32_38 = arith.constant 8 : i32
    %75 = arith.muli %74, %c8_i32_38 : i32
    %c7_i32 = arith.constant 7 : i32
    %76 = arith.addi %75, %c7_i32 : i32
    %77 = arith.index_cast %76 : i32 to index
    %78 = memref.load %arg1[%77] : memref<64xi32, #tpu.memory_space<smem>>
    %79 = arith.index_cast %78 : i32 to index
    %c0_39 = arith.constant 0 : index
    %80 = vector.load %arg2[%79, %c0_39] : memref<40x384xf32, #tpu.memory_space<vmem>>, vector<1x384xf32>
    %c0_40 = arith.constant 0 : index
    %c7 = arith.constant 7 : index
    %c0_41 = arith.constant 0 : index
    %81 = vector.load %arg8[%c0_40, %c7, %c0_41] : memref<8x8x384xf32, #tpu.memory_space<vmem>>, vector<1x1x384xf32>
    %82 = vector.shape_cast %81 : vector<1x1x384xf32> to vector<1x384xf32>
    %83 = vector.shape_cast %80 : vector<1x384xf32> to vector<1x1x384xf32>
    tpu.vector_store %arg8[%c0_40, %c7, %c0_41], %83 {strides = array<i32>} : memref<8x8x384xf32, #tpu.memory_space<vmem>>, vector<1x1x384xf32>,
    %c1_i32_42 = arith.constant 1 : i32
    %84 = arith.addi %3, %c1_i32_42 : i32
    %c8_i32_43 = arith.constant 8 : i32
    %85 = arith.muli %84, %c8_i32_43 : i32
    %c0_i32_44 = arith.constant 0 : i32
    %86 = arith.addi %85, %c0_i32_44 : i32
    %87 = arith.index_cast %86 : i32 to index
    %88 = memref.load %arg1[%87] : memref<64xi32, #tpu.memory_space<smem>>
    %89 = arith.index_cast %88 : i32 to index
    %c0_45 = arith.constant 0 : index
    %90 = vector.load %arg2[%89, %c0_45] : memref<40x384xf32, #tpu.memory_space<vmem>>, vector<1x384xf32>
    %c1_46 = arith.constant 1 : index
    %c0_47 = arith.constant 0 : index
    %c0_48 = arith.constant 0 : index
    %91 = vector.load %arg8[%c1_46, %c0_47, %c0_48] : memref<8x8x384xf32, #tpu.memory_space<vmem>>, vector<1x1x384xf32>
    %92 = vector.shape_cast %91 : vector<1x1x384xf32> to vector<1x384xf32>
    %93 = vector.shape_cast %90 : vector<1x384xf32> to vector<1x1x384xf32>
    tpu.vector_store %arg8[%c1_46, %c0_47, %c0_48], %93 {strides = array<i32>} : memref<8x8x384xf32, #tpu.memory_space<vmem>>, vector<1x1x384xf32>,
    %c1_i32_49 = arith.constant 1 : i32
    %94 = arith.addi %3, %c1_i32_49 : i32
    %c8_i32_50 = arith.constant 8 : i32
    %95 = arith.muli %94, %c8_i32_50 : i32
    %c1_i32_51 = arith.constant 1 : i32
    %96 = arith.addi %95, %c1_i32_51 : i32
    %97 = arith.index_cast %96 : i32 to index
    %98 = memref.load %arg1[%97] : memref<64xi32, #tpu.memory_space<smem>>
    %99 = arith.index_cast %98 : i32 to index
    %c0_52 = arith.constant 0 : index
    %100 = vector.load %arg2[%99, %c0_52] : memref<40x384xf32, #tpu.memory_space<vmem>>, vector<1x384xf32>
    %c1_53 = arith.constant 1 : index
    %c1_54 = arith.constant 1 : index
    %c0_55 = arith.constant 0 : index
    %101 = vector.load %arg8[%c1_53, %c1_54, %c0_55] : memref<8x8x384xf32, #tpu.memory_space<vmem>>, vector<1x1x384xf32>
    %102 = vector.shape_cast %101 : vector<1x1x384xf32> to vector<1x384xf32>
    %103 = vector.shape_cast %100 : vector<1x384xf32> to vector<1x1x384xf32>
    tpu.vector_store %arg8[%c1_53, %c1_54, %c0_55], %103 {strides = array<i32>} : memref<8x8x384xf32, #tpu.memory_space<vmem>>, vector<1x1x384xf32>,
    %c1_i32_56 = arith.constant 1 : i32
    %104 = arith.addi %3, %c1_i32_56 : i32
    %c8_i32_57 = arith.constant 8 : i32
    %105 = arith.muli %104, %c8_i32_57 : i32
    %c2_i32_58 = arith.constant 2 : i32
    %106 = arith.addi %105, %c2_i32_58 : i32
    %107 = arith.index_cast %106 : i32 to index
    %108 = memref.load %arg1[%107] : memref<64xi32, #tpu.memory_space<smem>>
    %109 = arith.index_cast %108 : i32 to index
    %c0_59 = arith.constant 0 : index
    %110 = vector.load %arg2[%109, %c0_59] : memref<40x384xf32, #tpu.memory_space<vmem>>, vector<1x384xf32>
    %c1_60 = arith.constant 1 : index
    %c2_61 = arith.constant 2 : index
    %c0_62 = arith.constant 0 : index
    %111 = vector.load %arg8[%c1_60, %c2_61, %c0_62] : memref<8x8x384xf32, #tpu.memory_space<vmem>>, vector<1x1x384xf32>
    %112 = vector.shape_cast %111 : vector<1x1x384xf32> to vector<1x384xf32>
    %113 = vector.shape_cast %110 : vector<1x384xf32> to vector<1x1x384xf32>
    tpu.vector_store %arg8[%c1_60, %c2_61, %c0_62], %113 {strides = array<i32>} : memref<8x8x384xf32, #tpu.memory_space<vmem>>, vector<1x1x384xf32>,
    %c1_i32_63 = arith.constant 1 : i32
    %114 = arith.addi %3, %c1_i32_63 : i32
    %c8_i32_64 = arith.constant 8 : i32
    %115 = arith.muli %114, %c8_i32_64 : i32
    %c3_i32_65 = arith.constant 3 : i32
    %116 = arith.addi %115, %c3_i32_65 : i32
    %117 = arith.index_cast %116 : i32 to index
    %118 = memref.load %arg1[%117] : memref<64xi32, #tpu.memory_space<smem>>
    %119 = arith.index_cast %118 : i32 to index
    %c0_66 = arith.constant 0 : index
    %120 = vector.load %arg2[%119, %c0_66] : memref<40x384xf32, #tpu.memory_space<vmem>>, vector<1x384xf32>
    %c1_67 = arith.constant 1 : index
    %c3_68 = arith.constant 3 : index
    %c0_69 = arith.constant 0 : index
    %121 = vector.load %arg8[%c1_67, %c3_68, %c0_69] : memref<8x8x384xf32, #tpu.memory_space<vmem>>, vector<1x1x384xf32>
    %122 = vector.shape_cast %121 : vector<1x1x384xf32> to vector<1x384xf32>
    %123 = vector.shape_cast %120 : vector<1x384xf32> to vector<1x1x384xf32>
    tpu.vector_store %arg8[%c1_67, %c3_68, %c0_69], %123 {strides = array<i32>} : memref<8x8x384xf32, #tpu.memory_space<vmem>>, vector<1x1x384xf32>,
    %c1_i32_70 = arith.constant 1 : i32
    %124 = arith.addi %3, %c1_i32_70 : i32
    %c8_i32_71 = arith.constant 8 : i32
    %125 = arith.muli %124, %c8_i32_71 : i32
    %c4_i32_72 = arith.constant 4 : i32
    %126 = arith.addi %125, %c4_i32_72 : i32
    %127 = arith.index_cast %126 : i32 to index
    %128 = memref.load %arg1[%127] : memref<64xi32, #tpu.memory_space<smem>>
    %129 = arith.index_cast %128 : i32 to index
    %c0_73 = arith.constant 0 : index
    %130 = vector.load %arg2[%129, %c0_73] : memref<40x384xf32, #tpu.memory_space<vmem>>, vector<1x384xf32>
    %c1_74 = arith.constant 1 : index
    %c4_75 = arith.constant 4 : index
    %c0_76 = arith.constant 0 : index
    %131 = vector.load %arg8[%c1_74, %c4_75, %c0_76] : memref<8x8x384xf32, #tpu.memory_space<vmem>>, vector<1x1x384xf32>
    %132 = vector.shape_cast %131 : vector<1x1x384xf32> to vector<1x384xf32>
    %133 = vector.shape_cast %130 : vector<1x384xf32> to vector<1x1x384xf32>
    tpu.vector_store %arg8[%c1_74, %c4_75, %c0_76], %133 {strides = array<i32>} : memref<8x8x384xf32, #tpu.memory_space<vmem>>, vector<1x1x384xf32>,
    %c1_i32_77 = arith.constant 1 : i32
    %134 = arith.addi %3, %c1_i32_77 : i32
    %c8_i32_78 = arith.constant 8 : i32
    %135 = arith.muli %134, %c8_i32_78 : i32
    %c5_i32_79 = arith.constant 5 : i32
    %136 = arith.addi %135, %c5_i32_79 : i32
    %137 = arith.index_cast %136 : i32 to index
    %138 = memref.load %arg1[%137] : memref<64xi32, #tpu.memory_space<smem>>
    %139 = arith.index_cast %138 : i32 to index
    %c0_80 = arith.constant 0 : index
    %140 = vector.load %arg2[%139, %c0_80] : memref<40x384xf32, #tpu.memory_space<vmem>>, vector<1x384xf32>
    %c1_81 = arith.constant 1 : index
    %c5_82 = arith.constant 5 : index
    %c0_83 = arith.constant 0 : index
    %141 = vector.load %arg8[%c1_81, %c5_82, %c0_83] : memref<8x8x384xf32, #tpu.memory_space<vmem>>, vector<1x1x384xf32>
    %142 = vector.shape_cast %141 : vector<1x1x384xf32> to vector<1x384xf32>
    %143 = vector.shape_cast %140 : vector<1x384xf32> to vector<1x1x384xf32>
    tpu.vector_store %arg8[%c1_81, %c5_82, %c0_83], %143 {strides = array<i32>} : memref<8x8x384xf32, #tpu.memory_space<vmem>>, vector<1x1x384xf32>,
    %c1_i32_84 = arith.constant 1 : i32
    %144 = arith.addi %3, %c1_i32_84 : i32
    %c8_i32_85 = arith.constant 8 : i32
    %145 = arith.muli %144, %c8_i32_85 : i32
    %c6_i32_86 = arith.constant 6 : i32
    %146 = arith.addi %145, %c6_i32_86 : i32
    %147 = arith.index_cast %146 : i32 to index
    %148 = memref.load %arg1[%147] : memref<64xi32, #tpu.memory_space<smem>>
    %149 = arith.index_cast %148 : i32 to index
    %c0_87 = arith.constant 0 : index
    %150 = vector.load %arg2[%149, %c0_87] : memref<40x384xf32, #tpu.memory_space<vmem>>, vector<1x384xf32>
    %c1_88 = arith.constant 1 : index
    %c6_89 = arith.constant 6 : index
    %c0_90 = arith.constant 0 : index
    %151 = vector.load %arg8[%c1_88, %c6_89, %c0_90] : memref<8x8x384xf32, #tpu.memory_space<vmem>>, vector<1x1x384xf32>
    %152 = vector.shape_cast %151 : vector<1x1x384xf32> to vector<1x384xf32>
    %153 = vector.shape_cast %150 : vector<1x384xf32> to vector<1x1x384xf32>
    tpu.vector_store %arg8[%c1_88, %c6_89, %c0_90], %153 {strides = array<i32>} : memref<8x8x384xf32, #tpu.memory_space<vmem>>, vector<1x1x384xf32>,
    %c1_i32_91 = arith.constant 1 : i32
    %154 = arith.addi %3, %c1_i32_91 : i32
    %c8_i32_92 = arith.constant 8 : i32
    %155 = arith.muli %154, %c8_i32_92 : i32
    %c7_i32_93 = arith.constant 7 : i32
    %156 = arith.addi %155, %c7_i32_93 : i32
    %157 = arith.index_cast %156 : i32 to index
    %158 = memref.load %arg1[%157] : memref<64xi32, #tpu.memory_space<smem>>
    %159 = arith.index_cast %158 : i32 to index
    %c0_94 = arith.constant 0 : index
    %160 = vector.load %arg2[%159, %c0_94] : memref<40x384xf32, #tpu.memory_space<vmem>>, vector<1x384xf32>
    %c1_95 = arith.constant 1 : index
    %c7_96 = arith.constant 7 : index
    %c0_97 = arith.constant 0 : index
    %161 = vector.load %arg8[%c1_95, %c7_96, %c0_97] : memref<8x8x384xf32, #tpu.memory_space<vmem>>, vector<1x1x384xf32>
    %162 = vector.shape_cast %161 : vector<1x1x384xf32> to vector<1x384xf32>
    %163 = vector.shape_cast %160 : vector<1x384xf32> to vector<1x1x384xf32>
    tpu.vector_store %arg8[%c1_95, %c7_96, %c0_97], %163 {strides = array<i32>} : memref<8x8x384xf32, #tpu.memory_space<vmem>>, vector<1x1x384xf32>,
    %c2_i32_98 = arith.constant 2 : i32
    %164 = arith.addi %3, %c2_i32_98 : i32
    %c8_i32_99 = arith.constant 8 : i32
    %165 = arith.muli %164, %c8_i32_99 : i32
    %c0_i32_100 = arith.constant 0 : i32
    %166 = arith.addi %165, %c0_i32_100 : i32
    %167 = arith.index_cast %166 : i32 to index
    %168 = memref.load %arg1[%167] : memref<64xi32, #tpu.memory_space<smem>>
    %169 = arith.index_cast %168 : i32 to index
    %c0_101 = arith.constant 0 : index
    %170 = vector.load %arg2[%169, %c0_101] : memref<40x384xf32, #tpu.memory_space<vmem>>, vector<1x384xf32>
    %c2_102 = arith.constant 2 : index
    %c0_103 = arith.constant 0 : index
    %c0_104 = arith.constant 0 : index
    %171 = vector.load %arg8[%c2_102, %c0_103, %c0_104] : memref<8x8x384xf32, #tpu.memory_space<vmem>>, vector<1x1x384xf32>
    %172 = vector.shape_cast %171 : vector<1x1x384xf32> to vector<1x384xf32>
    %173 = vector.shape_cast %170 : vector<1x384xf32> to vector<1x1x384xf32>
    tpu.vector_store %arg8[%c2_102, %c0_103, %c0_104], %173 {strides = array<i32>} : memref<8x8x384xf32, #tpu.memory_space<vmem>>, vector<1x1x384xf32>,
    %c2_i32_105 = arith.constant 2 : i32
    %174 = arith.addi %3, %c2_i32_105 : i32
    %c8_i32_106 = arith.constant 8 : i32
    %175 = arith.muli %174, %c8_i32_106 : i32
    %c1_i32_107 = arith.constant 1 : i32
    %176 = arith.addi %175, %c1_i32_107 : i32
    %177 = arith.index_cast %176 : i32 to index
    %178 = memref.load %arg1[%177] : memref<64xi32, #tpu.memory_space<smem>>
    %179 = arith.index_cast %178 : i32 to index
    %c0_108 = arith.constant 0 : index
    %180 = vector.load %arg2[%179, %c0_108] : memref<40x384xf32, #tpu.memory_space<vmem>>, vector<1x384xf32>
    %c2_109 = arith.constant 2 : index
    %c1_110 = arith.constant 1 : index
    %c0_111 = arith.constant 0 : index
    %181 = vector.load %arg8[%c2_109, %c1_110, %c0_111] : memref<8x8x384xf32, #tpu.memory_space<vmem>>, vector<1x1x384xf32>
    %182 = vector.shape_cast %181 : vector<1x1x384xf32> to vector<1x384xf32>
    %183 = vector.shape_cast %180 : vector<1x384xf32> to vector<1x1x384xf32>
    tpu.vector_store %arg8[%c2_109, %c1_110, %c0_111], %183 {strides = array<i32>} : memref<8x8x384xf32, #tpu.memory_space<vmem>>, vector<1x1x384xf32>,
    %c2_i32_112 = arith.constant 2 : i32
    %184 = arith.addi %3, %c2_i32_112 : i32
    %c8_i32_113 = arith.constant 8 : i32
    %185 = arith.muli %184, %c8_i32_113 : i32
    %c2_i32_114 = arith.constant 2 : i32
    %186 = arith.addi %185, %c2_i32_114 : i32
    %187 = arith.index_cast %186 : i32 to index
    %188 = memref.load %arg1[%187] : memref<64xi32, #tpu.memory_space<smem>>
    %189 = arith.index_cast %188 : i32 to index
    %c0_115 = arith.constant 0 : index
    %190 = vector.load %arg2[%189, %c0_115] : memref<40x384xf32, #tpu.memory_space<vmem>>, vector<1x384xf32>
    %c2_116 = arith.constant 2 : index
    %c2_117 = arith.constant 2 : index
    %c0_118 = arith.constant 0 : index
    %191 = vector.load %arg8[%c2_116, %c2_117, %c0_118] : memref<8x8x384xf32, #tpu.memory_space<vmem>>, vector<1x1x384xf32>
    %192 = vector.shape_cast %191 : vector<1x1x384xf32> to vector<1x384xf32>
    %193 = vector.shape_cast %190 : vector<1x384xf32> to vector<1x1x384xf32>
    tpu.vector_store %arg8[%c2_116, %c2_117, %c0_118], %193 {strides = array<i32>} : memref<8x8x384xf32, #tpu.memory_space<vmem>>, vector<1x1x384xf32>,
    %c2_i32_119 = arith.constant 2 : i32
    %194 = arith.addi %3, %c2_i32_119 : i32
    %c8_i32_120 = arith.constant 8 : i32
    %195 = arith.muli %194, %c8_i32_120 : i32
    %c3_i32_121 = arith.constant 3 : i32
    %196 = arith.addi %195, %c3_i32_121 : i32
    %197 = arith.index_cast %196 : i32 to index
    %198 = memref.load %arg1[%197] : memref<64xi32, #tpu.memory_space<smem>>
    %199 = arith.index_cast %198 : i32 to index
    %c0_122 = arith.constant 0 : index
    %200 = vector.load %arg2[%199, %c0_122] : memref<40x384xf32, #tpu.memory_space<vmem>>, vector<1x384xf32>
    %c2_123 = arith.constant 2 : index
    %c3_124 = arith.constant 3 : index
    %c0_125 = arith.constant 0 : index
    %201 = vector.load %arg8[%c2_123, %c3_124, %c0_125] : memref<8x8x384xf32, #tpu.memory_space<vmem>>, vector<1x1x384xf32>
    %202 = vector.shape_cast %201 : vector<1x1x384xf32> to vector<1x384xf32>
    %203 = vector.shape_cast %200 : vector<1x384xf32> to vector<1x1x384xf32>
    tpu.vector_store %arg8[%c2_123, %c3_124, %c0_125], %203 {strides = array<i32>} : memref<8x8x384xf32, #tpu.memory_space<vmem>>, vector<1x1x384xf32>,
    %c2_i32_126 = arith.constant 2 : i32
    %204 = arith.addi %3, %c2_i32_126 : i32
    %c8_i32_127 = arith.constant 8 : i32
    %205 = arith.muli %204, %c8_i32_127 : i32
    %c4_i32_128 = arith.constant 4 : i32
    %206 = arith.addi %205, %c4_i32_128 : i32
    %207 = arith.index_cast %206 : i32 to index
    %208 = memref.load %arg1[%207] : memref<64xi32, #tpu.memory_space<smem>>
    %209 = arith.index_cast %208 : i32 to index
    %c0_129 = arith.constant 0 : index
    %210 = vector.load %arg2[%209, %c0_129] : memref<40x384xf32, #tpu.memory_space<vmem>>, vector<1x384xf32>
    %c2_130 = arith.constant 2 : index
    %c4_131 = arith.constant 4 : index
    %c0_132 = arith.constant 0 : index
    %211 = vector.load %arg8[%c2_130, %c4_131, %c0_132] : memref<8x8x384xf32, #tpu.memory_space<vmem>>, vector<1x1x384xf32>
    %212 = vector.shape_cast %211 : vector<1x1x384xf32> to vector<1x384xf32>
    %213 = vector.shape_cast %210 : vector<1x384xf32> to vector<1x1x384xf32>
    tpu.vector_store %arg8[%c2_130, %c4_131, %c0_132], %213 {strides = array<i32>} : memref<8x8x384xf32, #tpu.memory_space<vmem>>, vector<1x1x384xf32>,
    %c2_i32_133 = arith.constant 2 : i32
    %214 = arith.addi %3, %c2_i32_133 : i32
    %c8_i32_134 = arith.constant 8 : i32
    %215 = arith.muli %214, %c8_i32_134 : i32
    %c5_i32_135 = arith.constant 5 : i32
    %216 = arith.addi %215, %c5_i32_135 : i32
    %217 = arith.index_cast %216 : i32 to index
    %218 = memref.load %arg1[%217] : memref<64xi32, #tpu.memory_space<smem>>
    %219 = arith.index_cast %218 : i32 to index
    %c0_136 = arith.constant 0 : index
    %220 = vector.load %arg2[%219, %c0_136] : memref<40x384xf32, #tpu.memory_space<vmem>>, vector<1x384xf32>
    %c2_137 = arith.constant 2 : index
    %c5_138 = arith.constant 5 : index
    %c0_139 = arith.constant 0 : index
    %221 = vector.load %arg8[%c2_137, %c5_138, %c0_139] : memref<8x8x384xf32, #tpu.memory_space<vmem>>, vector<1x1x384xf32>
    %222 = vector.shape_cast %221 : vector<1x1x384xf32> to vector<1x384xf32>
    %223 = vector.shape_cast %220 : vector<1x384xf32> to vector<1x1x384xf32>
    tpu.vector_store %arg8[%c2_137, %c5_138, %c0_139], %223 {strides = array<i32>} : memref<8x8x384xf32, #tpu.memory_space<vmem>>, vector<1x1x384xf32>,
    %c2_i32_140 = arith.constant 2 : i32
    %224 = arith.addi %3, %c2_i32_140 : i32
    %c8_i32_141 = arith.constant 8 : i32
    %225 = arith.muli %224, %c8_i32_141 : i32
    %c6_i32_142 = arith.constant 6 : i32
    %226 = arith.addi %225, %c6_i32_142 : i32
    %227 = arith.index_cast %226 : i32 to index
    %228 = memref.load %arg1[%227] : memref<64xi32, #tpu.memory_space<smem>>
    %229 = arith.index_cast %228 : i32 to index
    %c0_143 = arith.constant 0 : index
    %230 = vector.load %arg2[%229, %c0_143] : memref<40x384xf32, #tpu.memory_space<vmem>>, vector<1x384xf32>
    %c2_144 = arith.constant 2 : index
    %c6_145 = arith.constant 6 : index
    %c0_146 = arith.constant 0 : index
    %231 = vector.load %arg8[%c2_144, %c6_145, %c0_146] : memref<8x8x384xf32, #tpu.memory_space<vmem>>, vector<1x1x384xf32>
    %232 = vector.shape_cast %231 : vector<1x1x384xf32> to vector<1x384xf32>
    %233 = vector.shape_cast %230 : vector<1x384xf32> to vector<1x1x384xf32>
    tpu.vector_store %arg8[%c2_144, %c6_145, %c0_146], %233 {strides = array<i32>} : memref<8x8x384xf32, #tpu.memory_space<vmem>>, vector<1x1x384xf32>,
    %c2_i32_147 = arith.constant 2 : i32
    %234 = arith.addi %3, %c2_i32_147 : i32
    %c8_i32_148 = arith.constant 8 : i32
    %235 = arith.muli %234, %c8_i32_148 : i32
    %c7_i32_149 = arith.constant 7 : i32
    %236 = arith.addi %235, %c7_i32_149 : i32
    %237 = arith.index_cast %236 : i32 to index
    %238 = memref.load %arg1[%237] : memref<64xi32, #tpu.memory_space<smem>>
    %239 = arith.index_cast %238 : i32 to index
    %c0_150 = arith.constant 0 : index
    %240 = vector.load %arg2[%239, %c0_150] : memref<40x384xf32, #tpu.memory_space<vmem>>, vector<1x384xf32>
    %c2_151 = arith.constant 2 : index
    %c7_152 = arith.constant 7 : index
    %c0_153 = arith.constant 0 : index
    %241 = vector.load %arg8[%c2_151, %c7_152, %c0_153] : memref<8x8x384xf32, #tpu.memory_space<vmem>>, vector<1x1x384xf32>
    %242 = vector.shape_cast %241 : vector<1x1x384xf32> to vector<1x384xf32>
    %243 = vector.shape_cast %240 : vector<1x384xf32> to vector<1x1x384xf32>
    tpu.vector_store %arg8[%c2_151, %c7_152, %c0_153], %243 {strides = array<i32>} : memref<8x8x384xf32, #tpu.memory_space<vmem>>, vector<1x1x384xf32>,
    %c3_i32_154 = arith.constant 3 : i32
    %244 = arith.addi %3, %c3_i32_154 : i32
    %c8_i32_155 = arith.constant 8 : i32
    %245 = arith.muli %244, %c8_i32_155 : i32
    %c0_i32_156 = arith.constant 0 : i32
    %246 = arith.addi %245, %c0_i32_156 : i32
    %247 = arith.index_cast %246 : i32 to index
    %248 = memref.load %arg1[%247] : memref<64xi32, #tpu.memory_space<smem>>
    %249 = arith.index_cast %248 : i32 to index
    %c0_157 = arith.constant 0 : index
    %250 = vector.load %arg2[%249, %c0_157] : memref<40x384xf32, #tpu.memory_space<vmem>>, vector<1x384xf32>
    %c3_158 = arith.constant 3 : index
    %c0_159 = arith.constant 0 : index
    %c0_160 = arith.constant 0 : index
    %251 = vector.load %arg8[%c3_158, %c0_159, %c0_160] : memref<8x8x384xf32, #tpu.memory_space<vmem>>, vector<1x1x384xf32>
    %252 = vector.shape_cast %251 : vector<1x1x384xf32> to vector<1x384xf32>
    %253 = vector.shape_cast %250 : vector<1x384xf32> to vector<1x1x384xf32>
    tpu.vector_store %arg8[%c3_158, %c0_159, %c0_160], %253 {strides = array<i32>} : memref<8x8x384xf32, #tpu.memory_space<vmem>>, vector<1x1x384xf32>,
    %c3_i32_161 = arith.constant 3 : i32
    %254 = arith.addi %3, %c3_i32_161 : i32
    %c8_i32_162 = arith.constant 8 : i32
    %255 = arith.muli %254, %c8_i32_162 : i32
    %c1_i32_163 = arith.constant 1 : i32
    %256 = arith.addi %255, %c1_i32_163 : i32
    %257 = arith.index_cast %256 : i32 to index
    %258 = memref.load %arg1[%257] : memref<64xi32, #tpu.memory_space<smem>>
    %259 = arith.index_cast %258 : i32 to index
    %c0_164 = arith.constant 0 : index
    %260 = vector.load %arg2[%259, %c0_164] : memref<40x384xf32, #tpu.memory_space<vmem>>, vector<1x384xf32>
    %c3_165 = arith.constant 3 : index
    %c1_166 = arith.constant 1 : index
    %c0_167 = arith.constant 0 : index
    %261 = vector.load %arg8[%c3_165, %c1_166, %c0_167] : memref<8x8x384xf32, #tpu.memory_space<vmem>>, vector<1x1x384xf32>
    %262 = vector.shape_cast %261 : vector<1x1x384xf32> to vector<1x384xf32>
    %263 = vector.shape_cast %260 : vector<1x384xf32> to vector<1x1x384xf32>
    tpu.vector_store %arg8[%c3_165, %c1_166, %c0_167], %263 {strides = array<i32>} : memref<8x8x384xf32, #tpu.memory_space<vmem>>, vector<1x1x384xf32>,
    %c3_i32_168 = arith.constant 3 : i32
    %264 = arith.addi %3, %c3_i32_168 : i32
    %c8_i32_169 = arith.constant 8 : i32
    %265 = arith.muli %264, %c8_i32_169 : i32
    %c2_i32_170 = arith.constant 2 : i32
    %266 = arith.addi %265, %c2_i32_170 : i32
    %267 = arith.index_cast %266 : i32 to index
    %268 = memref.load %arg1[%267] : memref<64xi32, #tpu.memory_space<smem>>
    %269 = arith.index_cast %268 : i32 to index
    %c0_171 = arith.constant 0 : index
    %270 = vector.load %arg2[%269, %c0_171] : memref<40x384xf32, #tpu.memory_space<vmem>>, vector<1x384xf32>
    %c3_172 = arith.constant 3 : index
    %c2_173 = arith.constant 2 : index
    %c0_174 = arith.constant 0 : index
    %271 = vector.load %arg8[%c3_172, %c2_173, %c0_174] : memref<8x8x384xf32, #tpu.memory_space<vmem>>, vector<1x1x384xf32>
    %272 = vector.shape_cast %271 : vector<1x1x384xf32> to vector<1x384xf32>
    %273 = vector.shape_cast %270 : vector<1x384xf32> to vector<1x1x384xf32>
    tpu.vector_store %arg8[%c3_172, %c2_173, %c0_174], %273 {strides = array<i32>} : memref<8x8x384xf32, #tpu.memory_space<vmem>>, vector<1x1x384xf32>,
    %c3_i32_175 = arith.constant 3 : i32
    %274 = arith.addi %3, %c3_i32_175 : i32
    %c8_i32_176 = arith.constant 8 : i32
    %275 = arith.muli %274, %c8_i32_176 : i32
    %c3_i32_177 = arith.constant 3 : i32
    %276 = arith.addi %275, %c3_i32_177 : i32
    %277 = arith.index_cast %276 : i32 to index
    %278 = memref.load %arg1[%277] : memref<64xi32, #tpu.memory_space<smem>>
    %279 = arith.index_cast %278 : i32 to index
    %c0_178 = arith.constant 0 : index
    %280 = vector.load %arg2[%279, %c0_178] : memref<40x384xf32, #tpu.memory_space<vmem>>, vector<1x384xf32>
    %c3_179 = arith.constant 3 : index
    %c3_180 = arith.constant 3 : index
    %c0_181 = arith.constant 0 : index
    %281 = vector.load %arg8[%c3_179, %c3_180, %c0_181] : memref<8x8x384xf32, #tpu.memory_space<vmem>>, vector<1x1x384xf32>
    %282 = vector.shape_cast %281 : vector<1x1x384xf32> to vector<1x384xf32>
    %283 = vector.shape_cast %280 : vector<1x384xf32> to vector<1x1x384xf32>
    tpu.vector_store %arg8[%c3_179, %c3_180, %c0_181], %283 {strides = array<i32>} : memref<8x8x384xf32, #tpu.memory_space<vmem>>, vector<1x1x384xf32>,
    %c3_i32_182 = arith.constant 3 : i32
    %284 = arith.addi %3, %c3_i32_182 : i32
    %c8_i32_183 = arith.constant 8 : i32
    %285 = arith.muli %284, %c8_i32_183 : i32
    %c4_i32_184 = arith.constant 4 : i32
    %286 = arith.addi %285, %c4_i32_184 : i32
    %287 = arith.index_cast %286 : i32 to index
    %288 = memref.load %arg1[%287] : memref<64xi32, #tpu.memory_space<smem>>
    %289 = arith.index_cast %288 : i32 to index
    %c0_185 = arith.constant 0 : index
    %290 = vector.load %arg2[%289, %c0_185] : memref<40x384xf32, #tpu.memory_space<vmem>>, vector<1x384xf32>
    %c3_186 = arith.constant 3 : index
    %c4_187 = arith.constant 4 : index
    %c0_188 = arith.constant 0 : index
    %291 = vector.load %arg8[%c3_186, %c4_187, %c0_188] : memref<8x8x384xf32, #tpu.memory_space<vmem>>, vector<1x1x384xf32>
    %292 = vector.shape_cast %291 : vector<1x1x384xf32> to vector<1x384xf32>
    %293 = vector.shape_cast %290 : vector<1x384xf32> to vector<1x1x384xf32>
    tpu.vector_store %arg8[%c3_186, %c4_187, %c0_188], %293 {strides = array<i32>} : memref<8x8x384xf32, #tpu.memory_space<vmem>>, vector<1x1x384xf32>,
    %c3_i32_189 = arith.constant 3 : i32
    %294 = arith.addi %3, %c3_i32_189 : i32
    %c8_i32_190 = arith.constant 8 : i32
    %295 = arith.muli %294, %c8_i32_190 : i32
    %c5_i32_191 = arith.constant 5 : i32
    %296 = arith.addi %295, %c5_i32_191 : i32
    %297 = arith.index_cast %296 : i32 to index
    %298 = memref.load %arg1[%297] : memref<64xi32, #tpu.memory_space<smem>>
    %299 = arith.index_cast %298 : i32 to index
    %c0_192 = arith.constant 0 : index
    %300 = vector.load %arg2[%299, %c0_192] : memref<40x384xf32, #tpu.memory_space<vmem>>, vector<1x384xf32>
    %c3_193 = arith.constant 3 : index
    %c5_194 = arith.constant 5 : index
    %c0_195 = arith.constant 0 : index
    %301 = vector.load %arg8[%c3_193, %c5_194, %c0_195] : memref<8x8x384xf32, #tpu.memory_space<vmem>>, vector<1x1x384xf32>
    %302 = vector.shape_cast %301 : vector<1x1x384xf32> to vector<1x384xf32>
    %303 = vector.shape_cast %300 : vector<1x384xf32> to vector<1x1x384xf32>
    tpu.vector_store %arg8[%c3_193, %c5_194, %c0_195], %303 {strides = array<i32>} : memref<8x8x384xf32, #tpu.memory_space<vmem>>, vector<1x1x384xf32>,
    %c3_i32_196 = arith.constant 3 : i32
    %304 = arith.addi %3, %c3_i32_196 : i32
    %c8_i32_197 = arith.constant 8 : i32
    %305 = arith.muli %304, %c8_i32_197 : i32
    %c6_i32_198 = arith.constant 6 : i32
    %306 = arith.addi %305, %c6_i32_198 : i32
    %307 = arith.index_cast %306 : i32 to index
    %308 = memref.load %arg1[%307] : memref<64xi32, #tpu.memory_space<smem>>
    %309 = arith.index_cast %308 : i32 to index
    %c0_199 = arith.constant 0 : index
    %310 = vector.load %arg2[%309, %c0_199] : memref<40x384xf32, #tpu.memory_space<vmem>>, vector<1x384xf32>
    %c3_200 = arith.constant 3 : index
    %c6_201 = arith.constant 6 : index
    %c0_202 = arith.constant 0 : index
    %311 = vector.load %arg8[%c3_200, %c6_201, %c0_202] : memref<8x8x384xf32, #tpu.memory_space<vmem>>, vector<1x1x384xf32>
    %312 = vector.shape_cast %311 : vector<1x1x384xf32> to vector<1x384xf32>
    %313 = vector.shape_cast %310 : vector<1x384xf32> to vector<1x1x384xf32>
    tpu.vector_store %arg8[%c3_200, %c6_201, %c0_202], %313 {strides = array<i32>} : memref<8x8x384xf32, #tpu.memory_space<vmem>>, vector<1x1x384xf32>,
    %c3_i32_203 = arith.constant 3 : i32
    %314 = arith.addi %3, %c3_i32_203 : i32
    %c8_i32_204 = arith.constant 8 : i32
    %315 = arith.muli %314, %c8_i32_204 : i32
    %c7_i32_205 = arith.constant 7 : i32
    %316 = arith.addi %315, %c7_i32_205 : i32
    %317 = arith.index_cast %316 : i32 to index
    %318 = memref.load %arg1[%317] : memref<64xi32, #tpu.memory_space<smem>>
    %319 = arith.index_cast %318 : i32 to index
    %c0_206 = arith.constant 0 : index
    %320 = vector.load %arg2[%319, %c0_206] : memref<40x384xf32, #tpu.memory_space<vmem>>, vector<1x384xf32>
    %c3_207 = arith.constant 3 : index
    %c7_208 = arith.constant 7 : index
    %c0_209 = arith.constant 0 : index
    %321 = vector.load %arg8[%c3_207, %c7_208, %c0_209] : memref<8x8x384xf32, #tpu.memory_space<vmem>>, vector<1x1x384xf32>
    %322 = vector.shape_cast %321 : vector<1x1x384xf32> to vector<1x384xf32>
    %323 = vector.shape_cast %320 : vector<1x384xf32> to vector<1x1x384xf32>
    tpu.vector_store %arg8[%c3_207, %c7_208, %c0_209], %323 {strides = array<i32>} : memref<8x8x384xf32, #tpu.memory_space<vmem>>, vector<1x1x384xf32>,
    %c4_i32_210 = arith.constant 4 : i32
    %324 = arith.addi %3, %c4_i32_210 : i32
    %c8_i32_211 = arith.constant 8 : i32
    %325 = arith.muli %324, %c8_i32_211 : i32
    %c0_i32_212 = arith.constant 0 : i32
    %326 = arith.addi %325, %c0_i32_212 : i32
    %327 = arith.index_cast %326 : i32 to index
    %328 = memref.load %arg1[%327] : memref<64xi32, #tpu.memory_space<smem>>
    %329 = arith.index_cast %328 : i32 to index
    %c0_213 = arith.constant 0 : index
    %330 = vector.load %arg2[%329, %c0_213] : memref<40x384xf32, #tpu.memory_space<vmem>>, vector<1x384xf32>
    %c4_214 = arith.constant 4 : index
    %c0_215 = arith.constant 0 : index
    %c0_216 = arith.constant 0 : index
    %331 = vector.load %arg8[%c4_214, %c0_215, %c0_216] : memref<8x8x384xf32, #tpu.memory_space<vmem>>, vector<1x1x384xf32>
    %332 = vector.shape_cast %331 : vector<1x1x384xf32> to vector<1x384xf32>
    %333 = vector.shape_cast %330 : vector<1x384xf32> to vector<1x1x384xf32>
    tpu.vector_store %arg8[%c4_214, %c0_215, %c0_216], %333 {strides = array<i32>} : memref<8x8x384xf32, #tpu.memory_space<vmem>>, vector<1x1x384xf32>,
    %c4_i32_217 = arith.constant 4 : i32
    %334 = arith.addi %3, %c4_i32_217 : i32
    %c8_i32_218 = arith.constant 8 : i32
    %335 = arith.muli %334, %c8_i32_218 : i32
    %c1_i32_219 = arith.constant 1 : i32
    %336 = arith.addi %335, %c1_i32_219 : i32
    %337 = arith.index_cast %336 : i32 to index
    %338 = memref.load %arg1[%337] : memref<64xi32, #tpu.memory_space<smem>>
    %339 = arith.index_cast %338 : i32 to index
    %c0_220 = arith.constant 0 : index
    %340 = vector.load %arg2[%339, %c0_220] : memref<40x384xf32, #tpu.memory_space<vmem>>, vector<1x384xf32>
    %c4_221 = arith.constant 4 : index
    %c1_222 = arith.constant 1 : index
    %c0_223 = arith.constant 0 : index
    %341 = vector.load %arg8[%c4_221, %c1_222, %c0_223] : memref<8x8x384xf32, #tpu.memory_space<vmem>>, vector<1x1x384xf32>
    %342 = vector.shape_cast %341 : vector<1x1x384xf32> to vector<1x384xf32>
    %343 = vector.shape_cast %340 : vector<1x384xf32> to vector<1x1x384xf32>
    tpu.vector_store %arg8[%c4_221, %c1_222, %c0_223], %343 {strides = array<i32>} : memref<8x8x384xf32, #tpu.memory_space<vmem>>, vector<1x1x384xf32>,
    %c4_i32_224 = arith.constant 4 : i32
    %344 = arith.addi %3, %c4_i32_224 : i32
    %c8_i32_225 = arith.constant 8 : i32
    %345 = arith.muli %344, %c8_i32_225 : i32
    %c2_i32_226 = arith.constant 2 : i32
    %346 = arith.addi %345, %c2_i32_226 : i32
    %347 = arith.index_cast %346 : i32 to index
    %348 = memref.load %arg1[%347] : memref<64xi32, #tpu.memory_space<smem>>
    %349 = arith.index_cast %348 : i32 to index
    %c0_227 = arith.constant 0 : index
    %350 = vector.load %arg2[%349, %c0_227] : memref<40x384xf32, #tpu.memory_space<vmem>>, vector<1x384xf32>
    %c4_228 = arith.constant 4 : index
    %c2_229 = arith.constant 2 : index
    %c0_230 = arith.constant 0 : index
    %351 = vector.load %arg8[%c4_228, %c2_229, %c0_230] : memref<8x8x384xf32, #tpu.memory_space<vmem>>, vector<1x1x384xf32>
    %352 = vector.shape_cast %351 : vector<1x1x384xf32> to vector<1x384xf32>
    %353 = vector.shape_cast %350 : vector<1x384xf32> to vector<1x1x384xf32>
    tpu.vector_store %arg8[%c4_228, %c2_229, %c0_230], %353 {strides = array<i32>} : memref<8x8x384xf32, #tpu.memory_space<vmem>>, vector<1x1x384xf32>,
    %c4_i32_231 = arith.constant 4 : i32
    %354 = arith.addi %3, %c4_i32_231 : i32
    %c8_i32_232 = arith.constant 8 : i32
    %355 = arith.muli %354, %c8_i32_232 : i32
    %c3_i32_233 = arith.constant 3 : i32
    %356 = arith.addi %355, %c3_i32_233 : i32
    %357 = arith.index_cast %356 : i32 to index
    %358 = memref.load %arg1[%357] : memref<64xi32, #tpu.memory_space<smem>>
    %359 = arith.index_cast %358 : i32 to index
    %c0_234 = arith.constant 0 : index
    %360 = vector.load %arg2[%359, %c0_234] : memref<40x384xf32, #tpu.memory_space<vmem>>, vector<1x384xf32>
    %c4_235 = arith.constant 4 : index
    %c3_236 = arith.constant 3 : index
    %c0_237 = arith.constant 0 : index
    %361 = vector.load %arg8[%c4_235, %c3_236, %c0_237] : memref<8x8x384xf32, #tpu.memory_space<vmem>>, vector<1x1x384xf32>
    %362 = vector.shape_cast %361 : vector<1x1x384xf32> to vector<1x384xf32>
    %363 = vector.shape_cast %360 : vector<1x384xf32> to vector<1x1x384xf32>
    tpu.vector_store %arg8[%c4_235, %c3_236, %c0_237], %363 {strides = array<i32>} : memref<8x8x384xf32, #tpu.memory_space<vmem>>, vector<1x1x384xf32>,
    %c4_i32_238 = arith.constant 4 : i32
    %364 = arith.addi %3, %c4_i32_238 : i32
    %c8_i32_239 = arith.constant 8 : i32
    %365 = arith.muli %364, %c8_i32_239 : i32
    %c4_i32_240 = arith.constant 4 : i32
    %366 = arith.addi %365, %c4_i32_240 : i32
    %367 = arith.index_cast %366 : i32 to index
    %368 = memref.load %arg1[%367] : memref<64xi32, #tpu.memory_space<smem>>
    %369 = arith.index_cast %368 : i32 to index
    %c0_241 = arith.constant 0 : index
    %370 = vector.load %arg2[%369, %c0_241] : memref<40x384xf32, #tpu.memory_space<vmem>>, vector<1x384xf32>
    %c4_242 = arith.constant 4 : index
    %c4_243 = arith.constant 4 : index
    %c0_244 = arith.constant 0 : index
    %371 = vector.load %arg8[%c4_242, %c4_243, %c0_244] : memref<8x8x384xf32, #tpu.memory_space<vmem>>, vector<1x1x384xf32>
    %372 = vector.shape_cast %371 : vector<1x1x384xf32> to vector<1x384xf32>
    %373 = vector.shape_cast %370 : vector<1x384xf32> to vector<1x1x384xf32>
    tpu.vector_store %arg8[%c4_242, %c4_243, %c0_244], %373 {strides = array<i32>} : memref<8x8x384xf32, #tpu.memory_space<vmem>>, vector<1x1x384xf32>,
    %c4_i32_245 = arith.constant 4 : i32
    %374 = arith.addi %3, %c4_i32_245 : i32
    %c8_i32_246 = arith.constant 8 : i32
    %375 = arith.muli %374, %c8_i32_246 : i32
    %c5_i32_247 = arith.constant 5 : i32
    %376 = arith.addi %375, %c5_i32_247 : i32
    %377 = arith.index_cast %376 : i32 to index
    %378 = memref.load %arg1[%377] : memref<64xi32, #tpu.memory_space<smem>>
    %379 = arith.index_cast %378 : i32 to index
    %c0_248 = arith.constant 0 : index
    %380 = vector.load %arg2[%379, %c0_248] : memref<40x384xf32, #tpu.memory_space<vmem>>, vector<1x384xf32>
    %c4_249 = arith.constant 4 : index
    %c5_250 = arith.constant 5 : index
    %c0_251 = arith.constant 0 : index
    %381 = vector.load %arg8[%c4_249, %c5_250, %c0_251] : memref<8x8x384xf32, #tpu.memory_space<vmem>>, vector<1x1x384xf32>
    %382 = vector.shape_cast %381 : vector<1x1x384xf32> to vector<1x384xf32>
    %383 = vector.shape_cast %380 : vector<1x384xf32> to vector<1x1x384xf32>
    tpu.vector_store %arg8[%c4_249, %c5_250, %c0_251], %383 {strides = array<i32>} : memref<8x8x384xf32, #tpu.memory_space<vmem>>, vector<1x1x384xf32>,
    %c4_i32_252 = arith.constant 4 : i32
    %384 = arith.addi %3, %c4_i32_252 : i32
    %c8_i32_253 = arith.constant 8 : i32
    %385 = arith.muli %384, %c8_i32_253 : i32
    %c6_i32_254 = arith.constant 6 : i32
    %386 = arith.addi %385, %c6_i32_254 : i32
    %387 = arith.index_cast %386 : i32 to index
    %388 = memref.load %arg1[%387] : memref<64xi32, #tpu.memory_space<smem>>
    %389 = arith.index_cast %388 : i32 to index
    %c0_255 = arith.constant 0 : index
    %390 = vector.load %arg2[%389, %c0_255] : memref<40x384xf32, #tpu.memory_space<vmem>>, vector<1x384xf32>
    %c4_256 = arith.constant 4 : index
    %c6_257 = arith.constant 6 : index
    %c0_258 = arith.constant 0 : index
    %391 = vector.load %arg8[%c4_256, %c6_257, %c0_258] : memref<8x8x384xf32, #tpu.memory_space<vmem>>, vector<1x1x384xf32>
    %392 = vector.shape_cast %391 : vector<1x1x384xf32> to vector<1x384xf32>
    %393 = vector.shape_cast %390 : vector<1x384xf32> to vector<1x1x384xf32>
    tpu.vector_store %arg8[%c4_256, %c6_257, %c0_258], %393 {strides = array<i32>} : memref<8x8x384xf32, #tpu.memory_space<vmem>>, vector<1x1x384xf32>,
    %c4_i32_259 = arith.constant 4 : i32
    %394 = arith.addi %3, %c4_i32_259 : i32
    %c8_i32_260 = arith.constant 8 : i32
    %395 = arith.muli %394, %c8_i32_260 : i32
    %c7_i32_261 = arith.constant 7 : i32
    %396 = arith.addi %395, %c7_i32_261 : i32
    %397 = arith.index_cast %396 : i32 to index
    %398 = memref.load %arg1[%397] : memref<64xi32, #tpu.memory_space<smem>>
    %399 = arith.index_cast %398 : i32 to index
    %c0_262 = arith.constant 0 : index
    %400 = vector.load %arg2[%399, %c0_262] : memref<40x384xf32, #tpu.memory_space<vmem>>, vector<1x384xf32>
    %c4_263 = arith.constant 4 : index
    %c7_264 = arith.constant 7 : index
    %c0_265 = arith.constant 0 : index
    %401 = vector.load %arg8[%c4_263, %c7_264, %c0_265] : memref<8x8x384xf32, #tpu.memory_space<vmem>>, vector<1x1x384xf32>
    %402 = vector.shape_cast %401 : vector<1x1x384xf32> to vector<1x384xf32>
    %403 = vector.shape_cast %400 : vector<1x384xf32> to vector<1x1x384xf32>
    tpu.vector_store %arg8[%c4_263, %c7_264, %c0_265], %403 {strides = array<i32>} : memref<8x8x384xf32, #tpu.memory_space<vmem>>, vector<1x1x384xf32>,
    %c5_i32_266 = arith.constant 5 : i32
    %404 = arith.addi %3, %c5_i32_266 : i32
    %c8_i32_267 = arith.constant 8 : i32
    %405 = arith.muli %404, %c8_i32_267 : i32
    %c0_i32_268 = arith.constant 0 : i32
    %406 = arith.addi %405, %c0_i32_268 : i32
    %407 = arith.index_cast %406 : i32 to index
    %408 = memref.load %arg1[%407] : memref<64xi32, #tpu.memory_space<smem>>
    %409 = arith.index_cast %408 : i32 to index
    %c0_269 = arith.constant 0 : index
    %410 = vector.load %arg2[%409, %c0_269] : memref<40x384xf32, #tpu.memory_space<vmem>>, vector<1x384xf32>
    %c5_270 = arith.constant 5 : index
    %c0_271 = arith.constant 0 : index
    %c0_272 = arith.constant 0 : index
    %411 = vector.load %arg8[%c5_270, %c0_271, %c0_272] : memref<8x8x384xf32, #tpu.memory_space<vmem>>, vector<1x1x384xf32>
    %412 = vector.shape_cast %411 : vector<1x1x384xf32> to vector<1x384xf32>
    %413 = vector.shape_cast %410 : vector<1x384xf32> to vector<1x1x384xf32>
    tpu.vector_store %arg8[%c5_270, %c0_271, %c0_272], %413 {strides = array<i32>} : memref<8x8x384xf32, #tpu.memory_space<vmem>>, vector<1x1x384xf32>,
    %c5_i32_273 = arith.constant 5 : i32
    %414 = arith.addi %3, %c5_i32_273 : i32
    %c8_i32_274 = arith.constant 8 : i32
    %415 = arith.muli %414, %c8_i32_274 : i32
    %c1_i32_275 = arith.constant 1 : i32
    %416 = arith.addi %415, %c1_i32_275 : i32
    %417 = arith.index_cast %416 : i32 to index
    %418 = memref.load %arg1[%417] : memref<64xi32, #tpu.memory_space<smem>>
    %419 = arith.index_cast %418 : i32 to index
    %c0_276 = arith.constant 0 : index
    %420 = vector.load %arg2[%419, %c0_276] : memref<40x384xf32, #tpu.memory_space<vmem>>, vector<1x384xf32>
    %c5_277 = arith.constant 5 : index
    %c1_278 = arith.constant 1 : index
    %c0_279 = arith.constant 0 : index
    %421 = vector.load %arg8[%c5_277, %c1_278, %c0_279] : memref<8x8x384xf32, #tpu.memory_space<vmem>>, vector<1x1x384xf32>
    %422 = vector.shape_cast %421 : vector<1x1x384xf32> to vector<1x384xf32>
    %423 = vector.shape_cast %420 : vector<1x384xf32> to vector<1x1x384xf32>
    tpu.vector_store %arg8[%c5_277, %c1_278, %c0_279], %423 {strides = array<i32>} : memref<8x8x384xf32, #tpu.memory_space<vmem>>, vector<1x1x384xf32>,
    %c5_i32_280 = arith.constant 5 : i32
    %424 = arith.addi %3, %c5_i32_280 : i32
    %c8_i32_281 = arith.constant 8 : i32
    %425 = arith.muli %424, %c8_i32_281 : i32
    %c2_i32_282 = arith.constant 2 : i32
    %426 = arith.addi %425, %c2_i32_282 : i32
    %427 = arith.index_cast %426 : i32 to index
    %428 = memref.load %arg1[%427] : memref<64xi32, #tpu.memory_space<smem>>
    %429 = arith.index_cast %428 : i32 to index
    %c0_283 = arith.constant 0 : index
    %430 = vector.load %arg2[%429, %c0_283] : memref<40x384xf32, #tpu.memory_space<vmem>>, vector<1x384xf32>
    %c5_284 = arith.constant 5 : index
    %c2_285 = arith.constant 2 : index
    %c0_286 = arith.constant 0 : index
    %431 = vector.load %arg8[%c5_284, %c2_285, %c0_286] : memref<8x8x384xf32, #tpu.memory_space<vmem>>, vector<1x1x384xf32>
    %432 = vector.shape_cast %431 : vector<1x1x384xf32> to vector<1x384xf32>
    %433 = vector.shape_cast %430 : vector<1x384xf32> to vector<1x1x384xf32>
    tpu.vector_store %arg8[%c5_284, %c2_285, %c0_286], %433 {strides = array<i32>} : memref<8x8x384xf32, #tpu.memory_space<vmem>>, vector<1x1x384xf32>,
    %c5_i32_287 = arith.constant 5 : i32
    %434 = arith.addi %3, %c5_i32_287 : i32
    %c8_i32_288 = arith.constant 8 : i32
    %435 = arith.muli %434, %c8_i32_288 : i32
    %c3_i32_289 = arith.constant 3 : i32
    %436 = arith.addi %435, %c3_i32_289 : i32
    %437 = arith.index_cast %436 : i32 to index
    %438 = memref.load %arg1[%437] : memref<64xi32, #tpu.memory_space<smem>>
    %439 = arith.index_cast %438 : i32 to index
    %c0_290 = arith.constant 0 : index
    %440 = vector.load %arg2[%439, %c0_290] : memref<40x384xf32, #tpu.memory_space<vmem>>, vector<1x384xf32>
    %c5_291 = arith.constant 5 : index
    %c3_292 = arith.constant 3 : index
    %c0_293 = arith.constant 0 : index
    %441 = vector.load %arg8[%c5_291, %c3_292, %c0_293] : memref<8x8x384xf32, #tpu.memory_space<vmem>>, vector<1x1x384xf32>
    %442 = vector.shape_cast %441 : vector<1x1x384xf32> to vector<1x384xf32>
    %443 = vector.shape_cast %440 : vector<1x384xf32> to vector<1x1x384xf32>
    tpu.vector_store %arg8[%c5_291, %c3_292, %c0_293], %443 {strides = array<i32>} : memref<8x8x384xf32, #tpu.memory_space<vmem>>, vector<1x1x384xf32>,
    %c5_i32_294 = arith.constant 5 : i32
    %444 = arith.addi %3, %c5_i32_294 : i32
    %c8_i32_295 = arith.constant 8 : i32
    %445 = arith.muli %444, %c8_i32_295 : i32
    %c4_i32_296 = arith.constant 4 : i32
    %446 = arith.addi %445, %c4_i32_296 : i32
    %447 = arith.index_cast %446 : i32 to index
    %448 = memref.load %arg1[%447] : memref<64xi32, #tpu.memory_space<smem>>
    %449 = arith.index_cast %448 : i32 to index
    %c0_297 = arith.constant 0 : index
    %450 = vector.load %arg2[%449, %c0_297] : memref<40x384xf32, #tpu.memory_space<vmem>>, vector<1x384xf32>
    %c5_298 = arith.constant 5 : index
    %c4_299 = arith.constant 4 : index
    %c0_300 = arith.constant 0 : index
    %451 = vector.load %arg8[%c5_298, %c4_299, %c0_300] : memref<8x8x384xf32, #tpu.memory_space<vmem>>, vector<1x1x384xf32>
    %452 = vector.shape_cast %451 : vector<1x1x384xf32> to vector<1x384xf32>
    %453 = vector.shape_cast %450 : vector<1x384xf32> to vector<1x1x384xf32>
    tpu.vector_store %arg8[%c5_298, %c4_299, %c0_300], %453 {strides = array<i32>} : memref<8x8x384xf32, #tpu.memory_space<vmem>>, vector<1x1x384xf32>,
    %c5_i32_301 = arith.constant 5 : i32
    %454 = arith.addi %3, %c5_i32_301 : i32
    %c8_i32_302 = arith.constant 8 : i32
    %455 = arith.muli %454, %c8_i32_302 : i32
    %c5_i32_303 = arith.constant 5 : i32
    %456 = arith.addi %455, %c5_i32_303 : i32
    %457 = arith.index_cast %456 : i32 to index
    %458 = memref.load %arg1[%457] : memref<64xi32, #tpu.memory_space<smem>>
    %459 = arith.index_cast %458 : i32 to index
    %c0_304 = arith.constant 0 : index
    %460 = vector.load %arg2[%459, %c0_304] : memref<40x384xf32, #tpu.memory_space<vmem>>, vector<1x384xf32>
    %c5_305 = arith.constant 5 : index
    %c5_306 = arith.constant 5 : index
    %c0_307 = arith.constant 0 : index
    %461 = vector.load %arg8[%c5_305, %c5_306, %c0_307] : memref<8x8x384xf32, #tpu.memory_space<vmem>>, vector<1x1x384xf32>
    %462 = vector.shape_cast %461 : vector<1x1x384xf32> to vector<1x384xf32>
    %463 = vector.shape_cast %460 : vector<1x384xf32> to vector<1x1x384xf32>
    tpu.vector_store %arg8[%c5_305, %c5_306, %c0_307], %463 {strides = array<i32>} : memref<8x8x384xf32, #tpu.memory_space<vmem>>, vector<1x1x384xf32>,
    %c5_i32_308 = arith.constant 5 : i32
    %464 = arith.addi %3, %c5_i32_308 : i32
    %c8_i32_309 = arith.constant 8 : i32
    %465 = arith.muli %464, %c8_i32_309 : i32
    %c6_i32_310 = arith.constant 6 : i32
    %466 = arith.addi %465, %c6_i32_310 : i32
    %467 = arith.index_cast %466 : i32 to index
    %468 = memref.load %arg1[%467] : memref<64xi32, #tpu.memory_space<smem>>
    %469 = arith.index_cast %468 : i32 to index
    %c0_311 = arith.constant 0 : index
    %470 = vector.load %arg2[%469, %c0_311] : memref<40x384xf32, #tpu.memory_space<vmem>>, vector<1x384xf32>
    %c5_312 = arith.constant 5 : index
    %c6_313 = arith.constant 6 : index
    %c0_314 = arith.constant 0 : index
    %471 = vector.load %arg8[%c5_312, %c6_313, %c0_314] : memref<8x8x384xf32, #tpu.memory_space<vmem>>, vector<1x1x384xf32>
    %472 = vector.shape_cast %471 : vector<1x1x384xf32> to vector<1x384xf32>
    %473 = vector.shape_cast %470 : vector<1x384xf32> to vector<1x1x384xf32>
    tpu.vector_store %arg8[%c5_312, %c6_313, %c0_314], %473 {strides = array<i32>} : memref<8x8x384xf32, #tpu.memory_space<vmem>>, vector<1x1x384xf32>,
    %c5_i32_315 = arith.constant 5 : i32
    %474 = arith.addi %3, %c5_i32_315 : i32
    %c8_i32_316 = arith.constant 8 : i32
    %475 = arith.muli %474, %c8_i32_316 : i32
    %c7_i32_317 = arith.constant 7 : i32
    %476 = arith.addi %475, %c7_i32_317 : i32
    %477 = arith.index_cast %476 : i32 to index
    %478 = memref.load %arg1[%477] : memref<64xi32, #tpu.memory_space<smem>>
    %479 = arith.index_cast %478 : i32 to index
    %c0_318 = arith.constant 0 : index
    %480 = vector.load %arg2[%479, %c0_318] : memref<40x384xf32, #tpu.memory_space<vmem>>, vector<1x384xf32>
    %c5_319 = arith.constant 5 : index
    %c7_320 = arith.constant 7 : index
    %c0_321 = arith.constant 0 : index
    %481 = vector.load %arg8[%c5_319, %c7_320, %c0_321] : memref<8x8x384xf32, #tpu.memory_space<vmem>>, vector<1x1x384xf32>
    %482 = vector.shape_cast %481 : vector<1x1x384xf32> to vector<1x384xf32>
    %483 = vector.shape_cast %480 : vector<1x384xf32> to vector<1x1x384xf32>
    tpu.vector_store %arg8[%c5_319, %c7_320, %c0_321], %483 {strides = array<i32>} : memref<8x8x384xf32, #tpu.memory_space<vmem>>, vector<1x1x384xf32>,
    %c6_i32_322 = arith.constant 6 : i32
    %484 = arith.addi %3, %c6_i32_322 : i32
    %c8_i32_323 = arith.constant 8 : i32
    %485 = arith.muli %484, %c8_i32_323 : i32
    %c0_i32_324 = arith.constant 0 : i32
    %486 = arith.addi %485, %c0_i32_324 : i32
    %487 = arith.index_cast %486 : i32 to index
    %488 = memref.load %arg1[%487] : memref<64xi32, #tpu.memory_space<smem>>
    %489 = arith.index_cast %488 : i32 to index
    %c0_325 = arith.constant 0 : index
    %490 = vector.load %arg2[%489, %c0_325] : memref<40x384xf32, #tpu.memory_space<vmem>>, vector<1x384xf32>
    %c6_326 = arith.constant 6 : index
    %c0_327 = arith.constant 0 : index
    %c0_328 = arith.constant 0 : index
    %491 = vector.load %arg8[%c6_326, %c0_327, %c0_328] : memref<8x8x384xf32, #tpu.memory_space<vmem>>, vector<1x1x384xf32>
    %492 = vector.shape_cast %491 : vector<1x1x384xf32> to vector<1x384xf32>
    %493 = vector.shape_cast %490 : vector<1x384xf32> to vector<1x1x384xf32>
    tpu.vector_store %arg8[%c6_326, %c0_327, %c0_328], %493 {strides = array<i32>} : memref<8x8x384xf32, #tpu.memory_space<vmem>>, vector<1x1x384xf32>,
    %c6_i32_329 = arith.constant 6 : i32
    %494 = arith.addi %3, %c6_i32_329 : i32
    %c8_i32_330 = arith.constant 8 : i32
    %495 = arith.muli %494, %c8_i32_330 : i32
    %c1_i32_331 = arith.constant 1 : i32
    %496 = arith.addi %495, %c1_i32_331 : i32
    %497 = arith.index_cast %496 : i32 to index
    %498 = memref.load %arg1[%497] : memref<64xi32, #tpu.memory_space<smem>>
    %499 = arith.index_cast %498 : i32 to index
    %c0_332 = arith.constant 0 : index
    %500 = vector.load %arg2[%499, %c0_332] : memref<40x384xf32, #tpu.memory_space<vmem>>, vector<1x384xf32>
    %c6_333 = arith.constant 6 : index
    %c1_334 = arith.constant 1 : index
    %c0_335 = arith.constant 0 : index
    %501 = vector.load %arg8[%c6_333, %c1_334, %c0_335] : memref<8x8x384xf32, #tpu.memory_space<vmem>>, vector<1x1x384xf32>
    %502 = vector.shape_cast %501 : vector<1x1x384xf32> to vector<1x384xf32>
    %503 = vector.shape_cast %500 : vector<1x384xf32> to vector<1x1x384xf32>
    tpu.vector_store %arg8[%c6_333, %c1_334, %c0_335], %503 {strides = array<i32>} : memref<8x8x384xf32, #tpu.memory_space<vmem>>, vector<1x1x384xf32>,
    %c6_i32_336 = arith.constant 6 : i32
    %504 = arith.addi %3, %c6_i32_336 : i32
    %c8_i32_337 = arith.constant 8 : i32
    %505 = arith.muli %504, %c8_i32_337 : i32
    %c2_i32_338 = arith.constant 2 : i32
    %506 = arith.addi %505, %c2_i32_338 : i32
    %507 = arith.index_cast %506 : i32 to index
    %508 = memref.load %arg1[%507] : memref<64xi32, #tpu.memory_space<smem>>
    %509 = arith.index_cast %508 : i32 to index
    %c0_339 = arith.constant 0 : index
    %510 = vector.load %arg2[%509, %c0_339] : memref<40x384xf32, #tpu.memory_space<vmem>>, vector<1x384xf32>
    %c6_340 = arith.constant 6 : index
    %c2_341 = arith.constant 2 : index
    %c0_342 = arith.constant 0 : index
    %511 = vector.load %arg8[%c6_340, %c2_341, %c0_342] : memref<8x8x384xf32, #tpu.memory_space<vmem>>, vector<1x1x384xf32>
    %512 = vector.shape_cast %511 : vector<1x1x384xf32> to vector<1x384xf32>
    %513 = vector.shape_cast %510 : vector<1x384xf32> to vector<1x1x384xf32>
    tpu.vector_store %arg8[%c6_340, %c2_341, %c0_342], %513 {strides = array<i32>} : memref<8x8x384xf32, #tpu.memory_space<vmem>>, vector<1x1x384xf32>,
    %c6_i32_343 = arith.constant 6 : i32
    %514 = arith.addi %3, %c6_i32_343 : i32
    %c8_i32_344 = arith.constant 8 : i32
    %515 = arith.muli %514, %c8_i32_344 : i32
    %c3_i32_345 = arith.constant 3 : i32
    %516 = arith.addi %515, %c3_i32_345 : i32
    %517 = arith.index_cast %516 : i32 to index
    %518 = memref.load %arg1[%517] : memref<64xi32, #tpu.memory_space<smem>>
    %519 = arith.index_cast %518 : i32 to index
    %c0_346 = arith.constant 0 : index
    %520 = vector.load %arg2[%519, %c0_346] : memref<40x384xf32, #tpu.memory_space<vmem>>, vector<1x384xf32>
    %c6_347 = arith.constant 6 : index
    %c3_348 = arith.constant 3 : index
    %c0_349 = arith.constant 0 : index
    %521 = vector.load %arg8[%c6_347, %c3_348, %c0_349] : memref<8x8x384xf32, #tpu.memory_space<vmem>>, vector<1x1x384xf32>
    %522 = vector.shape_cast %521 : vector<1x1x384xf32> to vector<1x384xf32>
    %523 = vector.shape_cast %520 : vector<1x384xf32> to vector<1x1x384xf32>
    tpu.vector_store %arg8[%c6_347, %c3_348, %c0_349], %523 {strides = array<i32>} : memref<8x8x384xf32, #tpu.memory_space<vmem>>, vector<1x1x384xf32>,
    %c6_i32_350 = arith.constant 6 : i32
    %524 = arith.addi %3, %c6_i32_350 : i32
    %c8_i32_351 = arith.constant 8 : i32
    %525 = arith.muli %524, %c8_i32_351 : i32
    %c4_i32_352 = arith.constant 4 : i32
    %526 = arith.addi %525, %c4_i32_352 : i32
    %527 = arith.index_cast %526 : i32 to index
    %528 = memref.load %arg1[%527] : memref<64xi32, #tpu.memory_space<smem>>
    %529 = arith.index_cast %528 : i32 to index
    %c0_353 = arith.constant 0 : index
    %530 = vector.load %arg2[%529, %c0_353] : memref<40x384xf32, #tpu.memory_space<vmem>>, vector<1x384xf32>
    %c6_354 = arith.constant 6 : index
    %c4_355 = arith.constant 4 : index
    %c0_356 = arith.constant 0 : index
    %531 = vector.load %arg8[%c6_354, %c4_355, %c0_356] : memref<8x8x384xf32, #tpu.memory_space<vmem>>, vector<1x1x384xf32>
    %532 = vector.shape_cast %531 : vector<1x1x384xf32> to vector<1x384xf32>
    %533 = vector.shape_cast %530 : vector<1x384xf32> to vector<1x1x384xf32>
    tpu.vector_store %arg8[%c6_354, %c4_355, %c0_356], %533 {strides = array<i32>} : memref<8x8x384xf32, #tpu.memory_space<vmem>>, vector<1x1x384xf32>,
    %c6_i32_357 = arith.constant 6 : i32
    %534 = arith.addi %3, %c6_i32_357 : i32
    %c8_i32_358 = arith.constant 8 : i32
    %535 = arith.muli %534, %c8_i32_358 : i32
    %c5_i32_359 = arith.constant 5 : i32
    %536 = arith.addi %535, %c5_i32_359 : i32
    %537 = arith.index_cast %536 : i32 to index
    %538 = memref.load %arg1[%537] : memref<64xi32, #tpu.memory_space<smem>>
    %539 = arith.index_cast %538 : i32 to index
    %c0_360 = arith.constant 0 : index
    %540 = vector.load %arg2[%539, %c0_360] : memref<40x384xf32, #tpu.memory_space<vmem>>, vector<1x384xf32>
    %c6_361 = arith.constant 6 : index
    %c5_362 = arith.constant 5 : index
    %c0_363 = arith.constant 0 : index
    %541 = vector.load %arg8[%c6_361, %c5_362, %c0_363] : memref<8x8x384xf32, #tpu.memory_space<vmem>>, vector<1x1x384xf32>
    %542 = vector.shape_cast %541 : vector<1x1x384xf32> to vector<1x384xf32>
    %543 = vector.shape_cast %540 : vector<1x384xf32> to vector<1x1x384xf32>
    tpu.vector_store %arg8[%c6_361, %c5_362, %c0_363], %543 {strides = array<i32>} : memref<8x8x384xf32, #tpu.memory_space<vmem>>, vector<1x1x384xf32>,
    %c6_i32_364 = arith.constant 6 : i32
    %544 = arith.addi %3, %c6_i32_364 : i32
    %c8_i32_365 = arith.constant 8 : i32
    %545 = arith.muli %544, %c8_i32_365 : i32
    %c6_i32_366 = arith.constant 6 : i32
    %546 = arith.addi %545, %c6_i32_366 : i32
    %547 = arith.index_cast %546 : i32 to index
    %548 = memref.load %arg1[%547] : memref<64xi32, #tpu.memory_space<smem>>
    %549 = arith.index_cast %548 : i32 to index
    %c0_367 = arith.constant 0 : index
    %550 = vector.load %arg2[%549, %c0_367] : memref<40x384xf32, #tpu.memory_space<vmem>>, vector<1x384xf32>
    %c6_368 = arith.constant 6 : index
    %c6_369 = arith.constant 6 : index
    %c0_370 = arith.constant 0 : index
    %551 = vector.load %arg8[%c6_368, %c6_369, %c0_370] : memref<8x8x384xf32, #tpu.memory_space<vmem>>, vector<1x1x384xf32>
    %552 = vector.shape_cast %551 : vector<1x1x384xf32> to vector<1x384xf32>
    %553 = vector.shape_cast %550 : vector<1x384xf32> to vector<1x1x384xf32>
    tpu.vector_store %arg8[%c6_368, %c6_369, %c0_370], %553 {strides = array<i32>} : memref<8x8x384xf32, #tpu.memory_space<vmem>>, vector<1x1x384xf32>,
    %c6_i32_371 = arith.constant 6 : i32
    %554 = arith.addi %3, %c6_i32_371 : i32
    %c8_i32_372 = arith.constant 8 : i32
    %555 = arith.muli %554, %c8_i32_372 : i32
    %c7_i32_373 = arith.constant 7 : i32
    %556 = arith.addi %555, %c7_i32_373 : i32
    %557 = arith.index_cast %556 : i32 to index
    %558 = memref.load %arg1[%557] : memref<64xi32, #tpu.memory_space<smem>>
    %559 = arith.index_cast %558 : i32 to index
    %c0_374 = arith.constant 0 : index
    %560 = vector.load %arg2[%559, %c0_374] : memref<40x384xf32, #tpu.memory_space<vmem>>, vector<1x384xf32>
    %c6_375 = arith.constant 6 : index
    %c7_376 = arith.constant 7 : index
    %c0_377 = arith.constant 0 : index
    %561 = vector.load %arg8[%c6_375, %c7_376, %c0_377] : memref<8x8x384xf32, #tpu.memory_space<vmem>>, vector<1x1x384xf32>
    %562 = vector.shape_cast %561 : vector<1x1x384xf32> to vector<1x384xf32>
    %563 = vector.shape_cast %560 : vector<1x384xf32> to vector<1x1x384xf32>
    tpu.vector_store %arg8[%c6_375, %c7_376, %c0_377], %563 {strides = array<i32>} : memref<8x8x384xf32, #tpu.memory_space<vmem>>, vector<1x1x384xf32>,
    %c7_i32_378 = arith.constant 7 : i32
    %564 = arith.addi %3, %c7_i32_378 : i32
    %c8_i32_379 = arith.constant 8 : i32
    %565 = arith.muli %564, %c8_i32_379 : i32
    %c0_i32_380 = arith.constant 0 : i32
    %566 = arith.addi %565, %c0_i32_380 : i32
    %567 = arith.index_cast %566 : i32 to index
    %568 = memref.load %arg1[%567] : memref<64xi32, #tpu.memory_space<smem>>
    %569 = arith.index_cast %568 : i32 to index
    %c0_381 = arith.constant 0 : index
    %570 = vector.load %arg2[%569, %c0_381] : memref<40x384xf32, #tpu.memory_space<vmem>>, vector<1x384xf32>
    %c7_382 = arith.constant 7 : index
    %c0_383 = arith.constant 0 : index
    %c0_384 = arith.constant 0 : index
    %571 = vector.load %arg8[%c7_382, %c0_383, %c0_384] : memref<8x8x384xf32, #tpu.memory_space<vmem>>, vector<1x1x384xf32>
    %572 = vector.shape_cast %571 : vector<1x1x384xf32> to vector<1x384xf32>
    %573 = vector.shape_cast %570 : vector<1x384xf32> to vector<1x1x384xf32>
    tpu.vector_store %arg8[%c7_382, %c0_383, %c0_384], %573 {strides = array<i32>} : memref<8x8x384xf32, #tpu.memory_space<vmem>>, vector<1x1x384xf32>,
    %c7_i32_385 = arith.constant 7 : i32
    %574 = arith.addi %3, %c7_i32_385 : i32
    %c8_i32_386 = arith.constant 8 : i32
    %575 = arith.muli %574, %c8_i32_386 : i32
    %c1_i32_387 = arith.constant 1 : i32
    %576 = arith.addi %575, %c1_i32_387 : i32
    %577 = arith.index_cast %576 : i32 to index
    %578 = memref.load %arg1[%577] : memref<64xi32, #tpu.memory_space<smem>>
    %579 = arith.index_cast %578 : i32 to index
    %c0_388 = arith.constant 0 : index
    %580 = vector.load %arg2[%579, %c0_388] : memref<40x384xf32, #tpu.memory_space<vmem>>, vector<1x384xf32>
    %c7_389 = arith.constant 7 : index
    %c1_390 = arith.constant 1 : index
    %c0_391 = arith.constant 0 : index
    %581 = vector.load %arg8[%c7_389, %c1_390, %c0_391] : memref<8x8x384xf32, #tpu.memory_space<vmem>>, vector<1x1x384xf32>
    %582 = vector.shape_cast %581 : vector<1x1x384xf32> to vector<1x384xf32>
    %583 = vector.shape_cast %580 : vector<1x384xf32> to vector<1x1x384xf32>
    tpu.vector_store %arg8[%c7_389, %c1_390, %c0_391], %583 {strides = array<i32>} : memref<8x8x384xf32, #tpu.memory_space<vmem>>, vector<1x1x384xf32>,
    %c7_i32_392 = arith.constant 7 : i32
    %584 = arith.addi %3, %c7_i32_392 : i32
    %c8_i32_393 = arith.constant 8 : i32
    %585 = arith.muli %584, %c8_i32_393 : i32
    %c2_i32_394 = arith.constant 2 : i32
    %586 = arith.addi %585, %c2_i32_394 : i32
    %587 = arith.index_cast %586 : i32 to index
    %588 = memref.load %arg1[%587] : memref<64xi32, #tpu.memory_space<smem>>
    %589 = arith.index_cast %588 : i32 to index
    %c0_395 = arith.constant 0 : index
    %590 = vector.load %arg2[%589, %c0_395] : memref<40x384xf32, #tpu.memory_space<vmem>>, vector<1x384xf32>
    %c7_396 = arith.constant 7 : index
    %c2_397 = arith.constant 2 : index
    %c0_398 = arith.constant 0 : index
    %591 = vector.load %arg8[%c7_396, %c2_397, %c0_398] : memref<8x8x384xf32, #tpu.memory_space<vmem>>, vector<1x1x384xf32>
    %592 = vector.shape_cast %591 : vector<1x1x384xf32> to vector<1x384xf32>
    %593 = vector.shape_cast %590 : vector<1x384xf32> to vector<1x1x384xf32>
    tpu.vector_store %arg8[%c7_396, %c2_397, %c0_398], %593 {strides = array<i32>} : memref<8x8x384xf32, #tpu.memory_space<vmem>>, vector<1x1x384xf32>,
    %c7_i32_399 = arith.constant 7 : i32
    %594 = arith.addi %3, %c7_i32_399 : i32
    %c8_i32_400 = arith.constant 8 : i32
    %595 = arith.muli %594, %c8_i32_400 : i32
    %c3_i32_401 = arith.constant 3 : i32
    %596 = arith.addi %595, %c3_i32_401 : i32
    %597 = arith.index_cast %596 : i32 to index
    %598 = memref.load %arg1[%597] : memref<64xi32, #tpu.memory_space<smem>>
    %599 = arith.index_cast %598 : i32 to index
    %c0_402 = arith.constant 0 : index
    %600 = vector.load %arg2[%599, %c0_402] : memref<40x384xf32, #tpu.memory_space<vmem>>, vector<1x384xf32>
    %c7_403 = arith.constant 7 : index
    %c3_404 = arith.constant 3 : index
    %c0_405 = arith.constant 0 : index
    %601 = vector.load %arg8[%c7_403, %c3_404, %c0_405] : memref<8x8x384xf32, #tpu.memory_space<vmem>>, vector<1x1x384xf32>
    %602 = vector.shape_cast %601 : vector<1x1x384xf32> to vector<1x384xf32>
    %603 = vector.shape_cast %600 : vector<1x384xf32> to vector<1x1x384xf32>
    tpu.vector_store %arg8[%c7_403, %c3_404, %c0_405], %603 {strides = array<i32>} : memref<8x8x384xf32, #tpu.memory_space<vmem>>, vector<1x1x384xf32>,
    %c7_i32_406 = arith.constant 7 : i32
    %604 = arith.addi %3, %c7_i32_406 : i32
    %c8_i32_407 = arith.constant 8 : i32
    %605 = arith.muli %604, %c8_i32_407 : i32
    %c4_i32_408 = arith.constant 4 : i32
    %606 = arith.addi %605, %c4_i32_408 : i32
    %607 = arith.index_cast %606 : i32 to index
    %608 = memref.load %arg1[%607] : memref<64xi32, #tpu.memory_space<smem>>
    %609 = arith.index_cast %608 : i32 to index
    %c0_409 = arith.constant 0 : index
    %610 = vector.load %arg2[%609, %c0_409] : memref<40x384xf32, #tpu.memory_space<vmem>>, vector<1x384xf32>
    %c7_410 = arith.constant 7 : index
    %c4_411 = arith.constant 4 : index
    %c0_412 = arith.constant 0 : index
    %611 = vector.load %arg8[%c7_410, %c4_411, %c0_412] : memref<8x8x384xf32, #tpu.memory_space<vmem>>, vector<1x1x384xf32>
    %612 = vector.shape_cast %611 : vector<1x1x384xf32> to vector<1x384xf32>
    %613 = vector.shape_cast %610 : vector<1x384xf32> to vector<1x1x384xf32>
    tpu.vector_store %arg8[%c7_410, %c4_411, %c0_412], %613 {strides = array<i32>} : memref<8x8x384xf32, #tpu.memory_space<vmem>>, vector<1x1x384xf32>,
    %c7_i32_413 = arith.constant 7 : i32
    %614 = arith.addi %3, %c7_i32_413 : i32
    %c8_i32_414 = arith.constant 8 : i32
    %615 = arith.muli %614, %c8_i32_414 : i32
    %c5_i32_415 = arith.constant 5 : i32
    %616 = arith.addi %615, %c5_i32_415 : i32
    %617 = arith.index_cast %616 : i32 to index
    %618 = memref.load %arg1[%617] : memref<64xi32, #tpu.memory_space<smem>>
    %619 = arith.index_cast %618 : i32 to index
    %c0_416 = arith.constant 0 : index
    %620 = vector.load %arg2[%619, %c0_416] : memref<40x384xf32, #tpu.memory_space<vmem>>, vector<1x384xf32>
    %c7_417 = arith.constant 7 : index
    %c5_418 = arith.constant 5 : index
    %c0_419 = arith.constant 0 : index
    %621 = vector.load %arg8[%c7_417, %c5_418, %c0_419] : memref<8x8x384xf32, #tpu.memory_space<vmem>>, vector<1x1x384xf32>
    %622 = vector.shape_cast %621 : vector<1x1x384xf32> to vector<1x384xf32>
    %623 = vector.shape_cast %620 : vector<1x384xf32> to vector<1x1x384xf32>
    tpu.vector_store %arg8[%c7_417, %c5_418, %c0_419], %623 {strides = array<i32>} : memref<8x8x384xf32, #tpu.memory_space<vmem>>, vector<1x1x384xf32>,
    %c7_i32_420 = arith.constant 7 : i32
    %624 = arith.addi %3, %c7_i32_420 : i32
    %c8_i32_421 = arith.constant 8 : i32
    %625 = arith.muli %624, %c8_i32_421 : i32
    %c6_i32_422 = arith.constant 6 : i32
    %626 = arith.addi %625, %c6_i32_422 : i32
    %627 = arith.index_cast %626 : i32 to index
    %628 = memref.load %arg1[%627] : memref<64xi32, #tpu.memory_space<smem>>
    %629 = arith.index_cast %628 : i32 to index
    %c0_423 = arith.constant 0 : index
    %630 = vector.load %arg2[%629, %c0_423] : memref<40x384xf32, #tpu.memory_space<vmem>>, vector<1x384xf32>
    %c7_424 = arith.constant 7 : index
    %c6_425 = arith.constant 6 : index
    %c0_426 = arith.constant 0 : index
    %631 = vector.load %arg8[%c7_424, %c6_425, %c0_426] : memref<8x8x384xf32, #tpu.memory_space<vmem>>, vector<1x1x384xf32>
    %632 = vector.shape_cast %631 : vector<1x1x384xf32> to vector<1x384xf32>
    %633 = vector.shape_cast %630 : vector<1x384xf32> to vector<1x1x384xf32>
    tpu.vector_store %arg8[%c7_424, %c6_425, %c0_426], %633 {strides = array<i32>} : memref<8x8x384xf32, #tpu.memory_space<vmem>>, vector<1x1x384xf32>,
    %c7_i32_427 = arith.constant 7 : i32
    %634 = arith.addi %3, %c7_i32_427 : i32
    %c8_i32_428 = arith.constant 8 : i32
    %635 = arith.muli %634, %c8_i32_428 : i32
    %c7_i32_429 = arith.constant 7 : i32
    %636 = arith.addi %635, %c7_i32_429 : i32
    %637 = arith.index_cast %636 : i32 to index
    %638 = memref.load %arg1[%637] : memref<64xi32, #tpu.memory_space<smem>>
    %639 = arith.index_cast %638 : i32 to index
    %c0_430 = arith.constant 0 : index
    %640 = vector.load %arg2[%639, %c0_430] : memref<40x384xf32, #tpu.memory_space<vmem>>, vector<1x384xf32>
    %c7_431 = arith.constant 7 : index
    %c7_432 = arith.constant 7 : index
    %c0_433 = arith.constant 0 : index
    %641 = vector.load %arg8[%c7_431, %c7_432, %c0_433] : memref<8x8x384xf32, #tpu.memory_space<vmem>>, vector<1x1x384xf32>
    %642 = vector.shape_cast %641 : vector<1x1x384xf32> to vector<1x384xf32>
    %643 = vector.shape_cast %640 : vector<1x384xf32> to vector<1x1x384xf32>
    tpu.vector_store %arg8[%c7_431, %c7_432, %c0_433], %643 {strides = array<i32>} : memref<8x8x384xf32, #tpu.memory_space<vmem>>, vector<1x1x384xf32>,
    %c0_434 = arith.constant 0 : index
    %c0_435 = arith.constant 0 : index
    %644 = vector.load %arg3[%c0_434, %c0_435] : memref<128x384xf32, #tpu.memory_space<vmem>>, vector<128x384xf32>
    %c0_436 = arith.constant 0 : index
    %c0_437 = arith.constant 0 : index
    %645 = vector.load %arg4[%c0_436, %c0_437] : memref<1x128xf32, #tpu.memory_space<vmem>>, vector<1x128xf32>
    %646 = vector.shape_cast %645 : vector<1x128xf32> to vector<1x128xf32>
    %647 = vector.broadcast %646 : vector<1x128xf32> to vector<8x128xf32>
    %c0_438 = arith.constant 0 : index
    %c0_439 = arith.constant 0 : index
    %648 = vector.load %arg7[%c0_438, %c0_439] : memref<8x128xf32, #tpu.memory_space<vmem>>, vector<8x128xf32>
    %c0_440 = arith.constant 0 : index
    %c0_441 = arith.constant 0 : index
    %c0_442 = arith.constant 0 : index
    %649 = vector.load %arg8[%c0_440, %c0_441, %c0_442] : memref<8x8x384xf32, #tpu.memory_space<vmem>>, vector<1x8x384xf32>
    %650 = vector.shape_cast %649 : vector<1x8x384xf32> to vector<8x384xf32>
    %cst = arith.constant dense<0.000000e+00> : vector<8x384xf32>
    %651 = tpu.matmul %648, %644, %cst {dimension_numbers = #tpu.dot_dimension_numbers<[1], [0], [0], [1], [0, 0, 1, 1], [], []>} : vector<8x128xf32>, vector<128x384xf32>, vector<8x384xf32> -> vector<8x384xf32>
    %652 = vector.extract_strided_slice %650 {offsets = [0, 0], sizes = [8, 256], strides = [1, 1]} : vector<8x384xf32> to vector<8x256xf32>
    %653 = vector.extract_strided_slice %651 {offsets = [0, 0], sizes = [8, 256], strides = [1, 1]} : vector<8x384xf32> to vector<8x256xf32>
    %654 = arith.addf %652, %653 : vector<8x256xf32>
    %655 = arith.negf %654 : vector<8x256xf32>
    %656 = math.exp %655 : vector<8x256xf32>
    %cst_443 = arith.constant 1.000000e+00 : f32
    %657 = vector.broadcast %cst_443 : f32 to vector<8x256xf32>
    %658 = arith.addf %657, %656 : vector<8x256xf32>
    %659 = arith.divf %657, %658 : vector<8x256xf32>
    %660 = vector.extract_strided_slice %659 {offsets = [0, 0], sizes = [8, 128], strides = [1, 1]} : vector<8x256xf32> to vector<8x128xf32>
    %661 = vector.extract_strided_slice %659 {offsets = [0, 128], sizes = [8, 128], strides = [1, 1]} : vector<8x256xf32> to vector<8x128xf32>
    %662 = vector.extract_strided_slice %650 {offsets = [0, 256], sizes = [8, 128], strides = [1, 1]} : vector<8x384xf32> to vector<8x128xf32>
    %663 = vector.extract_strided_slice %651 {offsets = [0, 256], sizes = [8, 128], strides = [1, 1]} : vector<8x384xf32> to vector<8x128xf32>
    %664 = arith.addf %663, %647 : vector<8x128xf32>
    %665 = arith.mulf %660, %664 : vector<8x128xf32>
    %666 = arith.addf %662, %665 : vector<8x128xf32>
    %667 = math.tanh %666 : vector<8x128xf32>
    %668 = arith.subf %648, %667 : vector<8x128xf32>
    %669 = arith.mulf %661, %668 : vector<8x128xf32>
    %670 = arith.addf %667, %669 : vector<8x128xf32>
    %c0_444 = arith.constant 0 : index
    %c0_445 = arith.constant 0 : index
    %c0_446 = arith.constant 0 : index
    %671 = vector.load %arg5[%c0_444, %c0_445, %c0_446] : memref<8x8x128xf32, #tpu.memory_space<vmem>>, vector<1x8x128xf32>
    %672 = vector.shape_cast %671 : vector<1x8x128xf32> to vector<8x128xf32>
    %673 = vector.shape_cast %670 : vector<8x128xf32> to vector<1x8x128xf32>
    tpu.vector_store %arg5[%c0_444, %c0_445, %c0_446], %673 {strides = array<i32>} : memref<8x8x128xf32, #tpu.memory_space<vmem>>, vector<1x8x128xf32>,
    %c1_447 = arith.constant 1 : index
    %c0_448 = arith.constant 0 : index
    %c0_449 = arith.constant 0 : index
    %674 = vector.load %arg8[%c1_447, %c0_448, %c0_449] : memref<8x8x384xf32, #tpu.memory_space<vmem>>, vector<1x8x384xf32>
    %675 = vector.shape_cast %674 : vector<1x8x384xf32> to vector<8x384xf32>
    %cst_450 = arith.constant dense<0.000000e+00> : vector<8x384xf32>
    %676 = tpu.matmul %670, %644, %cst_450 {dimension_numbers = #tpu.dot_dimension_numbers<[1], [0], [0], [1], [0, 0, 1, 1], [], []>} : vector<8x128xf32>, vector<128x384xf32>, vector<8x384xf32> -> vector<8x384xf32>
    %677 = vector.extract_strided_slice %675 {offsets = [0, 0], sizes = [8, 256], strides = [1, 1]} : vector<8x384xf32> to vector<8x256xf32>
    %678 = vector.extract_strided_slice %676 {offsets = [0, 0], sizes = [8, 256], strides = [1, 1]} : vector<8x384xf32> to vector<8x256xf32>
    %679 = arith.addf %677, %678 : vector<8x256xf32>
    %680 = arith.negf %679 : vector<8x256xf32>
    %681 = math.exp %680 : vector<8x256xf32>
    %cst_451 = arith.constant 1.000000e+00 : f32
    %682 = vector.broadcast %cst_451 : f32 to vector<8x256xf32>
    %683 = arith.addf %682, %681 : vector<8x256xf32>
    %684 = arith.divf %682, %683 : vector<8x256xf32>
    %685 = vector.extract_strided_slice %684 {offsets = [0, 0], sizes = [8, 128], strides = [1, 1]} : vector<8x256xf32> to vector<8x128xf32>
    %686 = vector.extract_strided_slice %684 {offsets = [0, 128], sizes = [8, 128], strides = [1, 1]} : vector<8x256xf32> to vector<8x128xf32>
    %687 = vector.extract_strided_slice %675 {offsets = [0, 256], sizes = [8, 128], strides = [1, 1]} : vector<8x384xf32> to vector<8x128xf32>
    %688 = vector.extract_strided_slice %676 {offsets = [0, 256], sizes = [8, 128], strides = [1, 1]} : vector<8x384xf32> to vector<8x128xf32>
    %689 = arith.addf %688, %647 : vector<8x128xf32>
    %690 = arith.mulf %685, %689 : vector<8x128xf32>
    %691 = arith.addf %687, %690 : vector<8x128xf32>
    %692 = math.tanh %691 : vector<8x128xf32>
    %693 = arith.subf %670, %692 : vector<8x128xf32>
    %694 = arith.mulf %686, %693 : vector<8x128xf32>
    %695 = arith.addf %692, %694 : vector<8x128xf32>
    %c1_452 = arith.constant 1 : index
    %c0_453 = arith.constant 0 : index
    %c0_454 = arith.constant 0 : index
    %696 = vector.load %arg5[%c1_452, %c0_453, %c0_454] : memref<8x8x128xf32, #tpu.memory_space<vmem>>, vector<1x8x128xf32>
    %697 = vector.shape_cast %696 : vector<1x8x128xf32> to vector<8x128xf32>
    %698 = vector.shape_cast %695 : vector<8x128xf32> to vector<1x8x128xf32>
    tpu.vector_store %arg5[%c1_452, %c0_453, %c0_454], %698 {strides = array<i32>} : memref<8x8x128xf32, #tpu.memory_space<vmem>>, vector<1x8x128xf32>,
    %c2_455 = arith.constant 2 : index
    %c0_456 = arith.constant 0 : index
    %c0_457 = arith.constant 0 : index
    %699 = vector.load %arg8[%c2_455, %c0_456, %c0_457] : memref<8x8x384xf32, #tpu.memory_space<vmem>>, vector<1x8x384xf32>
    %700 = vector.shape_cast %699 : vector<1x8x384xf32> to vector<8x384xf32>
    %cst_458 = arith.constant dense<0.000000e+00> : vector<8x384xf32>
    %701 = tpu.matmul %695, %644, %cst_458 {dimension_numbers = #tpu.dot_dimension_numbers<[1], [0], [0], [1], [0, 0, 1, 1], [], []>} : vector<8x128xf32>, vector<128x384xf32>, vector<8x384xf32> -> vector<8x384xf32>
    %702 = vector.extract_strided_slice %700 {offsets = [0, 0], sizes = [8, 256], strides = [1, 1]} : vector<8x384xf32> to vector<8x256xf32>
    %703 = vector.extract_strided_slice %701 {offsets = [0, 0], sizes = [8, 256], strides = [1, 1]} : vector<8x384xf32> to vector<8x256xf32>
    %704 = arith.addf %702, %703 : vector<8x256xf32>
    %705 = arith.negf %704 : vector<8x256xf32>
    %706 = math.exp %705 : vector<8x256xf32>
    %cst_459 = arith.constant 1.000000e+00 : f32
    %707 = vector.broadcast %cst_459 : f32 to vector<8x256xf32>
    %708 = arith.addf %707, %706 : vector<8x256xf32>
    %709 = arith.divf %707, %708 : vector<8x256xf32>
    %710 = vector.extract_strided_slice %709 {offsets = [0, 0], sizes = [8, 128], strides = [1, 1]} : vector<8x256xf32> to vector<8x128xf32>
    %711 = vector.extract_strided_slice %709 {offsets = [0, 128], sizes = [8, 128], strides = [1, 1]} : vector<8x256xf32> to vector<8x128xf32>
    %712 = vector.extract_strided_slice %700 {offsets = [0, 256], sizes = [8, 128], strides = [1, 1]} : vector<8x384xf32> to vector<8x128xf32>
    %713 = vector.extract_strided_slice %701 {offsets = [0, 256], sizes = [8, 128], strides = [1, 1]} : vector<8x384xf32> to vector<8x128xf32>
    %714 = arith.addf %713, %647 : vector<8x128xf32>
    %715 = arith.mulf %710, %714 : vector<8x128xf32>
    %716 = arith.addf %712, %715 : vector<8x128xf32>
    %717 = math.tanh %716 : vector<8x128xf32>
    %718 = arith.subf %695, %717 : vector<8x128xf32>
    %719 = arith.mulf %711, %718 : vector<8x128xf32>
    %720 = arith.addf %717, %719 : vector<8x128xf32>
    %c2_460 = arith.constant 2 : index
    %c0_461 = arith.constant 0 : index
    %c0_462 = arith.constant 0 : index
    %721 = vector.load %arg5[%c2_460, %c0_461, %c0_462] : memref<8x8x128xf32, #tpu.memory_space<vmem>>, vector<1x8x128xf32>
    %722 = vector.shape_cast %721 : vector<1x8x128xf32> to vector<8x128xf32>
    %723 = vector.shape_cast %720 : vector<8x128xf32> to vector<1x8x128xf32>
    tpu.vector_store %arg5[%c2_460, %c0_461, %c0_462], %723 {strides = array<i32>} : memref<8x8x128xf32, #tpu.memory_space<vmem>>, vector<1x8x128xf32>,
    %c3_463 = arith.constant 3 : index
    %c0_464 = arith.constant 0 : index
    %c0_465 = arith.constant 0 : index
    %724 = vector.load %arg8[%c3_463, %c0_464, %c0_465] : memref<8x8x384xf32, #tpu.memory_space<vmem>>, vector<1x8x384xf32>
    %725 = vector.shape_cast %724 : vector<1x8x384xf32> to vector<8x384xf32>
    %cst_466 = arith.constant dense<0.000000e+00> : vector<8x384xf32>
    %726 = tpu.matmul %720, %644, %cst_466 {dimension_numbers = #tpu.dot_dimension_numbers<[1], [0], [0], [1], [0, 0, 1, 1], [], []>} : vector<8x128xf32>, vector<128x384xf32>, vector<8x384xf32> -> vector<8x384xf32>
    %727 = vector.extract_strided_slice %725 {offsets = [0, 0], sizes = [8, 256], strides = [1, 1]} : vector<8x384xf32> to vector<8x256xf32>
    %728 = vector.extract_strided_slice %726 {offsets = [0, 0], sizes = [8, 256], strides = [1, 1]} : vector<8x384xf32> to vector<8x256xf32>
    %729 = arith.addf %727, %728 : vector<8x256xf32>
    %730 = arith.negf %729 : vector<8x256xf32>
    %731 = math.exp %730 : vector<8x256xf32>
    %cst_467 = arith.constant 1.000000e+00 : f32
    %732 = vector.broadcast %cst_467 : f32 to vector<8x256xf32>
    %733 = arith.addf %732, %731 : vector<8x256xf32>
    %734 = arith.divf %732, %733 : vector<8x256xf32>
    %735 = vector.extract_strided_slice %734 {offsets = [0, 0], sizes = [8, 128], strides = [1, 1]} : vector<8x256xf32> to vector<8x128xf32>
    %736 = vector.extract_strided_slice %734 {offsets = [0, 128], sizes = [8, 128], strides = [1, 1]} : vector<8x256xf32> to vector<8x128xf32>
    %737 = vector.extract_strided_slice %725 {offsets = [0, 256], sizes = [8, 128], strides = [1, 1]} : vector<8x384xf32> to vector<8x128xf32>
    %738 = vector.extract_strided_slice %726 {offsets = [0, 256], sizes = [8, 128], strides = [1, 1]} : vector<8x384xf32> to vector<8x128xf32>
    %739 = arith.addf %738, %647 : vector<8x128xf32>
    %740 = arith.mulf %735, %739 : vector<8x128xf32>
    %741 = arith.addf %737, %740 : vector<8x128xf32>
    %742 = math.tanh %741 : vector<8x128xf32>
    %743 = arith.subf %720, %742 : vector<8x128xf32>
    %744 = arith.mulf %736, %743 : vector<8x128xf32>
    %745 = arith.addf %742, %744 : vector<8x128xf32>
    %c3_468 = arith.constant 3 : index
    %c0_469 = arith.constant 0 : index
    %c0_470 = arith.constant 0 : index
    %746 = vector.load %arg5[%c3_468, %c0_469, %c0_470] : memref<8x8x128xf32, #tpu.memory_space<vmem>>, vector<1x8x128xf32>
    %747 = vector.shape_cast %746 : vector<1x8x128xf32> to vector<8x128xf32>
    %748 = vector.shape_cast %745 : vector<8x128xf32> to vector<1x8x128xf32>
    tpu.vector_store %arg5[%c3_468, %c0_469, %c0_470], %748 {strides = array<i32>} : memref<8x8x128xf32, #tpu.memory_space<vmem>>, vector<1x8x128xf32>,
    %c4_471 = arith.constant 4 : index
    %c0_472 = arith.constant 0 : index
    %c0_473 = arith.constant 0 : index
    %749 = vector.load %arg8[%c4_471, %c0_472, %c0_473] : memref<8x8x384xf32, #tpu.memory_space<vmem>>, vector<1x8x384xf32>
    %750 = vector.shape_cast %749 : vector<1x8x384xf32> to vector<8x384xf32>
    %cst_474 = arith.constant dense<0.000000e+00> : vector<8x384xf32>
    %751 = tpu.matmul %745, %644, %cst_474 {dimension_numbers = #tpu.dot_dimension_numbers<[1], [0], [0], [1], [0, 0, 1, 1], [], []>} : vector<8x128xf32>, vector<128x384xf32>, vector<8x384xf32> -> vector<8x384xf32>
    %752 = vector.extract_strided_slice %750 {offsets = [0, 0], sizes = [8, 256], strides = [1, 1]} : vector<8x384xf32> to vector<8x256xf32>
    %753 = vector.extract_strided_slice %751 {offsets = [0, 0], sizes = [8, 256], strides = [1, 1]} : vector<8x384xf32> to vector<8x256xf32>
    %754 = arith.addf %752, %753 : vector<8x256xf32>
    %755 = arith.negf %754 : vector<8x256xf32>
    %756 = math.exp %755 : vector<8x256xf32>
    %cst_475 = arith.constant 1.000000e+00 : f32
    %757 = vector.broadcast %cst_475 : f32 to vector<8x256xf32>
    %758 = arith.addf %757, %756 : vector<8x256xf32>
    %759 = arith.divf %757, %758 : vector<8x256xf32>
    %760 = vector.extract_strided_slice %759 {offsets = [0, 0], sizes = [8, 128], strides = [1, 1]} : vector<8x256xf32> to vector<8x128xf32>
    %761 = vector.extract_strided_slice %759 {offsets = [0, 128], sizes = [8, 128], strides = [1, 1]} : vector<8x256xf32> to vector<8x128xf32>
    %762 = vector.extract_strided_slice %750 {offsets = [0, 256], sizes = [8, 128], strides = [1, 1]} : vector<8x384xf32> to vector<8x128xf32>
    %763 = vector.extract_strided_slice %751 {offsets = [0, 256], sizes = [8, 128], strides = [1, 1]} : vector<8x384xf32> to vector<8x128xf32>
    %764 = arith.addf %763, %647 : vector<8x128xf32>
    %765 = arith.mulf %760, %764 : vector<8x128xf32>
    %766 = arith.addf %762, %765 : vector<8x128xf32>
    %767 = math.tanh %766 : vector<8x128xf32>
    %768 = arith.subf %745, %767 : vector<8x128xf32>
    %769 = arith.mulf %761, %768 : vector<8x128xf32>
    %770 = arith.addf %767, %769 : vector<8x128xf32>
    %c4_476 = arith.constant 4 : index
    %c0_477 = arith.constant 0 : index
    %c0_478 = arith.constant 0 : index
    %771 = vector.load %arg5[%c4_476, %c0_477, %c0_478] : memref<8x8x128xf32, #tpu.memory_space<vmem>>, vector<1x8x128xf32>
    %772 = vector.shape_cast %771 : vector<1x8x128xf32> to vector<8x128xf32>
    %773 = vector.shape_cast %770 : vector<8x128xf32> to vector<1x8x128xf32>
    tpu.vector_store %arg5[%c4_476, %c0_477, %c0_478], %773 {strides = array<i32>} : memref<8x8x128xf32, #tpu.memory_space<vmem>>, vector<1x8x128xf32>,
    %c5_479 = arith.constant 5 : index
    %c0_480 = arith.constant 0 : index
    %c0_481 = arith.constant 0 : index
    %774 = vector.load %arg8[%c5_479, %c0_480, %c0_481] : memref<8x8x384xf32, #tpu.memory_space<vmem>>, vector<1x8x384xf32>
    %775 = vector.shape_cast %774 : vector<1x8x384xf32> to vector<8x384xf32>
    %cst_482 = arith.constant dense<0.000000e+00> : vector<8x384xf32>
    %776 = tpu.matmul %770, %644, %cst_482 {dimension_numbers = #tpu.dot_dimension_numbers<[1], [0], [0], [1], [0, 0, 1, 1], [], []>} : vector<8x128xf32>, vector<128x384xf32>, vector<8x384xf32> -> vector<8x384xf32>
    %777 = vector.extract_strided_slice %775 {offsets = [0, 0], sizes = [8, 256], strides = [1, 1]} : vector<8x384xf32> to vector<8x256xf32>
    %778 = vector.extract_strided_slice %776 {offsets = [0, 0], sizes = [8, 256], strides = [1, 1]} : vector<8x384xf32> to vector<8x256xf32>
    %779 = arith.addf %777, %778 : vector<8x256xf32>
    %780 = arith.negf %779 : vector<8x256xf32>
    %781 = math.exp %780 : vector<8x256xf32>
    %cst_483 = arith.constant 1.000000e+00 : f32
    %782 = vector.broadcast %cst_483 : f32 to vector<8x256xf32>
    %783 = arith.addf %782, %781 : vector<8x256xf32>
    %784 = arith.divf %782, %783 : vector<8x256xf32>
    %785 = vector.extract_strided_slice %784 {offsets = [0, 0], sizes = [8, 128], strides = [1, 1]} : vector<8x256xf32> to vector<8x128xf32>
    %786 = vector.extract_strided_slice %784 {offsets = [0, 128], sizes = [8, 128], strides = [1, 1]} : vector<8x256xf32> to vector<8x128xf32>
    %787 = vector.extract_strided_slice %775 {offsets = [0, 256], sizes = [8, 128], strides = [1, 1]} : vector<8x384xf32> to vector<8x128xf32>
    %788 = vector.extract_strided_slice %776 {offsets = [0, 256], sizes = [8, 128], strides = [1, 1]} : vector<8x384xf32> to vector<8x128xf32>
    %789 = arith.addf %788, %647 : vector<8x128xf32>
    %790 = arith.mulf %785, %789 : vector<8x128xf32>
    %791 = arith.addf %787, %790 : vector<8x128xf32>
    %792 = math.tanh %791 : vector<8x128xf32>
    %793 = arith.subf %770, %792 : vector<8x128xf32>
    %794 = arith.mulf %786, %793 : vector<8x128xf32>
    %795 = arith.addf %792, %794 : vector<8x128xf32>
    %c5_484 = arith.constant 5 : index
    %c0_485 = arith.constant 0 : index
    %c0_486 = arith.constant 0 : index
    %796 = vector.load %arg5[%c5_484, %c0_485, %c0_486] : memref<8x8x128xf32, #tpu.memory_space<vmem>>, vector<1x8x128xf32>
    %797 = vector.shape_cast %796 : vector<1x8x128xf32> to vector<8x128xf32>
    %798 = vector.shape_cast %795 : vector<8x128xf32> to vector<1x8x128xf32>
    tpu.vector_store %arg5[%c5_484, %c0_485, %c0_486], %798 {strides = array<i32>} : memref<8x8x128xf32, #tpu.memory_space<vmem>>, vector<1x8x128xf32>,
    %c6_487 = arith.constant 6 : index
    %c0_488 = arith.constant 0 : index
    %c0_489 = arith.constant 0 : index
    %799 = vector.load %arg8[%c6_487, %c0_488, %c0_489] : memref<8x8x384xf32, #tpu.memory_space<vmem>>, vector<1x8x384xf32>
    %800 = vector.shape_cast %799 : vector<1x8x384xf32> to vector<8x384xf32>
    %cst_490 = arith.constant dense<0.000000e+00> : vector<8x384xf32>
    %801 = tpu.matmul %795, %644, %cst_490 {dimension_numbers = #tpu.dot_dimension_numbers<[1], [0], [0], [1], [0, 0, 1, 1], [], []>} : vector<8x128xf32>, vector<128x384xf32>, vector<8x384xf32> -> vector<8x384xf32>
    %802 = vector.extract_strided_slice %800 {offsets = [0, 0], sizes = [8, 256], strides = [1, 1]} : vector<8x384xf32> to vector<8x256xf32>
    %803 = vector.extract_strided_slice %801 {offsets = [0, 0], sizes = [8, 256], strides = [1, 1]} : vector<8x384xf32> to vector<8x256xf32>
    %804 = arith.addf %802, %803 : vector<8x256xf32>
    %805 = arith.negf %804 : vector<8x256xf32>
    %806 = math.exp %805 : vector<8x256xf32>
    %cst_491 = arith.constant 1.000000e+00 : f32
    %807 = vector.broadcast %cst_491 : f32 to vector<8x256xf32>
    %808 = arith.addf %807, %806 : vector<8x256xf32>
    %809 = arith.divf %807, %808 : vector<8x256xf32>
    %810 = vector.extract_strided_slice %809 {offsets = [0, 0], sizes = [8, 128], strides = [1, 1]} : vector<8x256xf32> to vector<8x128xf32>
    %811 = vector.extract_strided_slice %809 {offsets = [0, 128], sizes = [8, 128], strides = [1, 1]} : vector<8x256xf32> to vector<8x128xf32>
    %812 = vector.extract_strided_slice %800 {offsets = [0, 256], sizes = [8, 128], strides = [1, 1]} : vector<8x384xf32> to vector<8x128xf32>
    %813 = vector.extract_strided_slice %801 {offsets = [0, 256], sizes = [8, 128], strides = [1, 1]} : vector<8x384xf32> to vector<8x128xf32>
    %814 = arith.addf %813, %647 : vector<8x128xf32>
    %815 = arith.mulf %810, %814 : vector<8x128xf32>
    %816 = arith.addf %812, %815 : vector<8x128xf32>
    %817 = math.tanh %816 : vector<8x128xf32>
    %818 = arith.subf %795, %817 : vector<8x128xf32>
    %819 = arith.mulf %811, %818 : vector<8x128xf32>
    %820 = arith.addf %817, %819 : vector<8x128xf32>
    %c6_492 = arith.constant 6 : index
    %c0_493 = arith.constant 0 : index
    %c0_494 = arith.constant 0 : index
    %821 = vector.load %arg5[%c6_492, %c0_493, %c0_494] : memref<8x8x128xf32, #tpu.memory_space<vmem>>, vector<1x8x128xf32>
    %822 = vector.shape_cast %821 : vector<1x8x128xf32> to vector<8x128xf32>
    %823 = vector.shape_cast %820 : vector<8x128xf32> to vector<1x8x128xf32>
    tpu.vector_store %arg5[%c6_492, %c0_493, %c0_494], %823 {strides = array<i32>} : memref<8x8x128xf32, #tpu.memory_space<vmem>>, vector<1x8x128xf32>,
    %c7_495 = arith.constant 7 : index
    %c0_496 = arith.constant 0 : index
    %c0_497 = arith.constant 0 : index
    %824 = vector.load %arg8[%c7_495, %c0_496, %c0_497] : memref<8x8x384xf32, #tpu.memory_space<vmem>>, vector<1x8x384xf32>
    %825 = vector.shape_cast %824 : vector<1x8x384xf32> to vector<8x384xf32>
    %cst_498 = arith.constant dense<0.000000e+00> : vector<8x384xf32>
    %826 = tpu.matmul %820, %644, %cst_498 {dimension_numbers = #tpu.dot_dimension_numbers<[1], [0], [0], [1], [0, 0, 1, 1], [], []>} : vector<8x128xf32>, vector<128x384xf32>, vector<8x384xf32> -> vector<8x384xf32>
    %827 = vector.extract_strided_slice %825 {offsets = [0, 0], sizes = [8, 256], strides = [1, 1]} : vector<8x384xf32> to vector<8x256xf32>
    %828 = vector.extract_strided_slice %826 {offsets = [0, 0], sizes = [8, 256], strides = [1, 1]} : vector<8x384xf32> to vector<8x256xf32>
    %829 = arith.addf %827, %828 : vector<8x256xf32>
    %830 = arith.negf %829 : vector<8x256xf32>
    %831 = math.exp %830 : vector<8x256xf32>
    %cst_499 = arith.constant 1.000000e+00 : f32
    %832 = vector.broadcast %cst_499 : f32 to vector<8x256xf32>
    %833 = arith.addf %832, %831 : vector<8x256xf32>
    %834 = arith.divf %832, %833 : vector<8x256xf32>
    %835 = vector.extract_strided_slice %834 {offsets = [0, 0], sizes = [8, 128], strides = [1, 1]} : vector<8x256xf32> to vector<8x128xf32>
    %836 = vector.extract_strided_slice %834 {offsets = [0, 128], sizes = [8, 128], strides = [1, 1]} : vector<8x256xf32> to vector<8x128xf32>
    %837 = vector.extract_strided_slice %825 {offsets = [0, 256], sizes = [8, 128], strides = [1, 1]} : vector<8x384xf32> to vector<8x128xf32>
    %838 = vector.extract_strided_slice %826 {offsets = [0, 256], sizes = [8, 128], strides = [1, 1]} : vector<8x384xf32> to vector<8x128xf32>
    %839 = arith.addf %838, %647 : vector<8x128xf32>
    %840 = arith.mulf %835, %839 : vector<8x128xf32>
    %841 = arith.addf %837, %840 : vector<8x128xf32>
    %842 = math.tanh %841 : vector<8x128xf32>
    %843 = arith.subf %820, %842 : vector<8x128xf32>
    %844 = arith.mulf %836, %843 : vector<8x128xf32>
    %845 = arith.addf %842, %844 : vector<8x128xf32>
    %c7_500 = arith.constant 7 : index
    %c0_501 = arith.constant 0 : index
    %c0_502 = arith.constant 0 : index
    %846 = vector.load %arg5[%c7_500, %c0_501, %c0_502] : memref<8x8x128xf32, #tpu.memory_space<vmem>>, vector<1x8x128xf32>
    %847 = vector.shape_cast %846 : vector<1x8x128xf32> to vector<8x128xf32>
    %848 = vector.shape_cast %845 : vector<8x128xf32> to vector<1x8x128xf32>
    tpu.vector_store %arg5[%c7_500, %c0_501, %c0_502], %848 {strides = array<i32>} : memref<8x8x128xf32, #tpu.memory_space<vmem>>, vector<1x8x128xf32>,
    %c0_503 = arith.constant 0 : index
    %c0_504 = arith.constant 0 : index
    %849 = vector.load %arg7[%c0_503, %c0_504] : memref<8x128xf32, #tpu.memory_space<vmem>>, vector<8x128xf32>
    tpu.vector_store %arg7[%c0_503, %c0_504], %845 {strides = array<i32>} : memref<8x128xf32, #tpu.memory_space<vmem>>, vector<8x128xf32>,
    %c0_i32_505 = arith.constant 0 : i32
    %850 = arith.cmpi eq, %arg0, %c0_i32_505 : i32
    %851 = arith.extui %850 : i1 to i32
    %c0_i32_506 = arith.constant 0 : i32
    %852 = arith.cmpi ne, %851, %c0_i32_506 : i32
    scf.if %852 {
      %c0_507 = arith.constant 0 : index
      %c0_508 = arith.constant 0 : index
      %853 = vector.load %arg6[%c0_507, %c0_508] : memref<8x128xf32, #tpu.memory_space<vmem>>, vector<8x128xf32>
      tpu.vector_store %arg6[%c0_507, %c0_508], %845 {strides = array<i32>} : memref<8x128xf32, #tpu.memory_space<vmem>>, vector<8x128xf32>,
    } else {
    }
    return
  }
  func.func @transform_0(%arg0: i32, %arg1: memref<64xi32, #tpu.memory_space<smem>>) -> (i32, i32) {
    %c0_i32 = arith.constant 0 : i32
    %c0_i32_0 = arith.constant 0 : i32
    %c0_i32_1 = arith.constant 0 : i32
    return %c0_i32, %c0_i32_0 : i32, i32
  }
  func.func @transform_1(%arg0: i32, %arg1: memref<64xi32, #tpu.memory_space<smem>>) -> (i32, i32) {
    %c0_i32 = arith.constant 0 : i32
    %c0_i32_0 = arith.constant 0 : i32
    %c0_i32_1 = arith.constant 0 : i32
    return %c0_i32, %c0_i32_0 : i32, i32
  }
  func.func @transform_2(%arg0: i32, %arg1: memref<64xi32, #tpu.memory_space<smem>>) -> (i32, i32) {
    %c0_i32 = arith.constant 0 : i32
    %c0_i32_0 = arith.constant 0 : i32
    %c0_i32_1 = arith.constant 0 : i32
    return %c0_i32, %c0_i32_0 : i32, i32
  }
  func.func @transform_3(%arg0: i32, %arg1: memref<64xi32, #tpu.memory_space<smem>>) -> (i32, i32, i32) {
    %c0_i32 = arith.constant 0 : i32
    %c0_i32_0 = arith.constant 0 : i32
    %c0_i32_1 = arith.constant 0 : i32
    return %arg0, %c0_i32, %c0_i32_0 : i32, i32, i32
  }
  func.func @transform_4(%arg0: i32, %arg1: memref<64xi32, #tpu.memory_space<smem>>) -> (i32, i32) {
    %c0_i32 = arith.constant 0 : i32
    %c0_i32_0 = arith.constant 0 : i32
    %c0_i32_1 = arith.constant 0 : i32
    return %c0_i32, %c0_i32_0 : i32, i32
  }
}

</mosaic_0001>

<bundles_post_ra>
// kernel: tpu_custom_call.1
= control target key start
LH: loop header
LB: loop body
LE: loop exit
PB: predicated region body
PF: predicated region fallthrough
CT: control target
= control target key end

     0   :  { %s3430_s18 = smov [#allocation5]   ;;  %s4500_s0 = inlined_call_operand.hbm [shape: s32[64], index: 0, kind: input, shape index: {}]   ;;  %s4501_s1 = inlined_call_operand.hbm [shape: f32[40,384], index: 1, kind: input, shape index: {}]   ;;  %s4502_s2 = inlined_call_operand.hbm [shape: f32[128,384], index: 2, kind: input, shape index: {}]   ;;  %s4503_s3 = inlined_call_operand.vmem [shape: f32[1,128], index: 3, kind: input, shape index: {}]   ;;  %s4504_s4 = inlined_call_operand.hbm [shape: f32[8,8,128], index: 4, kind: output, shape index: {0}]   ;;  %s4505_s5 = inlined_call_operand.hbm [shape: f32[8,128], index: 5, kind: output, shape index: {1}]  }
   0x1   :  { %12 = dma.hbm_to_smem %s4500_s0, 16, %s3430_s18, [#allocation4] }
   0x2   :  { %3420 = dma.done.wait [#allocation4], 16 }
   0x3   :  { %3421 = vsyncadd [#allocation4], 4294967280 }
   0x4   :  { %14 = sfence }
   0x5   :  { %15 = vsyncpa [#allocation7], 0 }
   0x6   :  { %16 = vsyncpa [#allocation10], 0 }
   0x7   :  { %17 = vsyncpa [#allocation8], 0 }
   0x8   :  { %18 = vsyncpa [#allocation13], 0  ;;  %s3431_s21 = smov [#allocation6]  }
   0x9   :  { %s24_s22 = sshll.u32 %s3431_s21, 4  ;;  %s25_s22 = int_to_ptr.vmem [resolvable:$true] %s24_s22 }
   0xa   :  { %s3348_s23 = scalar_lea.vmem %s25_s22, 1920  ;;  %p3353_p1 = scmp.lt.s32.totalorder %s25_s22, %s25_s22 }
   0xb   :  { %p3349_p0 = scmp.ne.s32.totalorder %s25_s22, %s3348_s23  ;;  %p3354_p2 = scmp.lt.s32.totalorder %s3348_s23, %s3348_s23 }
   0xd   :  { %p3355_p3 = por %p3354_p2, %p3353_p1 }
   0xf   :  { %p3356_p4 = pnand %p3355_p3, %p3349_p0 }
  0x11   :  { %3359 = shalt.err (!%p3356_p4)
}
  0x12   :  { %s3432_s24 = smov 384   ;;  %s3433_s25 = smov 24  }
  0x13   :  { %30 = dma.hbm_to_vmem [thread:$0]  %s4501_s1, 1920, %s25_s22, [#allocation7], %s3432_s24, %s3432_s24, %s3433_s25  }
  0x14   :  { %s3434_s27 = smov [#allocation9]  }
  0x15   :  { %s36_s28 = sshll.u32 %s3434_s27, 4  ;;  %s37_s28 = int_to_ptr.vmem [resolvable:$true] %s36_s28 }
  0x16   :  { %s3368_s29 = scalar_lea.vmem %s37_s28, 6144  ;;  %p3373_p6 = scmp.lt.s32.totalorder %s37_s28, %s37_s28 }
  0x17   :  { %p3369_p5 = scmp.ne.s32.totalorder %s37_s28, %s3368_s29  ;;  %p3374_p7 = scmp.lt.s32.totalorder %s3368_s29, %s3368_s29 }
  0x19   :  { %p3375_p8 = por %p3374_p7, %p3373_p6 }
  0x1b   :  { %p3376_p9 = pnand %p3375_p8, %p3369_p5 }
  0x1d   :  { %3379 = shalt.err (!%p3376_p9)
}
  0x1e   :  { %42 = dma.hbm_to_vmem [thread:$0]  %s4502_s2, 6144, %s37_s28, [#allocation10], %s3432_s24, %s3432_s24, %s3433_s25  }
  0x1f   :  { %3422 = dma.done.wait [#allocation7], 1920  }
  0x20   :  { %3423 = vsyncadd [#allocation7], 4294965376 }
  0x21   :  { %3424 = dma.done.wait [#allocation10], 6144  }
  0x22   :  { %3425 = vsyncadd [#allocation10], 4294961152  ;;  %v4506_v0 = vmov 0.0   ;;  %s58_s1 = sld [smem:[#allocation5]]  ;;  %vm3436_vm0 = vmmov 0   ;;  %v3492_v1 = vld [vmem:[#allocation9 + $0x170] sm:$0xff]  ;;  %v68_v15 = vlaneseq }
  0x23   :  { %2912 = vmatprep.subr.mxu1 %v4506_v0  ;;  %1086 = vmatprep.mubr.f32.mxu0 %v4506_v0  ;;  %s2633_s7 = sld [smem:[#allocation5 + $0x1]]  ;;  %v3494_v2 = vld [vmem:[#allocation9 + $0x168] sm:$0xff]  ;;  %v3496_v3 = vld [vmem:[#allocation9 + $0x158] sm:$0xff]  ;;  %v3499_v4 = vld [vmem:[#allocation9 + $0x150] sm:$0xff]  ;;  %v4536_v24 = vmov 0 }
  0x24   :  { %2944 = vmatprep.mubr.msk.f32.mxu1 %vm3436_vm0, %v4506_v0  ;;  %s3484_s8 = sld [smem:[#allocation5 + $0x2]]  ;;  %1022 = vmatprep.subr.mxu0 %v3492_v1  ;;  %v3502_v5 = vld [vmem:[#allocation9 + $0x140] sm:$0xff]  ;;  %v3505_v6 = vld [vmem:[#allocation9 + $0x138] sm:$0xff]  ;;  %v3511_v7 = vld [vmem:[#allocation9 + $0x128] sm:$0xff]  ;;  %vm3574_vm1 = vcmp.lt.s32.totalorder %v68_v15, 384 }
  0x25   :  { %s3486_s9 = sld [smem:[#allocation5 + $0x3]]  ;;  %1023 = vmatpush1.msra.mxu0 %v3494_v2  ;;  %v3516_v8 = vld [vmem:[#allocation9 + $0x120] sm:$0xff]  ;;  %v3520_v9 = vld [vmem:[#allocation9 + $0x110] sm:$0xff]  ;;  %v3524_v10 = vld [vmem:[#allocation9 + $0x108] sm:$0xff]  ;;  %v4537_v24 = vsel %vm3574_vm1, 4294967295, %v4536_v24 }
  0x26   :  { %s3488_s2 = sld [smem:[#allocation5 + $0x4]]  ;;  %1024 = vmatprep.subr.mxu0 %v3496_v3  ;;  %v3528_v11 = vld [vmem:[#allocation9 + $0xf8] sm:$0xff]  ;;  %v3534_v12 = vld [vmem:[#allocation9 + $0xf0] sm:$0xff]  ;;  %v3539_v13 = vld [vmem:[#allocation9 + $0xe0] sm:$0xff]  ;;  %4538 = vst [vmem:[#allocation19_spill] sm:$0xff] %v4537_v24 }
  0x27   :  { %s3490_s10 = sld [smem:[#allocation5 + $0x5]]  ;;  %1025 = vmatpush1.msra.mxu0 %v3499_v4  ;;  %v3541_v14 = vld [vmem:[#allocation9 + $0x178] sm:$0xff]  ;;  %v3548_v17 = vld [vmem:[#allocation9 + $0x160] sm:$0xff]  ;;  %v3552_v18 = vld [vmem:[#allocation9 + $0xc8] sm:$0xff] }
  0x28   :  { %s59_s11 = sshra.s32 %s58_s1, 3  ;;  %s62_s12 = sand.u32 7, %s58_s1  ;;  %1026 = vmatprep.subr.mxu0 %v3502_v5  ;;  %v3545_v16 = vld [vmem:[#allocation9 + $0xd8] sm:$0xff]  ;;  %2913 = vmatpush3.msra.mxu1 %v3541_v14  ;;  %v3555_v19 = vld [vmem:[#allocation9 + $0x148] sm:$0xff]  ;;  %v3559_v20 = vld [vmem:[#allocation9 + $0xc0] sm:$0xff] }
  0x29   :  { %s2632_s13 = smul.u32 24, %s59_s11  ;;  %s76_s14 = sshra.s32 %s2633_s7, 3  ;;  %1027 = vmatpush1.msra.mxu0 %v3505_v6  ;;  %2914 = vmatprep.subr.mxu1 %v4506_v0  ;;  %v3567_v21 = vld [vmem:[#allocation9 + $0xb0] sm:$0xff]  ;;  %v3569_v22 = vld [vmem:[#allocation9 + $0xa8] sm:$0xff]  ;;  %v3581_v25 = vld [vmem:[#allocation9 + $0x98] sm:$0xff] }
  0x2a   :  { %s79_s15 = sand.u32 7, %s2633_s7  ;;  %s2634_s16 = smul.u32 24, %s76_s14  ;;  %1028 = vmatprep.subr.mxu0 %v3511_v7  ;;  %2915 = vmatpush3.msra.mxu1 %v3548_v17  ;;  %v3572_v23 = vld [vmem:[#allocation9 + $0x130] sm:$0xff]  ;;  %v3586_v27 = vld [vmem:[#allocation9 + $0x118] sm:$0xff]  ;;  %v3591_v28 = vld [vmem:[#allocation9 + $0x80] sm:$0xff] }
  0x2b   :  { %s3507_s17 = sadd.s32 %s2632_s13, %s62_s12  ;;  %s90_s18 = sshra.s32 %s3484_s8, 3  ;;  %1029 = vmatpush1.msra.mxu0 %v3516_v8  ;;  %2916 = vmatprep.subr.mxu1 %v4506_v0  ;;  %v3583_v26 = vld [vmem:[#allocation9 + $0x90] sm:$0xff]  ;;  %v3594_v29 = vld [vmem:[#allocation9 + $0x100] sm:$0xff]  ;;  %v3615_v36 = vld [vmem:[#allocation9 + $0x78] sm:$0xff] }
  0x2c   :  { %s3513_s19 = sadd.s32 %s2634_s16, %s79_s15  ;;  %s93_s20 = sand.u32 7, %s3484_s8  ;;  %1030 = vmatprep.subr.mxu0 %v3520_v9  ;;  %2917 = vmatpush3.msra.mxu1 %v3555_v19  ;;  %v3625_v37 = vld [vmem:[#allocation9 + $0x68] sm:$0xff]  ;;  %v3631_v39 = vld [vmem:[#allocation9 + $0x60] sm:$0xff]  ;;  %v3637_v40 = vld [vmem:[#allocation9 + $0x50] sm:$0xff] }
  0x2d   :  { %s2636_s21 = smul.u32 24, %s90_s18  ;;  %s104_s22 = sshra.s32 %s3486_s9, 3  ;;  %1031 = vmatpush1.msra.mxu0 %v3524_v10  ;;  %2918 = vmatprep.subr.mxu1 %v4506_v0  ;;  %v3628_v38 = vld [vmem:[#allocation9 + $0xe8] sm:$0xff]  ;;  %v3640_v41 = vld [vmem:[#allocation9 + $0xd0] sm:$0xff]  ;;  %v3647_v43 = vld [vmem:[#allocation9 + $0x38] sm:$0xff] }
  0x2e   :  { %s107_s23 = sand.u32 7, %s3486_s9  ;;  %s2638_s24 = smul.u32 24, %s104_s22  ;;  %1032 = vmatprep.subr.mxu0 %v3528_v11  ;;  %2919 = vmatpush3.msra.mxu1 %v3572_v23  ;;  %v3643_v42 = vld [vmem:[#allocation9 + $0x48] sm:$0xff]  ;;  %v3650_v44 = vld [vmem:[#allocation9 + $0xb8] sm:$0xff]  ;;  %v3653_v46 = vld [vmem:[#allocation9 + $0x30] sm:$0xff] }
  0x2f   :  { %s3530_s25 = sadd.s32 %s2636_s21, %s93_s20  ;;  %s118_s0 = sshra.s32 %s3488_s2, 3  ;;  %1033 = vmatpush1.msra.mxu0 %v3534_v12  ;;  %2920 = vmatprep.subr.mxu1 %v4506_v0  ;;  %v3659_v47 = vld [vmem:[#allocation9 + $0x20] sm:$0xff]  ;;  %v3665_v50 = vld [vmem:[#allocation9 + $0x18] sm:$0xff]  ;;  %v3671_v51 = vld [vmem:[#allocation9 + $0x8] sm:$0xff] }
  0x30   :  { %s3536_s26 = sadd.s32 %s2638_s24, %s107_s23  ;;  %s121_s27 = sand.u32 7, %s3488_s2  ;;  %1034 = vmatprep.subr.mxu0 %v3539_v13  ;;  %2921 = vmatpush3.msra.mxu1 %v3586_v27  ;;  %v3662_v48 = vld [vmem:[#allocation9 + $0xa0] sm:$0xff]  ;;  %4539 = vst [vmem:[#allocation20_spill] sm:$0xff] %v3665_v50  ;;  %4540 = vst [vmem:[#allocation21_spill] sm:$0xff] %v3671_v51  ;;  %v3674_v52 = vld [vmem:[#allocation9 + $0x88] sm:$0xff] }
  0x31   :  { %s2640_s28 = smul.u32 24, %s118_s0  ;;  %s132_s29 = sshra.s32 %s3490_s10, 3  ;;  %1035 = vmatpush1.msra.mxu0 %v3545_v16  ;;  %2922 = vmatprep.subr.mxu1 %v4506_v0  ;;  %v3677_v53 = vld [vmem:[#allocation9] sm:$0xff]  ;;  %v3682_v54 = vld [vmem:[#allocation9 + $0x70] sm:$0xff]  ;;  %v3688_v55 = vld [vmem:[#allocation9 + $0x58] sm:$0xff] }
  0x32   :  { %s135_s30 = sand.u32 7, %s3490_s10  ;;  %s2642_s6 = smul.u32 24, %s132_s29  ;;  %1036 = vmatprep.subr.mxu0 %v3552_v18  ;;  %2923 = vmatpush3.msra.mxu1 %v3594_v29  ;;  %4541 = vst [vmem:[#allocation22_spill] sm:$0xff] %v3677_v53  ;;  %v3693_v56 = vld [vmem:[#allocation9 + $0x40] sm:$0xff]  ;;  %v3699_v57 = vld [vmem:[#allocation9 + $0x28] sm:$0xff]  ;;  %v3705_v58 = vld [vmem:[#allocation9 + $0x10] sm:$0xff] }
  0x33   :  { %s3562_s1 = sadd.s32 %s2640_s28, %s121_s27  ;;  %s3564_s7 = sld [smem:[#allocation5 + $0x6]]  ;;  %1037 = vmatpush1.msra.mxu0 %v3559_v20  ;;  %2924 = vmatprep.subr.mxu1 %v4506_v0  ;;  %4542 = vst [vmem:[#allocation23_spill] sm:$0xff] %v3699_v57  ;;  %4543 = vst [vmem:[#allocation24_spill] sm:$0xff] %v3705_v58 }
  0x34   :  { %s3578_s8 = sadd.s32 %s2642_s6, %s135_s30  ;;  %s3588_s9 = sld [smem:[#allocation5 + $0x7]]  ;;  %1038 = vmatprep.subr.mxu0 %v3567_v21  ;;  %2925 = vmatpush3.msra.mxu1 %v3628_v38 }
  0x35   :  { %s66_s2 = scalar_lea.vmem [#allocation6], %s3507_s17  ;;  %s83_s10 = scalar_lea.vmem [#allocation6], %s3513_s19  ;;  %1039 = vmatpush1.msra.mxu0 %v3569_v22  ;;  %2926 = vmatprep.subr.mxu1 %v4506_v0 }
  0x36   :  { %v67_v30 = vld [vmem:[%s66_s2] ss:$8 sm:$0x7]  ;;  %s97_s11 = scalar_lea.vmem [#allocation6], %s3530_s25  ;;  %s111_s12 = scalar_lea.vmem [#allocation6], %s3536_s26  ;;  %1040 = vmatprep.subr.mxu0 %v3581_v25  ;;  %2927 = vmatpush3.msra.mxu1 %v3640_v41 }
  0x37   :  { %v84_v31 = vld [vmem:[%s83_s10] ss:$8 sm:$0x7]  ;;  %72 = vst.msk [vmem:[#allocation3] ss:$8 sm:$0x7] %vm3574_vm1, %v67_v30  ;;  %1041 = vmatpush1.msra.mxu0 %v3583_v26  ;;  %2928 = vmatprep.subr.mxu1 %v4506_v0 }
  0x38   :  { %86 = vst.msk [vmem:[#allocation3 + $0x1] ss:$8 sm:$0x7] %vm3574_vm1, %v84_v31  ;;  %v98_v32 = vld [vmem:[%s97_s11] ss:$8 sm:$0x7]  ;;  %1042 = vmatprep.subr.mxu0 %v3591_v28  ;;  %2929 = vmatpush3.msra.mxu1 %v3650_v44 }
  0x39   :  { %v112_v33 = vld [vmem:[%s111_s12] ss:$8 sm:$0x7]  ;;  %100 = vst.msk [vmem:[#allocation3 + $0x2] ss:$8 sm:$0x7] %vm3574_vm1, %v98_v32  ;;  %1043 = vmatpush1.msra.mxu0 %v3615_v36  ;;  %2930 = vmatprep.subr.mxu1 %v4506_v0 }
  0x3a   :  { %114 = vst.msk [vmem:[#allocation3 + $0x3] ss:$8 sm:$0x7] %vm3574_vm1, %v112_v33  ;;  %s125_s13 = scalar_lea.vmem [#allocation6], %s3562_s1  ;;  %s139_s14 = scalar_lea.vmem [#allocation6], %s3578_s8  ;;  %1044 = vmatprep.subr.mxu0 %v3625_v37  ;;  %2931 = vmatpush3.msra.mxu1 %v3662_v48 }
  0x3b   :  { %v126_v34 = vld [vmem:[%s125_s13] ss:$8 sm:$0x7]  ;;  %s146_s15 = sshra.s32 %s3564_s7, 3  ;;  %s149_s16 = sand.u32 7, %s3564_s7  ;;  %1045 = vmatpush1.msra.mxu0 %v3631_v39  ;;  %2932 = vmatprep.subr.mxu1 %v4506_v0 }
  0x3c   :  { %v140_v35 = vld [vmem:[%s139_s14] ss:$8 sm:$0x7]  ;;  %128 = vst.msk [vmem:[#allocation3 + $0x4] ss:$8 sm:$0x7] %vm3574_vm1, %v126_v34  ;;  %1046 = vmatprep.subr.mxu0 %v3637_v40  ;;  %2933 = vmatpush3.msra.mxu1 %v3674_v52 }
  0x3d   :  { %142 = vst.msk [vmem:[#allocation3 + $0x5] ss:$8 sm:$0x7] %vm3574_vm1, %v140_v35  ;;  %s2644_s17 = smul.u32 24, %s146_s15  ;;  %s160_s18 = sshra.s32 %s3588_s9, 3  ;;  %1047 = vmatpush1.msra.mxu0 %v3643_v42  ;;  %2934 = vmatprep.subr.mxu1 %v4506_v0 }
  0x3e   :  { %s163_s19 = sand.u32 7, %s3588_s9  ;;  %s2646_s21 = smul.u32 24, %s160_s18  ;;  %1048 = vmatprep.subr.mxu0 %v3647_v43  ;;  %2935 = vmatpush3.msra.mxu1 %v3682_v54 }
  0x3f   :  { %s152_s20 = sadd.s32 %s2644_s17, %s149_s16  ;;  %1049 = vmatpush1.msra.mxu0 %v3653_v46  ;;  %2936 = vmatprep.subr.mxu1 %v4506_v0  ;;  %s2647_s25 = sld [smem:[#allocation5 + $0x8]] }
  0x40   :  { %s153_s22 = scalar_lea.vmem [#allocation6], %s152_s20  ;;  %s166_s23 = sadd.s32 %s2646_s21, %s163_s19  ;;  %1050 = vmatprep.subr.mxu0 %v3659_v47  ;;  %2937 = vmatpush3.msra.mxu1 %v3688_v55 }
  0x41   :  { %v154_v45 = vld [vmem:[%s153_s22] ss:$8 sm:$0x7]  ;;  %s167_s24 = scalar_lea.vmem [#allocation6], %s166_s23  ;;  %1051 = vmatpush1.msra.mxu0 %v3665_v50  ;;  %2938 = vmatprep.subr.mxu1 %v4506_v0  ;;  %s2649_s0 = sld [smem:[#allocation5 + $0x9]] }
  0x42   :  { %156 = vst.msk [vmem:[#allocation3 + $0x6] ss:$8 sm:$0x7] %vm3574_vm1, %v154_v45  ;;  %v168_v49 = vld [vmem:[%s167_s24] ss:$8 sm:$0x7]  ;;  %1052 = vmatprep.subr.mxu0 %v3671_v51  ;;  %2939 = vmatpush3.msra.mxu1 %v3693_v56 }
  0x43   :  { %170 = vst.msk [vmem:[#allocation3 + $0x7] ss:$8 sm:$0x7] %vm3574_vm1, %v168_v49  ;;  %1053 = vmatpush1.msra.mxu0 %v3677_v53  ;;  %2940 = vmatprep.subr.mxu1 %v4506_v0  ;;  %s2651_s26 = sld [smem:[#allocation5 + $0xa]] }
  0x44   :  { %1087 = vmatmul.mubr.f32.vlgmr.msra.gmra.mxu0 %v4506_v0  ;;  %1188 = vmatprep.subr.mxu0 %v3492_v1  ;;  %s2653_s27 = sld [smem:[#allocation5 + $0xb]] }
  0x45   :  { %1189 = vmatpush1.msra.mxu0 %v3494_v2  ;;  %2941 = vmatpush3.msra.mxu1 %v3699_v57  ;;  %s3776_s28 = sld [smem:[#allocation5 + $0xc]]  ;;  %s175_s30 = sshra.s32 %s2647_s25, 3 }
  0x46   :  { %1190 = vmatprep.subr.mxu0 %v3496_v3  ;;  %2942 = vmatprep.subr.mxu1 %v4506_v0  ;;  %s3778_s29 = sld [smem:[#allocation5 + $0xd]]  ;;  %s178_s6 = sand.u32 7, %s2647_s25 }
  0x47   :  { %1191 = vmatpush1.msra.mxu0 %v3499_v4  ;;  %2943 = vmatpush3.msra.mxu1 %v3705_v58  ;;  %s2648_s1 = smul.u32 24, %s175_s30  ;;  %s189_s7 = sshra.s32 %s2649_s0, 3 }
  0x48   :  { %1192 = vmatprep.subr.mxu0 %v3502_v5  ;;  %2945 = vmatmul.mubr.f32.vlgmr.msra.gmra.mxu1 %v4506_v0  ;;  %s192_s8 = sand.u32 7, %s2649_s0  ;;  %s2650_s9 = smul.u32 24, %s189_s7 }
  0x49   :  { %1193 = vmatpush1.msra.mxu0 %v3505_v6  ;;  %2947 = vmatprep.subr.mxu1 %v4506_v0  ;;  %s181_s2 = sadd.s32 %s2648_s1, %s178_s6  ;;  %s203_s10 = sshra.s32 %s2651_s26, 3 }
  0x4a   :  { %1194 = vmatprep.subr.mxu0 %v3511_v7  ;;  %2948 = vmatpush3.msra.mxu1 %v3541_v14  ;;  %s195_s11 = sadd.s32 %s2650_s9, %s192_s8  ;;  %s182_s12 = scalar_lea.vmem [#allocation6], %s181_s2  ;;  %v1019_v32 = vld [vmem:[#allocation3] sm:$0xff]  ;;  %v1020_v45 = vld [vmem:[#allocation3 + $0x8] sm:$0xff] }
  0x4b   :  { %1195 = vmatpush1.msra.mxu0 %v3516_v8  ;;  %2949 = vmatprep.subr.mxu1 %v4506_v0  ;;  %v183_v59 = vld [vmem:[%s182_s12] ss:$8 sm:$0x7]  ;;  %s206_s13 = sand.u32 7, %s2651_s26  ;;  %s196_s14 = scalar_lea.vmem [#allocation6], %s195_s11 }
  0x4c   :  { %1196 = vmatprep.subr.mxu0 %v3520_v9  ;;  %2950 = vmatpush3.msra.mxu1 %v3548_v17  ;;  %185 = vst.msk [vmem:[#allocation3 + $0x18] ss:$8 sm:$0x7] %vm3574_vm1, %v183_v59  ;;  %v197_v60 = vld [vmem:[%s196_s14] ss:$8 sm:$0x7] }
  0x4d   :  { %1197 = vmatpush1.msra.mxu0 %v3524_v10  ;;  %2951 = vmatprep.subr.mxu1 %v4506_v0  ;;  %s2652_s15 = smul.u32 24, %s203_s10  ;;  %s217_s16 = sshra.s32 %s2653_s27, 3  ;;  %199 = vst.msk [vmem:[#allocation3 + $0x19] ss:$8 sm:$0x7] %vm3574_vm1, %v197_v60 }
  0x4e   :  { %1198 = vmatprep.subr.mxu0 %v3528_v11  ;;  %2952 = vmatpush3.msra.mxu1 %v3555_v19  ;;  %s220_s17 = sand.u32 7, %s2653_s27  ;;  %s2654_s18 = smul.u32 24, %s217_s16 }
  0x4f   :  { %1199 = vmatpush1.msra.mxu0 %v3534_v12  ;;  %2953 = vmatprep.subr.mxu1 %v4506_v0  ;;  %s209_s19 = sadd.s32 %s2652_s15, %s206_s13  ;;  %s231_s20 = sshra.s32 %s3776_s28, 3 }
  0x50   :  { %1200 = vmatprep.subr.mxu0 %v3539_v13  ;;  %2954 = vmatpush3.msra.mxu1 %v3572_v23  ;;  %s223_s21 = sadd.s32 %s2654_s18, %s220_s17  ;;  %s210_s22 = scalar_lea.vmem [#allocation6], %s209_s19 }
  0x51   :  { %1201 = vmatpush1.msra.mxu0 %v3545_v16  ;;  %2955 = vmatprep.subr.mxu1 %v4506_v0  ;;  %v211_v61 = vld [vmem:[%s210_s22] ss:$8 sm:$0x7]  ;;  %s234_s23 = sand.u32 7, %s3776_s28  ;;  %s224_s24 = scalar_lea.vmem [#allocation6], %s223_s21 }
  0x52   :  { %1202 = vmatprep.subr.mxu0 %v3552_v18  ;;  %2956 = vmatpush3.msra.mxu1 %v3586_v27  ;;  %213 = vst.msk [vmem:[#allocation3 + $0x1a] ss:$8 sm:$0x7] %vm3574_vm1, %v211_v61  ;;  %v225_v62 = vld [vmem:[%s224_s24] ss:$8 sm:$0x7] }
  0x53   :  { %1203 = vmatpush1.msra.mxu0 %v3559_v20  ;;  %2957 = vmatprep.subr.mxu1 %v4506_v0  ;;  %s2656_s25 = smul.u32 24, %s231_s20  ;;  %s245_s0 = sshra.s32 %s3778_s29, 3  ;;  %227 = vst.msk [vmem:[#allocation3 + $0x1b] ss:$8 sm:$0x7] %vm3574_vm1, %v225_v62 }
  0x54   :  { %1204 = vmatprep.subr.mxu0 %v3567_v21  ;;  %2958 = vmatpush3.msra.mxu1 %v3594_v29  ;;  %s248_s26 = sand.u32 7, %s3778_s29  ;;  %s2658_s30 = smul.u32 24, %s245_s0 }
  0x55   :  { %1205 = vmatpush1.msra.mxu0 %v3569_v22  ;;  %2959 = vmatprep.subr.mxu1 %v4506_v0  ;;  %s237_s27 = sadd.s32 %s2656_s25, %s234_s23  ;;  %s2659_s6 = sld [smem:[#allocation5 + $0xe]] }
  0x56   :  { %1206 = vmatprep.subr.mxu0 %v3581_v25  ;;  %2960 = vmatpush3.msra.mxu1 %v3628_v38  ;;  %s251_s1 = sadd.s32 %s2658_s30, %s248_s26  ;;  %s238_s7 = scalar_lea.vmem [#allocation6], %s237_s27 }
  0x57   :  { %1207 = vmatpush1.msra.mxu0 %v3583_v26  ;;  %2961 = vmatprep.subr.mxu1 %v4506_v0  ;;  %v239_v63 = vld [vmem:[%s238_s7] ss:$8 sm:$0x7]  ;;  %s2661_s8 = sld [smem:[#allocation5 + $0xf]]  ;;  %s252_s28 = scalar_lea.vmem [#allocation6], %s251_s1 }
  0x58   :  { %1208 = vmatprep.subr.mxu0 %v3591_v28  ;;  %2962 = vmatpush3.msra.mxu1 %v3640_v41  ;;  %241 = vst.msk [vmem:[#allocation3 + $0x1c] ss:$8 sm:$0x7] %vm3574_vm1, %v239_v63  ;;  %v253_v15 = vld [vmem:[%s252_s28] ss:$8 sm:$0x7] }
  0x59   :  { %1209 = vmatpush1.msra.mxu0 %v3615_v36  ;;  %2963 = vmatprep.subr.mxu1 %v4506_v0  ;;  %255 = vst.msk [vmem:[#allocation3 + $0x1d] ss:$8 sm:$0x7] %vm3574_vm1, %v253_v15  ;;  %s2663_s19 = sld [smem:[#allocation5 + $0x10]] }
  0x5a   :  { %1210 = vmatprep.subr.mxu0 %v3625_v37  ;;  %2964 = vmatpush3.msra.mxu1 %v3650_v44  ;;  %s2665_s20 = sld [smem:[#allocation5 + $0x11]] }
  0x5b   :  { %1211 = vmatpush1.msra.mxu0 %v3631_v39  ;;  %2965 = vmatprep.subr.mxu1 %v4506_v0  ;;  %s259_s9 = sshra.s32 %s2659_s6, 3  ;;  %s262_s2 = sand.u32 7, %s2659_s6 }
  0x5c   :  { %1212 = vmatprep.subr.mxu0 %v3637_v40  ;;  %2966 = vmatpush3.msra.mxu1 %v3662_v48  ;;  %s2660_s10 = smul.u32 24, %s259_s9  ;;  %s2667_s21 = sld [smem:[#allocation5 + $0x12]] }
  0x5d   :  { %1213 = vmatpush1.msra.mxu0 %v3643_v42  ;;  %2967 = vmatprep.subr.mxu1 %v4506_v0  ;;  %s273_s11 = sshra.s32 %s2661_s8, 3  ;;  %s276_s29 = sand.u32 7, %s2661_s8 }
  0x5e   :  { %1214 = vmatprep.subr.mxu0 %v3647_v43  ;;  %2968 = vmatpush3.msra.mxu1 %v3674_v52  ;;  %s265_s12 = sadd.s32 %s2660_s10, %s262_s2  ;;  %s2662_s13 = smul.u32 24, %s273_s11 }
  0x5f   :  { %1215 = vmatpush1.msra.mxu0 %v3653_v46  ;;  %2969 = vmatprep.subr.mxu1 %v4506_v0  ;;  %s266_s14 = scalar_lea.vmem [#allocation6], %s265_s12  ;;  %s2669_s22 = sld [smem:[#allocation5 + $0x13]] }
  0x60   :  { %1216 = vmatprep.subr.mxu0 %v3659_v47  ;;  %2970 = vmatpush3.msra.mxu1 %v3682_v54  ;;  %v267_v30 = vld [vmem:[%s266_s14] ss:$8 sm:$0x7]  ;;  %s279_s15 = sadd.s32 %s2662_s13, %s276_s29  ;;  %s3878_s23 = sld [smem:[#allocation5 + $0x14]] }
  0x61   :  { %1217 = vmatpush1.msra.mxu0 %v3665_v50  ;;  %2971 = vmatprep.subr.mxu1 %v4506_v0  ;;  %269 = vst.msk [vmem:[#allocation3 + $0x1e] ss:$8 sm:$0x7] %vm3574_vm1, %v267_v30  ;;  %s280_s16 = scalar_lea.vmem [#allocation6], %s279_s15  ;;  %v3803_v30 = vld [vmem:[%s4503_s3] ss:$0 sm:$0xff] }
  0x62   :  { %1218 = vmatprep.subr.mxu0 %v3671_v51  ;;  %2972 = vmatpush3.msra.mxu1 %v3688_v55  ;;  %v281_v31 = vld [vmem:[%s280_s16] ss:$8 sm:$0x7]  ;;  %s3880_s24 = sld [smem:[#allocation5 + $0x15]]  ;;  %s288_s25 = sshra.s32 %s2663_s19, 3 }
  0x63   :  { %1219 = vmatpush1.msra.mxu0 %v3677_v53  ;;  %1252 = vmatprep.mubr.f32.mxu0 %v4506_v0  ;;  %283 = vst.msk [vmem:[#allocation3 + $0x1f] ss:$8 sm:$0x7] %vm3574_vm1, %v281_v31  ;;  %s291_s0 = sand.u32 7, %s2663_s19  ;;  %s2664_s26 = smul.u32 24, %s288_s25 }
  0x64   :  { %2973 = vmatprep.subr.mxu1 %v4506_v0  ;;  %2979 = vmatprep.mubr.msk.f32.mxu1 %vm3436_vm0, %v4506_v0  ;;  %s302_s30 = sshra.s32 %s2665_s20, 3  ;;  %s305_s27 = sand.u32 7, %s2665_s20 }
  0x65   :  { %2974 = vmatpush3.msra.mxu1 %v3693_v56  ;;  %1355 = vmatprep.subr.mxu0 %v3492_v1  ;;  %s2666_s6 = smul.u32 24, %s302_s30  ;;  %s294_s1 = sadd.s32 %s2664_s26, %s291_s0 }
  0x66   :  { %2975 = vmatprep.subr.mxu1 %v4506_v0  ;;  %s316_s7 = sshra.s32 %s2667_s21, 3  ;;  %s295_s28 = scalar_lea.vmem [#allocation6], %s294_s1 }
  0x67   :  { %2976 = vmatpush3.msra.mxu1 %v3699_v57  ;;  %s308_s8 = sadd.s32 %s2666_s6, %s305_s27  ;;  %s319_s9 = sand.u32 7, %s2667_s21 }
  0x68   :  { %2977 = vmatprep.subr.mxu1 %v4506_v0  ;;  %s309_s2 = scalar_lea.vmem [#allocation6], %s308_s8  ;;  %s2668_s10 = smul.u32 24, %s316_s7 }
  0x69   :  { %2978 = vmatpush3.msra.mxu1 %v3705_v58  ;;  %s330_s11 = sshra.s32 %s2669_s22, 3  ;;  %s333_s29 = sand.u32 7, %s2669_s22 }
  0x6a   :  { %2982 = vmatprep.subr.mxu1 %v4506_v0  ;;  %s2670_s12 = smul.u32 24, %s330_s11  ;;  %s322_s13 = sadd.s32 %s2668_s10, %s319_s9 }
  0x6b   :  { %s344_s14 = sshra.s32 %s3878_s23, 3  ;;  %s323_s16 = scalar_lea.vmem [#allocation6], %s322_s13 }
  0x6c   :  { %s336_s15 = sadd.s32 %s2670_s12, %s333_s29  ;;  %s347_s17 = sand.u32 7, %s3878_s23 }
  0x6d   :  { %s337_s18 = scalar_lea.vmem [#allocation6], %s336_s15  ;;  %s2672_s19 = smul.u32 24, %s344_s14 }
  0x6e   :  { %s358_s20 = sshra.s32 %s3880_s24, 3  ;;  %s361_s21 = sand.u32 7, %s3880_s24 }
  0x6f   :  { %s2674_s25 = smul.u32 24, %s358_s20  ;;  %s350_s22 = sadd.s32 %s2672_s19, %s347_s17 }
  0x70   :  { %s2675_s0 = sld [smem:[#allocation5 + $0x16]]  ;;  %s351_s30 = scalar_lea.vmem [#allocation6], %s350_s22 }
  0x71   :  { %s364_s26 = sadd.s32 %s2674_s25, %s361_s21  ;;  %s2677_s27 = sld [smem:[#allocation5 + $0x17]] }
  0x72   :  { %s365_s23 = scalar_lea.vmem [#allocation6], %s364_s26  ;;  %s2679_s29 = sld [smem:[#allocation5 + $0x18]] }
  0x73   :  { %s2681_s12 = sld [smem:[#allocation5 + $0x19]] }
  0x74   :  { %s2683_s13 = sld [smem:[#allocation5 + $0x1a]] }
  0x75   :  { %s2685_s14 = sld [smem:[#allocation5 + $0x1b]] }
  0x76   :  { %s372_s6 = sshra.s32 %s2675_s0, 3  ;;  %s375_s1 = sand.u32 7, %s2675_s0 }
  0x77   :  { %s2676_s7 = smul.u32 24, %s372_s6  ;;  %s386_s8 = sshra.s32 %s2677_s27, 3 }
  0x78   :  { %s389_s24 = sand.u32 7, %s2677_s27  ;;  %s2678_s9 = smul.u32 24, %s386_s8 }
  0x79   :  { %s3978_s15 = sld [smem:[#allocation5 + $0x1c]]  ;;  %s401_s17 = sshra.s32 %s2679_s29, 3 }
  0x7a   :  { %s392_s10 = sadd.s32 %s2678_s9, %s389_s24  ;;  %s2680_s19 = smul.u32 24, %s401_s17 }
  0x7b   :  { %s393_s11 = scalar_lea.vmem [#allocation6], %s392_s10  ;;  %s415_s20 = sshra.s32 %s2681_s12, 3 }
  0x7c   :  { %s418_s21 = sand.u32 7, %s2681_s12  ;;  %s2682_s25 = smul.u32 24, %s415_s20 }
  0x7d   :  { %s429_s0 = sshra.s32 %s2683_s13, 3  ;;  %s432_s27 = sand.u32 7, %s2683_s13 }
  0x7e   :  { %s421_s26 = sadd.s32 %s2682_s25, %s418_s21  ;;  %s2684_s6 = smul.u32 24, %s429_s0 }
  0x7f   :  { %s460_s10 = sand.u32 7, %s3978_s15  ;;  %s2693_s21 = sld [smem:[#allocation5 + $0x1f]] }
  0x80   :  { %s435_s24 = sadd.s32 %s2684_s6, %s432_s27 }
 0x104   :  { %v1088_v33 = vpop.f32.mrf.mxu0 }
 0x105   :  { %v1163_v34 = vadd.f32 %v1088_v33, %v1019_v32 }
 0x106   :  { %v1090_v49 = vpop.f32.mrf.mxu0 }
 0x107   :  { %v2760_v35 = vmul.f32 -1.442695, %v1163_v34  ;;  %v1164_v61 = vadd.f32 %v1090_v49, %v1020_v45  ;;  %v1021_v34 = vld [vmem:[#allocation3 + $0x10] sm:$0xff] }
 0x108   :  { %v1159_v59 = vpop.f32.mrf.mxu1 }
 0x109   :  { %3203 = vpow2.f32 %v2760_v35  ;;  %v2761_v62 = vmul.f32 -1.442695, %v1164_v61  ;;  %v1177_v31 = vadd.f32 %v3803_v30, %v1159_v59  ;;  %v310_v59 = vld [vmem:[%s309_s2] ss:$8 sm:$0x7] }
 0x10a   :  { %v2946_v60 = vpop.f32.mrf.mxu1  ;;  %312 = vst.msk [vmem:[#allocation3 + $0x31] ss:$8 sm:$0x7] %vm3574_vm1, %v310_v59  ;;  %v1186_v59 = vld [vmem:[#allocation3 + $0x20] sm:$0xff] }
 0x10b   :  { %3205 = vpow2.f32 %v2761_v62 }
 0x116   :  { %v3204_v63 = vpop.eup %3203 }
 0x117   :  { %v1171_v15 = vadd.f32 1.0, %v3204_v63  ;;  %v324_v63 = vld [vmem:[%s323_s16] ss:$8 sm:$0x7]  ;;  %s3980_s16 = sld [smem:[#allocation5 + $0x1d]] }
 0x118   :  { %v3206_v32 = vpop.eup %3205  ;;  %326 = vst.msk [vmem:[#allocation3 + $0x32] ss:$8 sm:$0x7] %vm3574_vm1, %v324_v63 }
 0x119   :  { %3207 = vrcp.f32 %v1171_v15  ;;  %v1172_v0 = vadd.f32 1.0, %v3206_v32  ;;  %v338_v15 = vld [vmem:[%s337_s18] ss:$8 sm:$0x7]  ;;  %s404_s18 = sand.u32 7, %s2679_s29 }
 0x11a   :  { %340 = vst.msk [vmem:[#allocation3 + $0x33] ss:$8 sm:$0x7] %vm3574_vm1, %v338_v15  ;;  %v366_v32 = vld [vmem:[%s365_s23] ss:$8 sm:$0x7]  ;;  %s407_s22 = sadd.s32 %s2680_s19, %s404_s18 }
 0x11b   :  { %368 = vst.msk [vmem:[#allocation3 + $0x35] ss:$8 sm:$0x7] %vm3574_vm1, %v366_v32  ;;  %s422_s23 = scalar_lea.vmem [#allocation6], %s421_s26  ;;  %s2691_s18 = sld [smem:[#allocation5 + $0x1e]] }
 0x11c   :  { %s499_s26 = sshra.s32 %s2693_s21, 3 }
 0x11d   :  { %s471_s12 = sshra.s32 %s3980_s16, 3  ;;  %s474_s13 = sand.u32 7, %s3980_s16 }
 0x11e   :  { %s2690_s17 = smul.u32 24, %s471_s12  ;;  %s502_s16 = sand.u32 7, %s2693_s21 }
 0x11f   :  { %s2694_s27 = smul.u32 24, %s499_s26 }
 0x120   :  { %s477_s19 = sadd.s32 %s2690_s17, %s474_s13 }
 0x121   :  { %s485_s25 = sshra.s32 %s2691_s18, 3  ;;  %s505_s6 = sadd.s32 %s2694_s27, %s502_s16 }
 0x122   :  { %s2692_s0 = smul.u32 24, %s485_s25 }
 0x126   :  { %v3208_v33 = vpop.eup %3207 }
 0x127   :  { %v1178_v35 = vmul.f32 %v3208_v33, %v1177_v31  ;;  %v352_v31 = vld [vmem:[%s351_s30] ss:$8 sm:$0x7]  ;;  %s408_s30 = scalar_lea.vmem [#allocation6], %s407_s22  ;;  %s488_s22 = sand.u32 7, %s2691_s18 }
 0x128   :  { %354 = vst.msk [vmem:[#allocation3 + $0x34] ss:$8 sm:$0x7] %vm3574_vm1, %v352_v31 }
 0x129   :  { %v1179_v24 = vadd.f32 %v1178_v35, %v1021_v34  ;;  %v394_v34 = vld [vmem:[%s393_s11] ss:$8 sm:$0x7]  ;;  %v1185_v35 = vld [vmem:[#allocation3 + $0x18] sm:$0xff] }
 0x12a   :  { %396 = vst.msk [vmem:[#allocation3 + $0x37] ss:$8 sm:$0x7] %vm3574_vm1, %v394_v34  ;;  %v1187_v34 = vld [vmem:[#allocation3 + $0x28] sm:$0xff] }
 0x12b   :  { %3209 = vtanh.f32 %v1179_v24  ;;  %v4544_v24 = vmov 0.0  }
 0x12c   :  { %3211 = vrcp.f32 %v1172_v0  ;;  %v296_v0 = vld [vmem:[%s295_s28] ss:$8 sm:$0x7]  ;;  %s378_s28 = sadd.s32 %s2676_s7, %s375_s1  ;;  %s443_s1 = sshra.s32 %s2685_s14, 3 }
 0x12d   :  { %298 = vst.msk [vmem:[#allocation3 + $0x30] ss:$8 sm:$0x7] %vm3574_vm1, %v296_v0  ;;  %s379_s2 = scalar_lea.vmem [#allocation6], %s378_s28  ;;  %s446_s7 = sand.u32 7, %s2685_s14 }
 0x12e   :  { %v380_v33 = vld [vmem:[%s379_s2] ss:$8 sm:$0x7]  ;;  %s2686_s8 = smul.u32 24, %s443_s1  ;;  %s457_s28 = sshra.s32 %s3978_s15, 3 }
 0x12f   :  { %382 = vst.msk [vmem:[#allocation3 + $0x36] ss:$8 sm:$0x7] %vm3574_vm1, %v380_v33  ;;  %s436_s2 = scalar_lea.vmem [#allocation6], %s435_s24  ;;  %s2688_s29 = smul.u32 24, %s457_s28 }
 0x130   :  { %s449_s9 = sadd.s32 %s2686_s8, %s446_s7  ;;  %s478_s15 = scalar_lea.vmem [#allocation6], %s477_s19 }
 0x131   :  { %s450_s11 = scalar_lea.vmem [#allocation6], %s449_s9  ;;  %s463_s14 = sadd.s32 %s2688_s29, %s460_s10 }
 0x132   :  { %s464_s20 = scalar_lea.vmem [#allocation6], %s463_s14  ;;  %s506_s1 = scalar_lea.vmem [#allocation6], %s505_s6 }
 0x133   :  { %s2695_s7 = sld [smem:[#allocation5 + $0x20]] }
 0x134   :  { %s2697_s8 = sld [smem:[#allocation5 + $0x21]] }
 0x135   :  { %s2699_s24 = sld [smem:[#allocation5 + $0x22]] }
 0x136   :  { %s2701_s28 = sld [smem:[#allocation5 + $0x23]] }
 0x137   :  { %s4170_s9 = sld [smem:[#allocation5 + $0x24]] }
 0x138   :  { %v3210_v45 = vpop.eup %3209 }
 0x139   :  { %v1181_v49 = vsub.f32 0.0, %v3210_v45  ;;  %v3212_v60 = vpop.eup %3211  ;;  %s514_s10 = sshra.s32 %s2695_s7, 3 }
 0x13a   :  { %s2696_s29 = smul.u32 24, %s514_s10  ;;  %s528_s12 = sshra.s32 %s2697_s8, 3 }
 0x13b   :  { %v1182_v61 = vmul.f32 %v3212_v60, %v1181_v49  ;;  %s531_s13 = sand.u32 7, %s2697_s8  ;;  %s2698_s17 = smul.u32 24, %s528_s12 }
 0x13c   :  { %s542_s18 = sshra.s32 %s2699_s24, 3  ;;  %s545_s21 = sand.u32 7, %s2699_s24 }
 0x13d   :  { %v3806_v62 = vadd.f32 %v3210_v45, %v1182_v61  ;;  %s534_s19 = sadd.s32 %s2698_s17, %s531_s13  ;;  %s2700_s25 = smul.u32 24, %s542_s18 }
 0x13e   :  { %s573_s6 = sand.u32 7, %s4170_s9  ;;  %s2709_s13 = sld [smem:[#allocation5 + $0x27]] }
 0x13f   :  { %1184 = vst [vmem:[#allocation11] sm:$0xff] %v3806_v62  ;;  %1253 = vmatmul.mubr.f32.vlgmr.msra.gmra.mxu0 %v3806_v62  ;;  %2980 = vmatmul.mubr.f32.vlgmr.msra.gmra.mxu1 %v3806_v62  ;;  %s548_s16 = sadd.s32 %s2700_s25, %s545_s21 }
 0x140   :  { %1356 = vmatpush1.msra.mxu0 %v3494_v2  ;;  %2983 = vmatpush3.msra.mxu1 %v3541_v14 }
 0x141   :  { %1357 = vmatprep.subr.mxu0 %v3496_v3  ;;  %2984 = vmatprep.subr.mxu1 %v4544_v24 }
 0x142   :  { %1358 = vmatpush1.msra.mxu0 %v3499_v4  ;;  %2985 = vmatpush3.msra.mxu1 %v3548_v17 }
 0x143   :  { %1359 = vmatprep.subr.mxu0 %v3502_v5  ;;  %2986 = vmatprep.subr.mxu1 %v4544_v24 }
 0x144   :  { %1360 = vmatpush1.msra.mxu0 %v3505_v6  ;;  %2987 = vmatpush3.msra.mxu1 %v3555_v19 }
 0x145   :  { %1361 = vmatprep.subr.mxu0 %v3511_v7  ;;  %2988 = vmatprep.subr.mxu1 %v4544_v24 }
 0x146   :  { %1362 = vmatpush1.msra.mxu0 %v3516_v8  ;;  %2989 = vmatpush3.msra.mxu1 %v3572_v23 }
 0x147   :  { %1363 = vmatprep.subr.mxu0 %v3520_v9  ;;  %2990 = vmatprep.subr.mxu1 %v4544_v24 }
 0x148   :  { %1364 = vmatpush1.msra.mxu0 %v3524_v10  ;;  %2991 = vmatpush3.msra.mxu1 %v3586_v27 }
 0x149   :  { %1365 = vmatprep.subr.mxu0 %v3528_v11  ;;  %2992 = vmatprep.subr.mxu1 %v4544_v24 }
 0x14a   :  { %1366 = vmatpush1.msra.mxu0 %v3534_v12  ;;  %2993 = vmatpush3.msra.mxu1 %v3594_v29 }
 0x14b   :  { %1367 = vmatprep.subr.mxu0 %v3539_v13  ;;  %2994 = vmatprep.subr.mxu1 %v4544_v24 }
 0x14c   :  { %1368 = vmatpush1.msra.mxu0 %v3545_v16  ;;  %2995 = vmatpush3.msra.mxu1 %v3628_v38 }
 0x14d   :  { %1369 = vmatprep.subr.mxu0 %v3552_v18  ;;  %2996 = vmatprep.subr.mxu1 %v4544_v24 }
 0x14e   :  { %1370 = vmatpush1.msra.mxu0 %v3559_v20  ;;  %2997 = vmatpush3.msra.mxu1 %v3640_v41 }
 0x14f   :  { %1371 = vmatprep.subr.mxu0 %v3567_v21  ;;  %2998 = vmatprep.subr.mxu1 %v4544_v24 }
 0x150   :  { %1372 = vmatpush1.msra.mxu0 %v3569_v22  ;;  %2999 = vmatpush3.msra.mxu1 %v3650_v44 }
 0x151   :  { %1373 = vmatprep.subr.mxu0 %v3581_v25  ;;  %3000 = vmatprep.subr.mxu1 %v4544_v24 }
 0x152   :  { %1374 = vmatpush1.msra.mxu0 %v3583_v26  ;;  %3001 = vmatpush3.msra.mxu1 %v3662_v48 }
 0x153   :  { %1375 = vmatprep.subr.mxu0 %v3591_v28  ;;  %3002 = vmatprep.subr.mxu1 %v4544_v24 }
 0x154   :  { %1376 = vmatpush1.msra.mxu0 %v3615_v36  ;;  %3003 = vmatpush3.msra.mxu1 %v3674_v52 }
 0x155   :  { %1377 = vmatprep.subr.mxu0 %v3625_v37  ;;  %3004 = vmatprep.subr.mxu1 %v4544_v24 }
 0x156   :  { %1378 = vmatpush1.msra.mxu0 %v3631_v39  ;;  %3005 = vmatpush3.msra.mxu1 %v3682_v54 }
 0x157   :  { %1379 = vmatprep.subr.mxu0 %v3637_v40  ;;  %3006 = vmatprep.subr.mxu1 %v4544_v24 }
 0x158   :  { %1380 = vmatpush1.msra.mxu0 %v3643_v42  ;;  %3007 = vmatpush3.msra.mxu1 %v3688_v55 }
 0x159   :  { %1381 = vmatprep.subr.mxu0 %v3647_v43  ;;  %3008 = vmatprep.subr.mxu1 %v4544_v24 }
 0x15a   :  { %1382 = vmatpush1.msra.mxu0 %v3653_v46  ;;  %3009 = vmatpush3.msra.mxu1 %v3693_v56 }
 0x15b   :  { %1383 = vmatprep.subr.mxu0 %v3659_v47  ;;  %3010 = vmatprep.subr.mxu1 %v4544_v24 }
 0x15c   :  { %1384 = vmatpush1.msra.mxu0 %v3665_v50  ;;  %3011 = vmatpush3.msra.mxu1 %v3699_v57 }
 0x15d   :  { %1385 = vmatprep.subr.mxu0 %v3671_v51  ;;  %3012 = vmatprep.subr.mxu1 %v4544_v24 }
 0x15e   :  { %1386 = vmatpush1.msra.mxu0 %v3677_v53  ;;  %1419 = vmatprep.mubr.f32.mxu0 %v4544_v24 }
 0x15f   :  { %3013 = vmatpush3.msra.mxu1 %v3705_v58  ;;  %3014 = vmatprep.mubr.msk.f32.mxu1 %vm3436_vm0, %v4544_v24 }
 0x160   :  { %1522 = vmatprep.subr.mxu0 %v3492_v1  ;;  %3017 = vmatprep.subr.mxu1 %v4544_v24 }
 0x1ff   :  { %v1254_v45 = vpop.f32.mrf.mxu0  ;;  %v1325_v49 = vpop.f32.mrf.mxu1 }
 0x200   :  { %v1329_v60 = vadd.f32 %v1254_v45, %v1185_v35  ;;  %v1343_v53 = vadd.f32 %v3803_v30, %v1325_v49  ;;  %v4042_v49 = vld [vmem:[#allocation9 + $0x130] sm:$0xff] }
 0x201   :  { %v2981_v61 = vpop.f32.mrf.mxu1  ;;  %v1256_v63 = vpop.f32.mrf.mxu0 }
 0x202   :  { %v2762_v0 = vmul.f32 -1.442695, %v1329_v60  ;;  %v1330_v15 = vadd.f32 %v1256_v63, %v1186_v59  ;;  %v4045_v59 = vld [vmem:[#allocation9 + $0x110] sm:$0xff]  ;;  %v4049_v63 = vld [vmem:[#allocation9 + $0x108] sm:$0xff] }
 0x204   :  { %3213 = vpow2.f32 %v2762_v0  ;;  %v2763_v31 = vmul.f32 -1.442695, %v1330_v15  ;;  %v4052_v15 = vld [vmem:[#allocation9 + $0x118] sm:$0xff] }
 0x206   :  { %3215 = vpow2.f32 %v2763_v31  ;;  %v4055_v31 = vld [vmem:[#allocation9 + $0xf8] sm:$0xff] }
 0x211   :  { %v3214_v32 = vpop.eup %3213 }
 0x212   :  { %v1337_v58 = vadd.f32 1.0, %v3214_v32  ;;  %v4059_v32 = vld [vmem:[#allocation9 + $0xf0] sm:$0xff] }
 0x213   :  { %v3216_v33 = vpop.eup %3215 }
 0x214   :  { %3217 = vrcp.f32 %v1337_v58  ;;  %v1338_v50 = vadd.f32 1.0, %v3216_v33  ;;  %v4032_v58 = vld [vmem:[#allocation9 + $0x148] sm:$0xff]  ;;  %v4062_v33 = vld [vmem:[#allocation9 + $0x100] sm:$0xff] }
 0x221   :  { %v3218_v1 = vpop.eup %3217 }
 0x222   :  { %v1344_v51 = vmul.f32 %v3218_v1, %v1343_v53  ;;  %v4015_v53 = vld [vmem:[#allocation9 + $0x158] sm:$0xff]  ;;  %v4039_v1 = vld [vmem:[#allocation9 + $0x120] sm:$0xff] }
 0x224   :  { %v1345_v57 = vadd.f32 %v1344_v51, %v1187_v34  ;;  %v4009_v51 = vld [vmem:[#allocation9 + $0x168] sm:$0xff]  ;;  %v4065_v34 = vld [vmem:[#allocation9 + $0xe0] sm:$0xff] }
 0x226   :  { %3219 = vtanh.f32 %v1345_v57  ;;  %v4029_v57 = vld [vmem:[#allocation9 + $0x138] sm:$0xff] }
 0x227   :  { %3221 = vrcp.f32 %v1338_v50 }
 0x233   :  { %v3220_v35 = vpop.eup %3219 }
 0x234   :  { %v1347_v45 = vsub.f32 %v3806_v62, %v3220_v35  ;;  %v3222_v60 = vpop.eup %3221  ;;  %v4035_v62 = vld [vmem:[#allocation9 + $0x128] sm:$0xff] }
 0x236   :  { %v1348_v61 = vmul.f32 %v3222_v60, %v1347_v45  ;;  %v4072_v45 = vld [vmem:[#allocation9 + $0xe8] sm:$0xff] }
 0x237   :  { %v4075_v60 = vld [vmem:[#allocation9 + $0xc8] sm:$0xff] }
 0x238   :  { %v3904_v0 = vadd.f32 %v3220_v35, %v1348_v61  ;;  %v4069_v35 = vld [vmem:[#allocation9 + $0xd8] sm:$0xff]  ;;  %v4079_v61 = vld [vmem:[#allocation9 + $0xc0] sm:$0xff] }
 0x23a   :  { %1351 = vst [vmem:[#allocation11 + $0x8] sm:$0xff] %v3904_v0  ;;  %1420 = vmatmul.mubr.f32.vlgmr.msra.gmra.mxu0 %v3904_v0  ;;  %3015 = vmatmul.mubr.f32.vlgmr.msra.gmra.mxu1 %v3904_v0 }
 0x23b   :  { %1523 = vmatpush1.msra.mxu0 %v3494_v2  ;;  %3018 = vmatpush3.msra.mxu1 %v3541_v14  ;;  %v4546_v2 = vld [vmem:[#allocation20_spill] sm:$0xff] }
 0x23c   :  { %1524 = vmatprep.subr.mxu0 %v3496_v3  ;;  %3019 = vmatprep.subr.mxu1 %v4544_v24  ;;  %v4547_v3 = vld [vmem:[#allocation23_spill] sm:$0xff] }
 0x23d   :  { %1525 = vmatpush1.msra.mxu0 %v3499_v4  ;;  %3020 = vmatpush3.msra.mxu1 %v3548_v17  ;;  %v4548_v4 = vld [vmem:[#allocation21_spill] sm:$0xff] }
 0x23e   :  { %1526 = vmatprep.subr.mxu0 %v3502_v5  ;;  %3021 = vmatprep.subr.mxu1 %v4544_v24  ;;  %v4549_v5 = vld [vmem:[#allocation22_spill] sm:$0xff]  ;;  %v479_v14 = vld [vmem:[%s478_s15] ss:$8 sm:$0x7]  ;;  %s535_s15 = scalar_lea.vmem [#allocation6], %s534_s19  ;;  %s612_s19 = sshra.s32 %s2709_s13, 3 }
 0x23f   :  { %1527 = vmatpush1.msra.mxu0 %v3505_v6  ;;  %3022 = vmatpush3.msra.mxu1 %v3555_v19  ;;  %v4550_v6 = vld [vmem:[#allocation24_spill] sm:$0xff]  ;;  %481 = vst.msk [vmem:[#allocation3 + $0x4d] ss:$8 sm:$0x7] %vm3574_vm1, %v479_v14  ;;  %v4119_v14 = vld [vmem:[#allocation9 + $0x60] sm:$0xff]  ;;  %s2710_s21 = smul.u32 24, %s612_s19 }
 0x240   :  { %1528 = vmatprep.subr.mxu0 %v3511_v7  ;;  %3023 = vmatprep.subr.mxu1 %v4544_v24  ;;  %v3974_v7 = vld [vmem:[#allocation9 + $0x170] sm:$0xff] }
 0x241   :  { %1529 = vmatpush1.msra.mxu0 %v3516_v8  ;;  %3024 = vmatpush3.msra.mxu1 %v3572_v23  ;;  %4551 = vst [vmem:[#allocation20_spill] sm:$0xff] %v3974_v7  ;;  %v409_v8 = vld [vmem:[%s408_s30] ss:$8 sm:$0x7]  ;;  %s491_s30 = sadd.s32 %s2692_s0, %s488_s22  ;;  %s556_s22 = sshra.s32 %s2701_s28, 3 }
 0x242   :  { %1530 = vmatprep.subr.mxu0 %v3520_v9  ;;  %3025 = vmatprep.subr.mxu1 %v4544_v24  ;;  %411 = vst.msk [vmem:[#allocation3 + $0x48] ss:$8 sm:$0x7] %vm3574_vm1, %v409_v8  ;;  %v507_v17 = vld [vmem:[%s506_s1] ss:$8 sm:$0x7] }
 0x243   :  { %1531 = vmatpush1.msra.mxu0 %v3524_v10  ;;  %3026 = vmatpush3.msra.mxu1 %v3586_v27  ;;  %v423_v10 = vld [vmem:[%s422_s23] ss:$8 sm:$0x7]  ;;  %s492_s23 = scalar_lea.vmem [#allocation6], %s491_s30  ;;  %v4102_v8 = vld [vmem:[#allocation9 + $0xa0] sm:$0xff]  ;;  %s559_s0 = sand.u32 7, %s2701_s28 }
 0x244   :  { %1532 = vmatprep.subr.mxu0 %v3528_v11  ;;  %3027 = vmatprep.subr.mxu1 %v4544_v24  ;;  %425 = vst.msk [vmem:[#allocation3 + $0x49] ss:$8 sm:$0x7] %vm3574_vm1, %v423_v10  ;;  %v437_v11 = vld [vmem:[%s436_s2] ss:$8 sm:$0x7] }
 0x245   :  { %1533 = vmatpush1.msra.mxu0 %v3534_v12  ;;  %3028 = vmatpush3.msra.mxu1 %v3594_v29  ;;  %439 = vst.msk [vmem:[#allocation3 + $0x4a] ss:$8 sm:$0x7] %vm3574_vm1, %v437_v11  ;;  %v451_v12 = vld [vmem:[%s450_s11] ss:$8 sm:$0x7] }
 0x246   :  { %1534 = vmatprep.subr.mxu0 %v3539_v13  ;;  %3029 = vmatprep.subr.mxu1 %v4544_v24  ;;  %453 = vst.msk [vmem:[#allocation3 + $0x4b] ss:$8 sm:$0x7] %vm3574_vm1, %v451_v12  ;;  %v465_v13 = vld [vmem:[%s464_s20] ss:$8 sm:$0x7] }
 0x247   :  { %1535 = vmatpush1.msra.mxu0 %v3545_v16  ;;  %3030 = vmatpush3.msra.mxu1 %v3628_v38  ;;  %467 = vst.msk [vmem:[#allocation3 + $0x4c] ss:$8 sm:$0x7] %vm3574_vm1, %v465_v13  ;;  %v493_v16 = vld [vmem:[%s492_s23] ss:$8 sm:$0x7] }
 0x248   :  { %1536 = vmatprep.subr.mxu0 %v3552_v18  ;;  %3031 = vmatprep.subr.mxu1 %v4544_v24  ;;  %495 = vst.msk [vmem:[#allocation3 + $0x4e] ss:$8 sm:$0x7] %vm3574_vm1, %v493_v16  ;;  %509 = vst.msk [vmem:[#allocation3 + $0x4f] ss:$8 sm:$0x7] %vm3574_vm1, %v507_v17 }
 0x249   :  { %1537 = vmatpush1.msra.mxu0 %v3559_v20  ;;  %3032 = vmatpush3.msra.mxu1 %v3640_v41  ;;  %v1352_v18 = vld [vmem:[#allocation3 + $0x30] sm:$0xff]  ;;  %v4105_v10 = vld [vmem:[#allocation9 + $0x80] sm:$0xff]  ;;  %v4112_v12 = vld [vmem:[#allocation9 + $0x88] sm:$0xff]  ;;  %s4172_s2 = sld [smem:[#allocation5 + $0x25]]  ;;  %s517_s11 = sand.u32 7, %s2695_s7 }
 0x24a   :  { %1538 = vmatprep.subr.mxu0 %v3567_v21  ;;  %3033 = vmatprep.subr.mxu1 %v4544_v24  ;;  %v4109_v11 = vld [vmem:[#allocation9 + $0x78] sm:$0xff]  ;;  %v4115_v13 = vld [vmem:[#allocation9 + $0x68] sm:$0xff]  ;;  %v4122_v16 = vld [vmem:[#allocation9 + $0x70] sm:$0xff]  ;;  %s520_s14 = sadd.s32 %s2696_s29, %s517_s11  ;;  %s2702_s26 = smul.u32 24, %s556_s22 }
 0x24b   :  { %1539 = vmatpush1.msra.mxu0 %v3569_v22  ;;  %3034 = vmatpush3.msra.mxu1 %v3650_v44  ;;  %v4125_v17 = vld [vmem:[#allocation9 + $0x50] sm:$0xff]  ;;  %s521_s20 = scalar_lea.vmem [#allocation6], %s520_s14  ;;  %s570_s30 = sshra.s32 %s4170_s9, 3 }
 0x24c   :  { %1540 = vmatprep.subr.mxu0 %v3581_v25  ;;  %3035 = vmatprep.subr.mxu1 %v4544_v24  ;;  %v1353_v25 = vld [vmem:[#allocation3 + $0x38] sm:$0xff]  ;;  %s562_s27 = sadd.s32 %s2702_s26, %s559_s0  ;;  %s549_s23 = scalar_lea.vmem [#allocation6], %s548_s16 }
 0x24d   :  { %1541 = vmatpush1.msra.mxu0 %v3583_v26  ;;  %3036 = vmatpush3.msra.mxu1 %v3662_v48  ;;  %s563_s1 = scalar_lea.vmem [#allocation6], %s562_s27  ;;  %s2704_s7 = smul.u32 24, %s570_s30 }
 0x24e   :  { %1542 = vmatprep.subr.mxu0 %v3591_v28  ;;  %3037 = vmatprep.subr.mxu1 %v4544_v24  ;;  %s2707_s11 = sld [smem:[#allocation5 + $0x26]] }
 0x24f   :  { %1543 = vmatpush1.msra.mxu0 %v3615_v36  ;;  %3038 = vmatpush3.msra.mxu1 %v3674_v52  ;;  %v4012_v52 = vld [vmem:[#allocation9 + $0x178] sm:$0xff]  ;;  %s584_s8 = sshra.s32 %s4172_s2, 3  ;;  %s587_s24 = sand.u32 7, %s4172_s2 }
 0x250   :  { %1544 = vmatprep.subr.mxu0 %v3625_v37  ;;  %3039 = vmatprep.subr.mxu1 %v4544_v24  ;;  %s2706_s10 = smul.u32 24, %s584_s8  ;;  %s576_s28 = sadd.s32 %s2704_s7, %s573_s6 }
 0x251   :  { %1545 = vmatpush1.msra.mxu0 %v3631_v39  ;;  %3040 = vmatpush3.msra.mxu1 %v3682_v54  ;;  %v4019_v54 = vld [vmem:[#allocation9 + $0x150] sm:$0xff]  ;;  %s577_s12 = scalar_lea.vmem [#allocation6], %s576_s28  ;;  %s615_s2 = sand.u32 7, %s2709_s13 }
 0x252   :  { %1546 = vmatprep.subr.mxu0 %v3637_v40  ;;  %3041 = vmatprep.subr.mxu1 %v4544_v24  ;;  %v1354_v40 = vld [vmem:[#allocation3 + $0x40] sm:$0xff]  ;;  %s590_s29 = sadd.s32 %s2706_s10, %s587_s24  ;;  %s618_s25 = sadd.s32 %s2710_s21, %s615_s2 }
 0x253   :  { %1547 = vmatpush1.msra.mxu0 %v3643_v42  ;;  %3042 = vmatpush3.msra.mxu1 %v3688_v55  ;;  %v4022_v55 = vld [vmem:[#allocation9 + $0x160] sm:$0xff]  ;;  %s591_s9 = scalar_lea.vmem [#allocation6], %s590_s29  ;;  %s619_s22 = scalar_lea.vmem [#allocation6], %s618_s25 }
 0x254   :  { %1548 = vmatprep.subr.mxu0 %v3647_v43  ;;  %3043 = vmatprep.subr.mxu1 %v4544_v24  ;;  %s598_s17 = sshra.s32 %s2707_s11, 3  ;;  %s601_s14 = sand.u32 7, %s2707_s11 }
 0x255   :  { %1549 = vmatpush1.msra.mxu0 %v3653_v46  ;;  %3044 = vmatpush3.msra.mxu1 %v3693_v56  ;;  %v4025_v56 = vld [vmem:[#allocation9 + $0x140] sm:$0xff]  ;;  %s2708_s18 = smul.u32 24, %s598_s17  ;;  %s2711_s0 = sld [smem:[#allocation5 + $0x28]] }
 0x256   :  { %1550 = vmatprep.subr.mxu0 %v3659_v47  ;;  %3045 = vmatprep.subr.mxu1 %v4544_v24  ;;  %s2713_s26 = sld [smem:[#allocation5 + $0x29]] }
 0x257   :  { %1551 = vmatpush1.msra.mxu0 %v4546_v2  ;;  %3046 = vmatpush3.msra.mxu1 %v4547_v3  ;;  %v4085_v2 = vld [vmem:[#allocation9 + $0xb0] sm:$0xff]  ;;  %v4089_v3 = vld [vmem:[#allocation9 + $0xa8] sm:$0xff]  ;;  %s2715_s16 = sld [smem:[#allocation5 + $0x2a]] }
 0x258   :  { %1552 = vmatprep.subr.mxu0 %v4548_v4  ;;  %3047 = vmatprep.subr.mxu1 %v4544_v24  ;;  %v4092_v4 = vld [vmem:[#allocation9 + $0xb8] sm:$0xff]  ;;  %s2717_s30 = sld [smem:[#allocation5 + $0x2b]] }
 0x259   :  { %1553 = vmatpush1.msra.mxu0 %v4549_v5  ;;  %1586 = vmatprep.mubr.f32.mxu0 %v4544_v24  ;;  %v4095_v5 = vld [vmem:[#allocation9 + $0x98] sm:$0xff]  ;;  %s4268_s27 = sld [smem:[#allocation5 + $0x2c]] }
 0x25a   :  { %3048 = vmatpush3.msra.mxu1 %v4550_v6  ;;  %3049 = vmatprep.mubr.msk.f32.mxu1 %vm3436_vm0, %v4544_v24  ;;  %v4099_v6 = vld [vmem:[#allocation9 + $0x90] sm:$0xff] }
 0x25b   :  { %1689 = vmatprep.subr.mxu0 %v3974_v7  ;;  %3052 = vmatprep.subr.mxu1 %v4544_v24  ;;  %s627_s6 = sshra.s32 %s2711_s0, 3 }
 0x25c   :  { %s2712_s7 = smul.u32 24, %s627_s6  ;;  %s641_s8 = sshra.s32 %s2713_s26, 3 }
 0x25d   :  { %s644_s24 = sand.u32 7, %s2713_s26  ;;  %s2714_s10 = smul.u32 24, %s641_s8 }
 0x25e   :  { %s655_s11 = sshra.s32 %s2715_s16, 3  ;;  %s658_s13 = sand.u32 7, %s2715_s16 }
 0x25f   :  { %s647_s29 = sadd.s32 %s2714_s10, %s644_s24  ;;  %s2716_s17 = smul.u32 24, %s655_s11 }
 0x260   :  { %s686_s25 = sand.u32 7, %s4268_s27  ;;  %s2725_s24 = sld [smem:[#allocation5 + $0x2f]] }
 0x261   :  { %s661_s2 = sadd.s32 %s2716_s17, %s658_s13 }
 0x2fa   :  { %v1421_v19 = vpop.f32.mrf.mxu0  ;;  %v1492_v20 = vpop.f32.mrf.mxu1 }
 0x2fb   :  { %v1496_v21 = vadd.f32 %v1421_v19, %v1352_v18  ;;  %v1510_v38 = vadd.f32 %v3803_v30, %v1492_v20  ;;  %v4129_v18 = vld [vmem:[#allocation9 + $0x48] sm:$0xff]  ;;  %v4132_v19 = vld [vmem:[#allocation9 + $0x58] sm:$0xff] }
 0x2fc   :  { %v3016_v22 = vpop.f32.mrf.mxu1  ;;  %v1423_v26 = vpop.f32.mrf.mxu0  ;;  %v4135_v20 = vld [vmem:[#allocation9 + $0x38] sm:$0xff] }
 0x2fd   :  { %v2764_v23 = vmul.f32 -1.442695, %v1496_v21  ;;  %v1497_v27 = vadd.f32 %v1423_v26, %v1353_v25  ;;  %v4139_v21 = vld [vmem:[#allocation9 + $0x30] sm:$0xff]  ;;  %v4142_v22 = vld [vmem:[#allocation9 + $0x40] sm:$0xff]  ;;  %v4149_v25 = vld [vmem:[#allocation9 + $0x18] sm:$0xff] }
 0x2fe   :  { %4553 = vst [vmem:[#allocation23_spill] sm:$0xff] %v4149_v25  ;;  %v4152_v26 = vld [vmem:[#allocation9 + $0x28] sm:$0xff] }
 0x2ff   :  { %3223 = vpow2.f32 %v2764_v23  ;;  %v2765_v28 = vmul.f32 -1.442695, %v1497_v27  ;;  %v4145_v23 = vld [vmem:[#allocation9 + $0x20] sm:$0xff]  ;;  %4554 = vst [vmem:[#allocation21_spill] sm:$0xff] %v4152_v26  ;;  %v4155_v27 = vld [vmem:[#allocation9 + $0x8] sm:$0xff] }
 0x300   :  { %4555 = vst [vmem:[#allocation22_spill] sm:$0xff] %v4155_v27 }
 0x301   :  { %3225 = vpow2.f32 %v2765_v28  ;;  %v4159_v28 = vld [vmem:[#allocation9] sm:$0xff] }
 0x302   :  { %4556 = vst [vmem:[#allocation24_spill] sm:$0xff] %v4159_v28 }
 0x30c   :  { %v3224_v29 = vpop.eup %3223 }
 0x30d   :  { %v1504_v36 = vadd.f32 1.0, %v3224_v29  ;;  %v4163_v29 = vld [vmem:[#allocation9 + $0x10] sm:$0xff] }
 0x30e   :  { %v3226_v37 = vpop.eup %3225  ;;  %4557 = vst [vmem:[#allocation25_spill] sm:$0xff] %v4163_v29 }
 0x30f   :  { %3227 = vrcp.f32 %v1504_v36  ;;  %v1505_v43 = vadd.f32 1.0, %v3226_v37  ;;  %v522_v36 = vld [vmem:[%s521_s20] ss:$8 sm:$0x7]  ;;  %s604_s20 = sadd.s32 %s2708_s18, %s601_s14  ;;  %s669_s14 = sshra.s32 %s2717_s30, 3 }
 0x310   :  { %524 = vst.msk [vmem:[#allocation3 + $0x60] ss:$8 sm:$0x7] %vm3574_vm1, %v522_v36  ;;  %v536_v37 = vld [vmem:[%s535_s15] ss:$8 sm:$0x7] }
 0x311   :  { %538 = vst.msk [vmem:[#allocation3 + $0x61] ss:$8 sm:$0x7] %vm3574_vm1, %v536_v37  ;;  %s605_s15 = scalar_lea.vmem [#allocation6], %s604_s20  ;;  %s672_s18 = sand.u32 7, %s2717_s30 }
 0x312   :  { %s2718_s19 = smul.u32 24, %s669_s14  ;;  %s683_s20 = sshra.s32 %s4268_s27, 3 }
 0x314   :  { %s675_s21 = sadd.s32 %s2718_s19, %s672_s18 }
 0x31c   :  { %v3228_v39 = vpop.eup %3227 }
 0x31d   :  { %v1511_v41 = vmul.f32 %v3228_v39, %v1510_v38  ;;  %v550_v38 = vld [vmem:[%s549_s23] ss:$8 sm:$0x7]  ;;  %s4270_s23 = sld [smem:[#allocation5 + $0x2d]] }
 0x31e   :  { %552 = vst.msk [vmem:[#allocation3 + $0x62] ss:$8 sm:$0x7] %vm3574_vm1, %v550_v38  ;;  %v564_v39 = vld [vmem:[%s563_s1] ss:$8 sm:$0x7] }
 0x31f   :  { %v1512_v42 = vadd.f32 %v1511_v41, %v1354_v40  ;;  %566 = vst.msk [vmem:[#allocation3 + $0x63] ss:$8 sm:$0x7] %vm3574_vm1, %v564_v39  ;;  %v578_v40 = vld [vmem:[%s577_s12] ss:$8 sm:$0x7] }
 0x320   :  { %580 = vst.msk [vmem:[#allocation3 + $0x64] ss:$8 sm:$0x7] %vm3574_vm1, %v578_v40  ;;  %v592_v41 = vld [vmem:[%s591_s9] ss:$8 sm:$0x7] }
 0x321   :  { %3229 = vtanh.f32 %v1512_v42  ;;  %594 = vst.msk [vmem:[#allocation3 + $0x65] ss:$8 sm:$0x7] %vm3574_vm1, %v592_v41  ;;  %v606_v42 = vld [vmem:[%s605_s15] ss:$8 sm:$0x7] }
 0x322   :  { %3231 = vrcp.f32 %v1505_v43  ;;  %608 = vst.msk [vmem:[#allocation3 + $0x66] ss:$8 sm:$0x7] %vm3574_vm1, %v606_v42  ;;  %v620_v43 = vld [vmem:[%s619_s22] ss:$8 sm:$0x7] }
 0x323   :  { %622 = vst.msk [vmem:[#allocation3 + $0x67] ss:$8 sm:$0x7] %vm3574_vm1, %v620_v43  ;;  %v1520_v38 = vld [vmem:[#allocation3 + $0x50] sm:$0xff]  ;;  %v1521_v43 = vld [vmem:[#allocation3 + $0x58] sm:$0xff]  ;;  %s630_s1 = sand.u32 7, %s2711_s0 }
 0x324   :  { %s633_s28 = sadd.s32 %s2712_s7, %s630_s1  ;;  %s648_s9 = scalar_lea.vmem [#allocation6], %s647_s29 }
 0x325   :  { %s634_s12 = scalar_lea.vmem [#allocation6], %s633_s28  ;;  %s662_s15 = scalar_lea.vmem [#allocation6], %s661_s2 }
 0x326   :  { %s676_s22 = scalar_lea.vmem [#allocation6], %s675_s21  ;;  %s2720_s0 = smul.u32 24, %s683_s20 }
 0x327   :  { %s697_s26 = sshra.s32 %s4270_s23, 3  ;;  %s700_s16 = sand.u32 7, %s4270_s23 }
 0x328   :  { %s2722_s6 = smul.u32 24, %s697_s26  ;;  %s689_s30 = sadd.s32 %s2720_s0, %s686_s25 }
 0x329   :  { %s2723_s1 = sld [smem:[#allocation5 + $0x2e]]  ;;  %s690_s8 = scalar_lea.vmem [#allocation6], %s689_s30 }
 0x32a   :  { %s703_s7 = sadd.s32 %s2722_s6, %s700_s16  ;;  %s725_s29 = sshra.s32 %s2725_s24, 3 }
 0x32b   :  { %s704_s27 = scalar_lea.vmem [#allocation6], %s703_s7  ;;  %s728_s23 = sand.u32 7, %s2725_s24 }
 0x32c   :  { %s2726_s13 = smul.u32 24, %s725_s29  ;;  %s2729_s2 = sld [smem:[#allocation5 + $0x31]] }
 0x32d   :  { %s2731_s20 = sld [smem:[#allocation5 + $0x32]] }
 0x32e   :  { %v3230_v44 = vpop.eup %3229  ;;  %s731_s17 = sadd.s32 %s2726_s13, %s728_s23  ;;  %s2733_s21 = sld [smem:[#allocation5 + $0x33]] }
 0x32f   :  { %v1514_v46 = vsub.f32 %v3904_v0, %v3230_v44  ;;  %v3232_v47 = vpop.eup %3231  ;;  %v4082_v0 = vld [vmem:[#allocation9 + $0xd0] sm:$0xff]  ;;  %s711_s10 = sshra.s32 %s2723_s1, 3  ;;  %s714_s28 = sand.u32 7, %s2723_s1 }
 0x330   :  { %s2724_s11 = smul.u32 24, %s711_s10  ;;  %s732_s14 = scalar_lea.vmem [#allocation6], %s731_s17 }
 0x331   :  { %v1515_v48 = vmul.f32 %v3232_v47, %v1514_v46  ;;  %s4373_s25 = sld [smem:[#allocation5 + $0x35]] }
 0x332   :  { %s754_s16 = sshra.s32 %s2729_s2, 3  ;;  %s757_s6 = sand.u32 7, %s2729_s2 }
 0x333   :  { %v4004_v50 = vadd.f32 %v3230_v44, %v1515_v48  ;;  %v1519_v44 = vld [vmem:[#allocation3 + $0x48] sm:$0xff]  ;;  %s2730_s30 = smul.u32 24, %s754_s16  ;;  %s768_s7 = sshra.s32 %s2731_s20, 3 }
 0x334   :  { %s785_s29 = sand.u32 7, %s2733_s21  ;;  %s2741_s16 = sld [smem:[#allocation5 + $0x37]] }
 0x335   :  { %1518 = vst [vmem:[#allocation11 + $0x10] sm:$0xff] %v4004_v50  ;;  %1587 = vmatmul.mubr.f32.vlgmr.msra.gmra.mxu0 %v4004_v50  ;;  %3050 = vmatmul.mubr.f32.vlgmr.msra.gmra.mxu1 %v4004_v50 }
 0x336   :  { %1690 = vmatpush1.msra.mxu0 %v4009_v51  ;;  %3053 = vmatpush3.msra.mxu1 %v4012_v52 }
 0x337   :  { %1691 = vmatprep.subr.mxu0 %v4015_v53  ;;  %3054 = vmatprep.subr.mxu1 %v4544_v24  ;;  %s813_s2 = sand.u32 7, %s4373_s25 }
 0x338   :  { %1692 = vmatpush1.msra.mxu0 %v4019_v54  ;;  %3055 = vmatpush3.msra.mxu1 %v4022_v55 }
 0x339   :  { %1693 = vmatprep.subr.mxu0 %v4025_v56  ;;  %3056 = vmatprep.subr.mxu1 %v4544_v24 }
 0x33a   :  { %1694 = vmatpush1.msra.mxu0 %v4029_v57  ;;  %3057 = vmatpush3.msra.mxu1 %v4032_v58 }
 0x33b   :  { %1695 = vmatprep.subr.mxu0 %v4035_v62  ;;  %3058 = vmatprep.subr.mxu1 %v4544_v24 }
 0x33c   :  { %1696 = vmatpush1.msra.mxu0 %v4039_v1  ;;  %3059 = vmatpush3.msra.mxu1 %v4042_v49 }
 0x33d   :  { %1697 = vmatprep.subr.mxu0 %v4045_v59  ;;  %3060 = vmatprep.subr.mxu1 %v4544_v24 }
 0x33e   :  { %1698 = vmatpush1.msra.mxu0 %v4049_v63  ;;  %3061 = vmatpush3.msra.mxu1 %v4052_v15 }
 0x33f   :  { %1699 = vmatprep.subr.mxu0 %v4055_v31  ;;  %3062 = vmatprep.subr.mxu1 %v4544_v24 }
 0x340   :  { %1700 = vmatpush1.msra.mxu0 %v4059_v32  ;;  %3063 = vmatpush3.msra.mxu1 %v4062_v33 }
 0x341   :  { %1701 = vmatprep.subr.mxu0 %v4065_v34  ;;  %3064 = vmatprep.subr.mxu1 %v4544_v24 }
 0x342   :  { %1702 = vmatpush1.msra.mxu0 %v4069_v35  ;;  %3065 = vmatpush3.msra.mxu1 %v4072_v45 }
 0x343   :  { %1703 = vmatprep.subr.mxu0 %v4075_v60  ;;  %3066 = vmatprep.subr.mxu1 %v4544_v24 }
 0x344   :  { %1704 = vmatpush1.msra.mxu0 %v4079_v61  ;;  %3067 = vmatpush3.msra.mxu1 %v4082_v0 }
 0x345   :  { %1705 = vmatprep.subr.mxu0 %v4085_v2  ;;  %3068 = vmatprep.subr.mxu1 %v4544_v24 }
 0x346   :  { %1706 = vmatpush1.msra.mxu0 %v4089_v3  ;;  %3069 = vmatpush3.msra.mxu1 %v4092_v4 }
 0x347   :  { %1707 = vmatprep.subr.mxu0 %v4095_v5  ;;  %3070 = vmatprep.subr.mxu1 %v4544_v24 }
 0x348   :  { %1708 = vmatpush1.msra.mxu0 %v4099_v6  ;;  %3071 = vmatpush3.msra.mxu1 %v4102_v8 }
 0x349   :  { %1709 = vmatprep.subr.mxu0 %v4105_v10  ;;  %3072 = vmatprep.subr.mxu1 %v4544_v24 }
 0x34a   :  { %1710 = vmatpush1.msra.mxu0 %v4109_v11  ;;  %3073 = vmatpush3.msra.mxu1 %v4112_v12 }
 0x34b   :  { %1711 = vmatprep.subr.mxu0 %v4115_v13  ;;  %3074 = vmatprep.subr.mxu1 %v4544_v24 }
 0x34c   :  { %1712 = vmatpush1.msra.mxu0 %v4119_v14  ;;  %3075 = vmatpush3.msra.mxu1 %v4122_v16 }
 0x34d   :  { %1713 = vmatprep.subr.mxu0 %v4125_v17  ;;  %3076 = vmatprep.subr.mxu1 %v4544_v24 }
 0x34e   :  { %1714 = vmatpush1.msra.mxu0 %v4129_v18  ;;  %3077 = vmatpush3.msra.mxu1 %v4132_v19 }
 0x34f   :  { %1715 = vmatprep.subr.mxu0 %v4135_v20  ;;  %3078 = vmatprep.subr.mxu1 %v4544_v24 }
 0x350   :  { %1716 = vmatpush1.msra.mxu0 %v4139_v21  ;;  %3079 = vmatpush3.msra.mxu1 %v4142_v22 }
 0x351   :  { %1717 = vmatprep.subr.mxu0 %v4145_v23  ;;  %3080 = vmatprep.subr.mxu1 %v4544_v24 }
 0x352   :  { %1718 = vmatpush1.msra.mxu0 %v4149_v25  ;;  %3081 = vmatpush3.msra.mxu1 %v4152_v26 }
 0x353   :  { %1719 = vmatprep.subr.mxu0 %v4155_v27  ;;  %3082 = vmatprep.subr.mxu1 %v4544_v24 }
 0x354   :  { %1720 = vmatpush1.msra.mxu0 %v4159_v28  ;;  %1753 = vmatprep.mubr.f32.mxu0 %v4544_v24 }
 0x355   :  { %3083 = vmatpush3.msra.mxu1 %v4163_v29  ;;  %3084 = vmatprep.mubr.msk.f32.mxu1 %vm3436_vm0, %v4544_v24 }
 0x356   :  { %1856 = vmatprep.subr.mxu0 %v3974_v7  ;;  %3087 = vmatprep.subr.mxu1 %v4544_v24 }
 0x3f5   :  { %v1588_v46 = vpop.f32.mrf.mxu0  ;;  %v1659_v47 = vpop.f32.mrf.mxu1 }
 0x3f6   :  { %v1663_v48 = vadd.f32 %v1588_v46, %v1519_v44  ;;  %v1677_v28 = vadd.f32 %v3803_v30, %v1659_v47  ;;  %v4558_v30 = vld [vmem:[#allocation23_spill] sm:$0xff] }
 0x3f7   :  { %v3051_v36 = vpop.f32.mrf.mxu1  ;;  %v1590_v39 = vpop.f32.mrf.mxu0  ;;  %v663_v47 = vld [vmem:[%s662_s15] ss:$8 sm:$0x7]  ;;  %s4371_s15 = sld [smem:[#allocation5 + $0x34]] }
 0x3f8   :  { %v2766_v37 = vmul.f32 -1.442695, %v1663_v48  ;;  %v1664_v40 = vadd.f32 %v1590_v39, %v1520_v38  ;;  %665 = vst.msk [vmem:[#allocation3 + $0x7a] ss:$8 sm:$0x7] %vm3574_vm1, %v663_v47 }
 0x3f9   :  { %v677_v38 = vld [vmem:[%s676_s22] ss:$8 sm:$0x7] }
 0x3fa   :  { %3233 = vpow2.f32 %v2766_v37  ;;  %v2767_v41 = vmul.f32 -1.442695, %v1664_v40  ;;  %679 = vst.msk [vmem:[#allocation3 + $0x7b] ss:$8 sm:$0x7] %vm3574_vm1, %v677_v38 }
 0x3fb   :  { %v691_v39 = vld [vmem:[%s690_s8] ss:$8 sm:$0x7]  ;;  %s760_s8 = sadd.s32 %s2730_s30, %s757_s6 }
 0x3fc   :  { %3235 = vpow2.f32 %v2767_v41  ;;  %693 = vst.msk [vmem:[#allocation3 + $0x7c] ss:$8 sm:$0x7] %vm3574_vm1, %v691_v39  ;;  %v705_v40 = vld [vmem:[%s704_s27] ss:$8 sm:$0x7] }
 0x3fd   :  { %707 = vst.msk [vmem:[#allocation3 + $0x7d] ss:$8 sm:$0x7] %vm3574_vm1, %v705_v40  ;;  %s771_s27 = sand.u32 7, %s2731_s20  ;;  %s761_s10 = scalar_lea.vmem [#allocation6], %s760_s8 }
 0x3fe   :  { %s796_s13 = sshra.s32 %s4371_s15, 3 }
 0x3ff   :  { %s2736_s19 = smul.u32 24, %s796_s13  ;;  %s4467_s13 = sld [smem:[#allocation5 + $0x3c]] }
 0x407   :  { %v3234_v7 = vpop.eup %3233 }
 0x408   :  { %v1671_v29 = vadd.f32 1.0, %v3234_v7  ;;  %v4559_v7 = vld [vmem:[#allocation21_spill] sm:$0xff] }
 0x409   :  { %v3236_v42 = vpop.eup %3235 }
 0x40a   :  { %3237 = vrcp.f32 %v1671_v29  ;;  %v1672_v25 = vadd.f32 1.0, %v3236_v42  ;;  %v649_v29 = vld [vmem:[%s648_s9] ss:$8 sm:$0x7] }
 0x40b   :  { %651 = vst.msk [vmem:[#allocation3 + $0x79] ss:$8 sm:$0x7] %vm3574_vm1, %v649_v29  ;;  %v733_v42 = vld [vmem:[%s732_s14] ss:$8 sm:$0x7] }
 0x40c   :  { %735 = vst.msk [vmem:[#allocation3 + $0x7f] ss:$8 sm:$0x7] %vm3574_vm1, %v733_v42  ;;  %v1687_v29 = vld [vmem:[#allocation3 + $0x68] sm:$0xff]  ;;  %v4295_v42 = vld [vmem:[%s4503_s3] ss:$0 sm:$0xff] }
 0x40d   :  { %s2727_s3 = sld [smem:[#allocation5 + $0x30]]  ;;  %s799_s14 = sand.u32 7, %s4371_s15 }
 0x413   :  { %s740_s22 = sshra.s32 %s2727_s3, 3  ;;  %s743_s0 = sand.u32 7, %s2727_s3 }
 0x414   :  { %s2728_s26 = smul.u32 24, %s740_s22  ;;  %s810_s3 = sshra.s32 %s4373_s25, 3 }
 0x415   :  { %s2738_s20 = smul.u32 24, %s810_s3  ;;  %s2739_s22 = sld [smem:[#allocation5 + $0x36]] }
 0x416   :  { %s746_s1 = sadd.s32 %s2728_s26, %s743_s0  ;;  %s841_s25 = sand.u32 7, %s2741_s16 }
 0x417   :  { %v3238_v9 = vpop.eup %3237  ;;  %s747_s24 = scalar_lea.vmem [#allocation6], %s746_s1  ;;  %s816_s0 = sadd.s32 %s2738_s20, %s813_s2 }
 0x418   :  { %v1678_v27 = vmul.f32 %v3238_v9, %v1677_v28  ;;  %v4560_v9 = vld [vmem:[#allocation22_spill] sm:$0xff]  ;;  %s817_s15 = scalar_lea.vmem [#allocation6], %s816_s0 }
 0x41a   :  { %v1679_v26 = vadd.f32 %v1678_v27, %v1521_v43  ;;  %v635_v27 = vld [vmem:[%s634_s12] ss:$8 sm:$0x7]  ;;  %s717_s12 = sadd.s32 %s2724_s11, %s714_s28  ;;  %s2732_s28 = smul.u32 24, %s768_s7 }
 0x41b   :  { %637 = vst.msk [vmem:[#allocation3 + $0x78] ss:$8 sm:$0x7] %vm3574_vm1, %v635_v27  ;;  %s718_s9 = scalar_lea.vmem [#allocation6], %s717_s12  ;;  %v1686_v43 = vld [vmem:[#allocation3 + $0x60] sm:$0xff]  ;;  %s782_s11 = sshra.s32 %s2733_s21, 3 }
 0x41c   :  { %3239 = vtanh.f32 %v1679_v26  ;;  %v4563_v26 = vld [vmem:[#allocation20_spill] sm:$0xff]  ;;  %s2734_s23 = smul.u32 24, %s782_s11  ;;  %s774_s12 = sadd.s32 %s2732_s28, %s771_s27 }
 0x41d   :  { %3241 = vrcp.f32 %v1672_v25  ;;  %v4562_v25 = vld [vmem:[#allocation25_spill] sm:$0xff]  ;;  %s775_s17 = scalar_lea.vmem [#allocation6], %s774_s12  ;;  %s802_s21 = sadd.s32 %s2736_s19, %s799_s14 }
 0x41e   :  { %v719_v41 = vld [vmem:[%s718_s9] ss:$8 sm:$0x7]  ;;  %s788_s9 = sadd.s32 %s2734_s23, %s785_s29  ;;  %s803_s26 = scalar_lea.vmem [#allocation6], %s802_s21 }
 0x41f   :  { %721 = vst.msk [vmem:[#allocation3 + $0x7e] ss:$8 sm:$0x7] %vm3574_vm1, %v719_v41  ;;  %s789_s18 = scalar_lea.vmem [#allocation6], %s788_s9  ;;  %s824_s6 = sshra.s32 %s2739_s22, 3 }
 0x420   :  { %s827_s30 = sand.u32 7, %s2739_s22  ;;  %s2740_s1 = smul.u32 24, %s824_s6 }
 0x421   :  { %s838_s7 = sshra.s32 %s2741_s16, 3  ;;  %s2743_s11 = sld [smem:[#allocation5 + $0x38]] }
 0x422   :  { %s830_s8 = sadd.s32 %s2740_s1, %s827_s30  ;;  %s2745_s29 = sld [smem:[#allocation5 + $0x39]] }
 0x423   :  { %s831_s27 = scalar_lea.vmem [#allocation6], %s830_s8  ;;  %s2747_s23 = sld [smem:[#allocation5 + $0x3a]] }
 0x424   :  { %s2749_s12 = sld [smem:[#allocation5 + $0x3b]] }
 0x425   :  { %s4469_s9 = sld [smem:[#allocation5 + $0x3d]] }
 0x427   :  { %s856_s14 = sand.u32 7, %s2743_s11 }
 0x428   :  { %s867_s19 = sshra.s32 %s2745_s29, 3  ;;  %s870_s3 = sand.u32 7, %s2745_s29 }
 0x429   :  { %v3240_v44 = vpop.eup %3239  ;;  %s2746_s2 = smul.u32 24, %s867_s19  ;;  %s881_s21 = sshra.s32 %s2747_s23, 3 }
 0x42a   :  { %v1681_v46 = vsub.f32 %v4004_v50, %v3240_v44  ;;  %v3242_v48 = vpop.eup %3241  ;;  %v4561_v50 = vld [vmem:[#allocation24_spill] sm:$0xff]  ;;  %s895_s6 = sshra.s32 %s2749_s12, 3  ;;  %s898_s30 = sand.u32 7, %s2749_s12 }
 0x42b   :  { %s873_s22 = sadd.s32 %s2746_s2, %s870_s3  ;;  %s2750_s1 = smul.u32 24, %s895_s6 }
 0x42c   :  { %v1682_v36 = vmul.f32 %v3242_v48, %v1681_v46  ;;  %s874_s16 = scalar_lea.vmem [#allocation6], %s873_s22  ;;  %s926_s29 = sand.u32 7, %s4469_s9 }
 0x42d   :  { %s901_s8 = sadd.s32 %s2750_s1, %s898_s30  ;;  %s2757_s19 = sld [smem:[#allocation5 + $0x3f]] }
 0x42e   :  { %v4196_v37 = vadd.f32 %v3240_v44, %v1682_v36  ;;  %s3437_s6 = smov [#allocation11]   ;;  %s3438_s1 = smov [#allocation12]  }
 0x42f   :  { %s2364_s30 = sshll.u32 %s3437_s6, 4  ;;  %s2365_s30 = int_to_ptr.vmem [resolvable:$true] %s2364_s30 }
 0x430   :  { %1685 = vst [vmem:[#allocation11 + $0x18] sm:$0xff] %v4196_v37  ;;  %1754 = vmatmul.mubr.f32.vlgmr.msra.gmra.mxu0 %v4196_v37  ;;  %3085 = vmatmul.mubr.f32.vlgmr.msra.gmra.mxu1 %v4196_v37  ;;  %p3385_p11 = scmp.lt.s32.totalorder %s2365_s30, %s2365_s30 }
 0x431   :  { %1857 = vmatpush1.msra.mxu0 %v4009_v51  ;;  %3088 = vmatpush3.msra.mxu1 %v4012_v52 }
 0x432   :  { %1858 = vmatprep.subr.mxu0 %v4015_v53  ;;  %3089 = vmatprep.subr.mxu1 %v4544_v24 }
 0x433   :  { %1859 = vmatpush1.msra.mxu0 %v4019_v54  ;;  %3090 = vmatpush3.msra.mxu1 %v4022_v55 }
 0x434   :  { %1860 = vmatprep.subr.mxu0 %v4025_v56  ;;  %3091 = vmatprep.subr.mxu1 %v4544_v24 }
 0x435   :  { %1861 = vmatpush1.msra.mxu0 %v4029_v57  ;;  %3092 = vmatpush3.msra.mxu1 %v4032_v58 }
 0x436   :  { %1862 = vmatprep.subr.mxu0 %v4035_v62  ;;  %3093 = vmatprep.subr.mxu1 %v4544_v24 }
 0x437   :  { %1863 = vmatpush1.msra.mxu0 %v4039_v1  ;;  %3094 = vmatpush3.msra.mxu1 %v4042_v49 }
 0x438   :  { %1864 = vmatprep.subr.mxu0 %v4045_v59  ;;  %3095 = vmatprep.subr.mxu1 %v4544_v24 }
 0x439   :  { %1865 = vmatpush1.msra.mxu0 %v4049_v63  ;;  %3096 = vmatpush3.msra.mxu1 %v4052_v15 }
 0x43a   :  { %1866 = vmatprep.subr.mxu0 %v4055_v31  ;;  %3097 = vmatprep.subr.mxu1 %v4544_v24 }
 0x43b   :  { %1867 = vmatpush1.msra.mxu0 %v4059_v32  ;;  %3098 = vmatpush3.msra.mxu1 %v4062_v33 }
 0x43c   :  { %1868 = vmatprep.subr.mxu0 %v4065_v34  ;;  %3099 = vmatprep.subr.mxu1 %v4544_v24 }
 0x43d   :  { %1869 = vmatpush1.msra.mxu0 %v4069_v35  ;;  %3100 = vmatpush3.msra.mxu1 %v4072_v45 }
 0x43e   :  { %1870 = vmatprep.subr.mxu0 %v4075_v60  ;;  %3101 = vmatprep.subr.mxu1 %v4544_v24 }
 0x43f   :  { %1871 = vmatpush1.msra.mxu0 %v4079_v61  ;;  %3102 = vmatpush3.msra.mxu1 %v4082_v0 }
 0x440   :  { %1872 = vmatprep.subr.mxu0 %v4085_v2  ;;  %3103 = vmatprep.subr.mxu1 %v4544_v24 }
 0x441   :  { %1873 = vmatpush1.msra.mxu0 %v4089_v3  ;;  %3104 = vmatpush3.msra.mxu1 %v4092_v4 }
 0x442   :  { %1874 = vmatprep.subr.mxu0 %v4095_v5  ;;  %3105 = vmatprep.subr.mxu1 %v4544_v24 }
 0x443   :  { %1875 = vmatpush1.msra.mxu0 %v4099_v6  ;;  %3106 = vmatpush3.msra.mxu1 %v4102_v8 }
 0x444   :  { %1876 = vmatprep.subr.mxu0 %v4105_v10  ;;  %3107 = vmatprep.subr.mxu1 %v4544_v24 }
 0x445   :  { %1877 = vmatpush1.msra.mxu0 %v4109_v11  ;;  %3108 = vmatpush3.msra.mxu1 %v4112_v12 }
 0x446   :  { %1878 = vmatprep.subr.mxu0 %v4115_v13  ;;  %3109 = vmatprep.subr.mxu1 %v4544_v24 }
 0x447   :  { %1879 = vmatpush1.msra.mxu0 %v4119_v14  ;;  %3110 = vmatpush3.msra.mxu1 %v4122_v16 }
 0x448   :  { %1880 = vmatprep.subr.mxu0 %v4125_v17  ;;  %3111 = vmatprep.subr.mxu1 %v4544_v24 }
 0x449   :  { %1881 = vmatpush1.msra.mxu0 %v4129_v18  ;;  %3112 = vmatpush3.msra.mxu1 %v4132_v19 }
 0x44a   :  { %1882 = vmatprep.subr.mxu0 %v4135_v20  ;;  %3113 = vmatprep.subr.mxu1 %v4544_v24 }
 0x44b   :  { %1883 = vmatpush1.msra.mxu0 %v4139_v21  ;;  %3114 = vmatpush3.msra.mxu1 %v4142_v22 }
 0x44c   :  { %1884 = vmatprep.subr.mxu0 %v4145_v23  ;;  %3115 = vmatprep.subr.mxu1 %v4544_v24 }
 0x44d   :  { %1885 = vmatpush1.msra.mxu0 %v4558_v30  ;;  %3116 = vmatpush3.msra.mxu1 %v4559_v7 }
 0x44e   :  { %1886 = vmatprep.subr.mxu0 %v4560_v9  ;;  %3117 = vmatprep.subr.mxu1 %v4544_v24 }
 0x44f   :  { %1887 = vmatpush1.msra.mxu0 %v4561_v50  ;;  %1920 = vmatprep.mubr.f32.mxu0 %v4544_v24 }
 0x450   :  { %3118 = vmatpush3.msra.mxu1 %v4562_v25  ;;  %3119 = vmatprep.mubr.msk.f32.mxu1 %vm3436_vm0, %v4544_v24 }
 0x451   :  { %2023 = vmatprep.subr.mxu0 %v4563_v26  ;;  %3122 = vmatprep.subr.mxu1 %v4544_v24 }
 0x4f0   :  { %v1755_v44 = vpop.f32.mrf.mxu0  ;;  %v1826_v46 = vpop.f32.mrf.mxu1 }
 0x4f1   :  { %v1830_v48 = vadd.f32 %v1755_v44, %v1686_v43  ;;  %v1844_v28 = vadd.f32 %v4295_v42, %v1826_v46  ;;  %v1688_v44 = vld [vmem:[#allocation3 + $0x70] sm:$0xff] }
 0x4f2   :  { %v3086_v36 = vpop.f32.mrf.mxu1  ;;  %v1757_v47 = vpop.f32.mrf.mxu0 }
 0x4f3   :  { %v2768_v27 = vmul.f32 -1.442695, %v1830_v48  ;;  %v1831_v38 = vadd.f32 %v1757_v47, %v1687_v29 }
 0x4f5   :  { %3243 = vpow2.f32 %v2768_v27  ;;  %v2769_v39 = vmul.f32 -1.442695, %v1831_v38 }
 0x4f7   :  { %3245 = vpow2.f32 %v2769_v39 }
 0x502   :  { %v3244_v40 = vpop.eup %3243 }
 0x503   :  { %v1838_v26 = vadd.f32 1.0, %v3244_v40  ;;  %v762_v40 = vld [vmem:[%s761_s10] ss:$8 sm:$0x7] }
 0x504   :  { %v3246_v41 = vpop.eup %3245  ;;  %764 = vst.msk [vmem:[#allocation3 + $0x91] ss:$8 sm:$0x7] %vm3574_vm1, %v762_v40  ;;  %v1854_v40 = vld [vmem:[#allocation3 + $0x80] sm:$0xff] }
 0x505   :  { %3247 = vrcp.f32 %v1838_v26  ;;  %v1839_v27 = vadd.f32 1.0, %v3246_v41  ;;  %v776_v41 = vld [vmem:[%s775_s17] ss:$8 sm:$0x7]  ;;  %s853_s17 = sshra.s32 %s2743_s11, 3  ;;  %s923_s11 = sshra.s32 %s4469_s9, 3 }
 0x506   :  { %778 = vst.msk [vmem:[#allocation3 + $0x92] ss:$8 sm:$0x7] %vm3574_vm1, %v776_v41  ;;  %s954_s9 = sand.u32 7, %s2757_s19 }
 0x512   :  { %v3248_v43 = vpop.eup %3247 }
 0x513   :  { %v1845_v48 = vmul.f32 %v3248_v43, %v1844_v28  ;;  %v748_v28 = vld [vmem:[%s747_s24] ss:$8 sm:$0x7]  ;;  %s2742_s24 = smul.u32 24, %s838_s7 }
 0x514   :  { %750 = vst.msk [vmem:[#allocation3 + $0x90] ss:$8 sm:$0x7] %vm3574_vm1, %v748_v28  ;;  %v790_v43 = vld [vmem:[%s789_s18] ss:$8 sm:$0x7] }
 0x515   :  { %v1846_v36 = vadd.f32 %v1845_v48, %v1688_v44  ;;  %792 = vst.msk [vmem:[#allocation3 + $0x93] ss:$8 sm:$0x7] %vm3574_vm1, %v790_v43  ;;  %v804_v44 = vld [vmem:[%s803_s26] ss:$8 sm:$0x7]  ;;  %s844_s10 = sadd.s32 %s2742_s24, %s841_s25 }
 0x516   :  { %806 = vst.msk [vmem:[#allocation3 + $0x94] ss:$8 sm:$0x7] %vm3574_vm1, %v804_v44  ;;  %v818_v48 = vld [vmem:[%s817_s15] ss:$8 sm:$0x7] }
 0x517   :  { %3249 = vtanh.f32 %v1846_v36  ;;  %820 = vst.msk [vmem:[#allocation3 + $0x95] ss:$8 sm:$0x7] %vm3574_vm1, %v818_v48  ;;  %v832_v36 = vld [vmem:[%s831_s27] ss:$8 sm:$0x7] }
 0x518   :  { %3251 = vrcp.f32 %v1839_v27  ;;  %834 = vst.msk [vmem:[#allocation3 + $0x96] ss:$8 sm:$0x7] %vm3574_vm1, %v832_v36  ;;  %s845_s28 = scalar_lea.vmem [#allocation6], %s844_s10  ;;  %s2744_s18 = smul.u32 24, %s853_s17 }
 0x519   :  { %v846_v27 = vld [vmem:[%s845_s28] ss:$8 sm:$0x7]  ;;  %s884_s26 = sand.u32 7, %s2747_s23  ;;  %s2748_s15 = smul.u32 24, %s881_s21 }
 0x51a   :  { %848 = vst.msk [vmem:[#allocation3 + $0x97] ss:$8 sm:$0x7] %vm3574_vm1, %v846_v27  ;;  %v1855_v27 = vld [vmem:[#allocation3 + $0x88] sm:$0xff]  ;;  %s859_s20 = sadd.s32 %s2744_s18, %s856_s14  ;;  %s909_s25 = sshra.s32 %s4467_s13, 3 }
 0x51b   :  { %s860_s0 = scalar_lea.vmem [#allocation6], %s859_s20  ;;  %s887_s7 = sadd.s32 %s2748_s15, %s884_s26 }
 0x51c   :  { %s888_s24 = scalar_lea.vmem [#allocation6], %s887_s7  ;;  %s912_s27 = sand.u32 7, %s4467_s13 }
 0x51d   :  { %s902_s10 = scalar_lea.vmem [#allocation6], %s901_s8  ;;  %s2752_s28 = smul.u32 24, %s909_s25 }
 0x51e   :  { %s2754_s23 = smul.u32 24, %s923_s11  ;;  %s2755_s17 = sld [smem:[#allocation5 + $0x3e]] }
 0x51f   :  { %s915_s12 = sadd.s32 %s2752_s28, %s912_s27  ;;  %s951_s21 = sshra.s32 %s2757_s19, 3 }
 0x520   :  { %s929_s14 = sadd.s32 %s2754_s23, %s926_s29  ;;  %s916_s18 = scalar_lea.vmem [#allocation6], %s915_s12 }
 0x521   :  { %s930_s13 = scalar_lea.vmem [#allocation6], %s929_s14  ;;  %s2377_s7 = sshll.u32 %s3438_s1, 4  ;;  %s2378_s7 = int_to_ptr.vmem [resolvable:$true] %s2377_s7 }
 0x522   :  { %s3380_s25 = scalar_lea.vmem %s2365_s30, 1024 }
 0x523   :  { %p3381_p10 = scmp.ne.s32.totalorder %s2365_s30, %s3380_s25  ;;  %p3386_p12 = scmp.lt.s32.totalorder %s3380_s25, %s3380_s25 }
 0x524   :  { %v3250_v29 = vpop.eup %3249  ;;  %s937_s3 = sshra.s32 %s2755_s17, 3  ;;  %s940_s2 = sand.u32 7, %s2755_s17 }
 0x525   :  { %v1848_v47 = vsub.f32 %v4196_v37, %v3250_v29  ;;  %v3252_v38 = vpop.eup %3251  ;;  %v4565_v37 = vld [vmem:[#allocation20_spill] sm:$0xff]  ;;  %s2756_s20 = smul.u32 24, %s937_s3  ;;  %p3387_p13 = por %p3386_p12, %p3385_p11 }
 0x527   :  { %v1849_v26 = vmul.f32 %v3252_v38, %v1848_v47  ;;  %s943_s22 = sadd.s32 %s2756_s20, %s940_s2  ;;  %p3388_p0 = pnand %p3387_p13, %p3381_p10 }
 0x528   :  { %s944_s26 = scalar_lea.vmem [#allocation6], %s943_s22 }
 0x529   :  { %v4299_v39 = vadd.f32 %v3250_v29, %v1849_v26  ;;  %v1853_v29 = vld [vmem:[#allocation3 + $0x78] sm:$0xff] }
 0x52b   :  { %1852 = vst [vmem:[#allocation11 + $0x20] sm:$0xff] %v4299_v39  ;;  %1921 = vmatmul.mubr.f32.vlgmr.msra.gmra.mxu0 %v4299_v39  ;;  %3120 = vmatmul.mubr.f32.vlgmr.msra.gmra.mxu1 %v4299_v39 }
 0x52c   :  { %2024 = vmatpush1.msra.mxu0 %v4009_v51  ;;  %3123 = vmatpush3.msra.mxu1 %v4012_v52 }
 0x52d   :  { %2025 = vmatprep.subr.mxu0 %v4015_v53  ;;  %3124 = vmatprep.subr.mxu1 %v4544_v24 }
 0x52e   :  { %2026 = vmatpush1.msra.mxu0 %v4019_v54  ;;  %3125 = vmatpush3.msra.mxu1 %v4022_v55 }
 0x52f   :  { %2027 = vmatprep.subr.mxu0 %v4025_v56  ;;  %3126 = vmatprep.subr.mxu1 %v4544_v24 }
 0x530   :  { %2028 = vmatpush1.msra.mxu0 %v4029_v57  ;;  %3127 = vmatpush3.msra.mxu1 %v4032_v58 }
 0x531   :  { %2029 = vmatprep.subr.mxu0 %v4035_v62  ;;  %3128 = vmatprep.subr.mxu1 %v4544_v24 }
 0x532   :  { %2030 = vmatpush1.msra.mxu0 %v4039_v1  ;;  %3129 = vmatpush3.msra.mxu1 %v4042_v49 }
 0x533   :  { %2031 = vmatprep.subr.mxu0 %v4045_v59  ;;  %3130 = vmatprep.subr.mxu1 %v4544_v24 }
 0x534   :  { %2032 = vmatpush1.msra.mxu0 %v4049_v63  ;;  %3131 = vmatpush3.msra.mxu1 %v4052_v15 }
 0x535   :  { %2033 = vmatprep.subr.mxu0 %v4055_v31  ;;  %3132 = vmatprep.subr.mxu1 %v4544_v24 }
 0x536   :  { %2034 = vmatpush1.msra.mxu0 %v4059_v32  ;;  %3133 = vmatpush3.msra.mxu1 %v4062_v33 }
 0x537   :  { %2035 = vmatprep.subr.mxu0 %v4065_v34  ;;  %3134 = vmatprep.subr.mxu1 %v4544_v24 }
 0x538   :  { %2036 = vmatpush1.msra.mxu0 %v4069_v35  ;;  %3135 = vmatpush3.msra.mxu1 %v4072_v45 }
 0x539   :  { %2037 = vmatprep.subr.mxu0 %v4075_v60  ;;  %3136 = vmatprep.subr.mxu1 %v4544_v24 }
 0x53a   :  { %2038 = vmatpush1.msra.mxu0 %v4079_v61  ;;  %3137 = vmatpush3.msra.mxu1 %v4082_v0 }
 0x53b   :  { %2039 = vmatprep.subr.mxu0 %v4085_v2  ;;  %3138 = vmatprep.subr.mxu1 %v4544_v24 }
 0x53c   :  { %2040 = vmatpush1.msra.mxu0 %v4089_v3  ;;  %3139 = vmatpush3.msra.mxu1 %v4092_v4 }
 0x53d   :  { %2041 = vmatprep.subr.mxu0 %v4095_v5  ;;  %3140 = vmatprep.subr.mxu1 %v4544_v24 }
 0x53e   :  { %2042 = vmatpush1.msra.mxu0 %v4099_v6  ;;  %3141 = vmatpush3.msra.mxu1 %v4102_v8 }
 0x53f   :  { %2043 = vmatprep.subr.mxu0 %v4105_v10  ;;  %3142 = vmatprep.subr.mxu1 %v4544_v24 }
 0x540   :  { %2044 = vmatpush1.msra.mxu0 %v4109_v11  ;;  %3143 = vmatpush3.msra.mxu1 %v4112_v12 }
 0x541   :  { %2045 = vmatprep.subr.mxu0 %v4115_v13  ;;  %3144 = vmatprep.subr.mxu1 %v4544_v24 }
 0x542   :  { %2046 = vmatpush1.msra.mxu0 %v4119_v14  ;;  %3145 = vmatpush3.msra.mxu1 %v4122_v16 }
 0x543   :  { %2047 = vmatprep.subr.mxu0 %v4125_v17  ;;  %3146 = vmatprep.subr.mxu1 %v4544_v24 }
 0x544   :  { %2048 = vmatpush1.msra.mxu0 %v4129_v18  ;;  %3147 = vmatpush3.msra.mxu1 %v4132_v19 }
 0x545   :  { %2049 = vmatprep.subr.mxu0 %v4135_v20  ;;  %3148 = vmatprep.subr.mxu1 %v4544_v24 }
 0x546   :  { %2050 = vmatpush1.msra.mxu0 %v4139_v21  ;;  %3149 = vmatpush3.msra.mxu1 %v4142_v22 }
 0x547   :  { %2051 = vmatprep.subr.mxu0 %v4145_v23  ;;  %3150 = vmatprep.subr.mxu1 %v4544_v24 }
 0x548   :  { %2052 = vmatpush1.msra.mxu0 %v4558_v30  ;;  %3151 = vmatpush3.msra.mxu1 %v4559_v7 }
 0x549   :  { %2053 = vmatprep.subr.mxu0 %v4560_v9  ;;  %3152 = vmatprep.subr.mxu1 %v4544_v24 }
 0x54a   :  { %2054 = vmatpush1.msra.mxu0 %v4561_v50  ;;  %2087 = vmatprep.mubr.f32.mxu0 %v4544_v24 }
 0x54b   :  { %3153 = vmatpush3.msra.mxu1 %v4562_v25  ;;  %3154 = vmatprep.mubr.msk.f32.mxu1 %vm3436_vm0, %v4544_v24 }
 0x54c   :  { %2190 = vmatprep.subr.mxu0 %v4565_v37  ;;  %3157 = vmatprep.subr.mxu1 %v4544_v24 }
 0x5eb   :  { %v1922_v47 = vpop.f32.mrf.mxu0  ;;  %v1993_v38 = vpop.f32.mrf.mxu1 }
 0x5ec   :  { %v1997_v26 = vadd.f32 %v1922_v47, %v1853_v29  ;;  %v2011_v50 = vadd.f32 %v4295_v42, %v1993_v38 }
 0x5ed   :  { %v3121_v37 = vpop.f32.mrf.mxu1  ;;  %v1924_v41 = vpop.f32.mrf.mxu0 }
 0x5ee   :  { %v2770_v28 = vmul.f32 -1.442695, %v1997_v26  ;;  %v1998_v43 = vadd.f32 %v1924_v41, %v1854_v40 }
 0x5f0   :  { %3253 = vpow2.f32 %v2770_v28  ;;  %v2771_v44 = vmul.f32 -1.442695, %v1998_v43 }
 0x5f2   :  { %3255 = vpow2.f32 %v2771_v44 }
 0x5fd   :  { %v3254_v48 = vpop.eup %3253 }
 0x5fe   :  { %v2005_v25 = vadd.f32 1.0, %v3254_v48 }
 0x5ff   :  { %v3256_v36 = vpop.eup %3255 }
 0x600   :  { %3257 = vrcp.f32 %v2005_v25  ;;  %v2006_v30 = vadd.f32 1.0, %v3256_v36 }
 0x60d   :  { %v3258_v46 = vpop.eup %3257 }
 0x60e   :  { %v2012_v9 = vmul.f32 %v3258_v46, %v2011_v50 }
 0x610   :  { %v2013_v7 = vadd.f32 %v2012_v9, %v1855_v27 }
 0x612   :  { %3259 = vtanh.f32 %v2013_v7 }
 0x613   :  { %3261 = vrcp.f32 %v2006_v30 }
 0x61f   :  { %v3260_v29 = vpop.eup %3259 }
 0x620   :  { %v2015_v47 = vsub.f32 %v4299_v39, %v3260_v29  ;;  %v3262_v26 = vpop.eup %3261 }
 0x622   :  { %v2016_v37 = vmul.f32 %v3262_v26, %v2015_v47 }
 0x624   :  { %v4397_v28 = vadd.f32 %v3260_v29, %v2016_v37 }
 0x626   :  { %2019 = vst [vmem:[#allocation11 + $0x28] sm:$0xff] %v4397_v28  ;;  %2088 = vmatmul.mubr.f32.vlgmr.msra.gmra.mxu0 %v4397_v28  ;;  %3155 = vmatmul.mubr.f32.vlgmr.msra.gmra.mxu1 %v4397_v28 }
 0x627   :  { %2191 = vmatpush1.msra.mxu0 %v4009_v51  ;;  %3158 = vmatpush3.msra.mxu1 %v4012_v52  ;;  %v4567_v51 = vld [vmem:[#allocation23_spill] sm:$0xff]  ;;  %v4568_v52 = vld [vmem:[#allocation21_spill] sm:$0xff] }
 0x628   :  { %2192 = vmatprep.subr.mxu0 %v4015_v53  ;;  %3159 = vmatprep.subr.mxu1 %v4544_v24  ;;  %v4569_v53 = vld [vmem:[#allocation22_spill] sm:$0xff] }
 0x629   :  { %2193 = vmatpush1.msra.mxu0 %v4019_v54  ;;  %3160 = vmatpush3.msra.mxu1 %v4022_v55  ;;  %v4570_v54 = vld [vmem:[#allocation24_spill] sm:$0xff]  ;;  %v4571_v55 = vld [vmem:[#allocation25_spill] sm:$0xff] }
 0x62a   :  { %2194 = vmatprep.subr.mxu0 %v4025_v56  ;;  %3161 = vmatprep.subr.mxu1 %v4544_v24 }
 0x62b   :  { %2195 = vmatpush1.msra.mxu0 %v4029_v57  ;;  %3162 = vmatpush3.msra.mxu1 %v4032_v58  ;;  %v875_v57 = vld [vmem:[%s874_s16] ss:$8 sm:$0x7] }
 0x62c   :  { %2196 = vmatprep.subr.mxu0 %v4035_v62  ;;  %3163 = vmatprep.subr.mxu1 %v4544_v24  ;;  %877 = vst.msk [vmem:[#allocation3 + $0xa9] ss:$8 sm:$0x7] %vm3574_vm1, %v875_v57  ;;  %v889_v58 = vld [vmem:[%s888_s24] ss:$8 sm:$0x7] }
 0x62d   :  { %2197 = vmatpush1.msra.mxu0 %v4039_v1  ;;  %3164 = vmatpush3.msra.mxu1 %v4042_v49  ;;  %891 = vst.msk [vmem:[#allocation3 + $0xaa] ss:$8 sm:$0x7] %vm3574_vm1, %v889_v58  ;;  %v903_v62 = vld [vmem:[%s902_s10] ss:$8 sm:$0x7] }
 0x62e   :  { %2198 = vmatprep.subr.mxu0 %v4045_v59  ;;  %3165 = vmatprep.subr.mxu1 %v4544_v24  ;;  %905 = vst.msk [vmem:[#allocation3 + $0xab] ss:$8 sm:$0x7] %vm3574_vm1, %v903_v62  ;;  %v917_v1 = vld [vmem:[%s916_s18] ss:$8 sm:$0x7] }
 0x62f   :  { %2199 = vmatpush1.msra.mxu0 %v4049_v63  ;;  %3166 = vmatpush3.msra.mxu1 %v4052_v15  ;;  %919 = vst.msk [vmem:[#allocation3 + $0xac] ss:$8 sm:$0x7] %vm3574_vm1, %v917_v1  ;;  %v931_v49 = vld [vmem:[%s930_s13] ss:$8 sm:$0x7] }
 0x630   :  { %2200 = vmatprep.subr.mxu0 %v4055_v31  ;;  %3167 = vmatprep.subr.mxu1 %v4544_v24  ;;  %933 = vst.msk [vmem:[#allocation3 + $0xad] ss:$8 sm:$0x7] %vm3574_vm1, %v931_v49  ;;  %v945_v59 = vld [vmem:[%s944_s26] ss:$8 sm:$0x7] }
 0x631   :  { %2201 = vmatpush1.msra.mxu0 %v4059_v32  ;;  %3168 = vmatpush3.msra.mxu1 %v4062_v33  ;;  %947 = vst.msk [vmem:[#allocation3 + $0xae] ss:$8 sm:$0x7] %vm3574_vm1, %v945_v59  ;;  %v2020_v15 = vld [vmem:[#allocation3 + $0x90] sm:$0xff] }
 0x632   :  { %2202 = vmatprep.subr.mxu0 %v4065_v34  ;;  %3169 = vmatprep.subr.mxu1 %v4544_v24 }
 0x633   :  { %2203 = vmatpush1.msra.mxu0 %v4069_v35  ;;  %3170 = vmatpush3.msra.mxu1 %v4072_v45  ;;  %v2021_v45 = vld [vmem:[#allocation3 + $0x98] sm:$0xff] }
 0x634   :  { %2204 = vmatprep.subr.mxu0 %v4075_v60  ;;  %3171 = vmatprep.subr.mxu1 %v4544_v24 }
 0x635   :  { %2205 = vmatpush1.msra.mxu0 %v4079_v61  ;;  %3172 = vmatpush3.msra.mxu1 %v4082_v0 }
 0x636   :  { %2206 = vmatprep.subr.mxu0 %v4085_v2  ;;  %3173 = vmatprep.subr.mxu1 %v4544_v24 }
 0x637   :  { %2207 = vmatpush1.msra.mxu0 %v4089_v3  ;;  %3174 = vmatpush3.msra.mxu1 %v4092_v4 }
 0x638   :  { %2208 = vmatprep.subr.mxu0 %v4095_v5  ;;  %3175 = vmatprep.subr.mxu1 %v4544_v24 }
 0x639   :  { %2209 = vmatpush1.msra.mxu0 %v4099_v6  ;;  %3176 = vmatpush3.msra.mxu1 %v4102_v8  ;;  %v2022_v8 = vld [vmem:[#allocation3 + $0xa0] sm:$0xff] }
 0x63a   :  { %2210 = vmatprep.subr.mxu0 %v4105_v10  ;;  %3177 = vmatprep.subr.mxu1 %v4544_v24 }
 0x63b   :  { %2211 = vmatpush1.msra.mxu0 %v4109_v11  ;;  %3178 = vmatpush3.msra.mxu1 %v4112_v12 }
 0x63c   :  { %2212 = vmatprep.subr.mxu0 %v4115_v13  ;;  %3179 = vmatprep.subr.mxu1 %v4544_v24 }
 0x63d   :  { %2213 = vmatpush1.msra.mxu0 %v4119_v14  ;;  %3180 = vmatpush3.msra.mxu1 %v4122_v16 }
 0x63e   :  { %2214 = vmatprep.subr.mxu0 %v4125_v17  ;;  %3181 = vmatprep.subr.mxu1 %v4544_v24 }
 0x63f   :  { %2215 = vmatpush1.msra.mxu0 %v4129_v18  ;;  %3182 = vmatpush3.msra.mxu1 %v4132_v19 }
 0x640   :  { %2216 = vmatprep.subr.mxu0 %v4135_v20  ;;  %3183 = vmatprep.subr.mxu1 %v4544_v24 }
 0x641   :  { %2217 = vmatpush1.msra.mxu0 %v4139_v21  ;;  %3184 = vmatpush3.msra.mxu1 %v4142_v22 }
 0x642   :  { %2218 = vmatprep.subr.mxu0 %v4145_v23  ;;  %3185 = vmatprep.subr.mxu1 %v4544_v24 }
 0x643   :  { %2219 = vmatpush1.msra.mxu0 %v4567_v51  ;;  %3186 = vmatpush3.msra.mxu1 %v4568_v52 }
 0x644   :  { %2220 = vmatprep.subr.mxu0 %v4569_v53  ;;  %3187 = vmatprep.subr.mxu1 %v4544_v24 }
 0x645   :  { %2221 = vmatpush1.msra.mxu0 %v4570_v54  ;;  %2254 = vmatprep.mubr.f32.mxu0 %v4544_v24 }
 0x646   :  { %3188 = vmatpush3.msra.mxu1 %v4571_v55  ;;  %3189 = vmatprep.mubr.msk.f32.mxu1 %vm3436_vm0, %v4544_v24  ;;  %v861_v24 = vld [vmem:[%s860_s0] ss:$8 sm:$0x7]  ;;  %s2758_s0 = smul.u32 24, %s951_s21 }
 0x647   :  { %863 = vst.msk [vmem:[#allocation3 + $0xa8] ss:$8 sm:$0x7] %vm3574_vm1, %v861_v24 }
 0x648   :  { %s957_s16 = sadd.s32 %s2758_s0, %s954_s9 }
 0x649   :  { %s958_s15 = scalar_lea.vmem [#allocation6], %s957_s16 }
 0x64a   :  { %v959_v63 = vld [vmem:[%s958_s15] ss:$8 sm:$0x7] }
 0x64b   :  { %961 = vst.msk [vmem:[#allocation3 + $0xaf] ss:$8 sm:$0x7] %vm3574_vm1, %v959_v63 }
 0x652   :  { %v2187_v19 = vld [vmem:[#allocation3 + $0xa8] sm:$0xff]  ;;  %v2188_v7 = vld [vmem:[#allocation3 + $0xb0] sm:$0xff]  ;;  %v2189_v43 = vld [vmem:[#allocation3 + $0xb8] sm:$0xff] }
 0x6e6   :  { %v2089_v31 = vpop.f32.mrf.mxu0  ;;  %v2160_v32 = vpop.f32.mrf.mxu1 }
 0x6e7   :  { %v2164_v33 = vadd.f32 %v2089_v31, %v2020_v15  ;;  %v2178_v5 = vadd.f32 %v4295_v42, %v2160_v32 }
 0x6e8   :  { %v3156_v34 = vpop.f32.mrf.mxu1  ;;  %v2091_v60 = vpop.f32.mrf.mxu0 }
 0x6e9   :  { %v2772_v35 = vmul.f32 -1.442695, %v2164_v33  ;;  %v2165_v61 = vadd.f32 %v2091_v60, %v2021_v45 }
 0x6eb   :  { %3263 = vpow2.f32 %v2772_v35  ;;  %v2773_v0 = vmul.f32 -1.442695, %v2165_v61 }
 0x6ed   :  { %3265 = vpow2.f32 %v2773_v0 }
 0x6f8   :  { %v3264_v2 = vpop.eup %3263 }
 0x6f9   :  { %v2172_v3 = vadd.f32 1.0, %v3264_v2 }
 0x6fa   :  { %v3266_v4 = vpop.eup %3265 }
 0x6fb   :  { %3267 = vrcp.f32 %v2172_v3  ;;  %v2173_v12 = vadd.f32 1.0, %v3266_v4 }
 0x708   :  { %v3268_v6 = vpop.eup %3267 }
 0x709   :  { %v2179_v10 = vmul.f32 %v3268_v6, %v2178_v5 }
 0x70b   :  { %v2180_v11 = vadd.f32 %v2179_v10, %v2022_v8 }
 0x70d   :  { %3269 = vtanh.f32 %v2180_v11 }
 0x70e   :  { %3271 = vrcp.f32 %v2173_v12 }
 0x71a   :  { %v3270_v13 = vpop.eup %3269 }
 0x71b   :  { %v2182_v14 = vsub.f32 %v4397_v28, %v3270_v13  ;;  %v3272_v16 = vpop.eup %3271 }
 0x71d   :  { %v2183_v17 = vmul.f32 %v3272_v16, %v2182_v14 }
 0x71f   :  { %v2184_v18 = vadd.f32 %v3270_v13, %v2183_v17 }
 0x721   :  { %2186 = vst [vmem:[#allocation11 + $0x30] sm:$0xff] %v2184_v18  ;;  %2255 = vmatmul.mubr.f32.vlgmr.msra.gmra.mxu0 %v2184_v18  ;;  %3190 = vmatmul.mubr.f32.vlgmr.msra.gmra.mxu1 %v2184_v18 }
 0x7e1   :  { %v2256_v20 = vpop.f32.mrf.mxu0  ;;  %v2327_v21 = vpop.f32.mrf.mxu1 }
 0x7e2   :  { %v2331_v22 = vadd.f32 %v2256_v20, %v2187_v19  ;;  %v2345_v40 = vadd.f32 %v4295_v42, %v2327_v21 }
 0x7e3   :  { %v3191_v23 = vpop.f32.mrf.mxu1  ;;  %v2258_v9 = vpop.f32.mrf.mxu0 }
 0x7e4   :  { %v2774_v30 = vmul.f32 -1.442695, %v2331_v22  ;;  %v2332_v50 = vadd.f32 %v2258_v9, %v2188_v7 }
 0x7e6   :  { %3273 = vpow2.f32 %v2774_v30  ;;  %v2775_v25 = vmul.f32 -1.442695, %v2332_v50 }
 0x7e8   :  { %3275 = vpow2.f32 %v2775_v25 }
 0x7f3   :  { %v3274_v39 = vpop.eup %3273 }
 0x7f4   :  { %v2339_v46 = vadd.f32 1.0, %v3274_v39 }
 0x7f5   :  { %v3276_v38 = vpop.eup %3275 }
 0x7f6   :  { %3277 = vrcp.f32 %v2339_v46  ;;  %v2340_v36 = vadd.f32 1.0, %v3276_v38 }
 0x803   :  { %v3278_v41 = vpop.eup %3277 }
 0x804   :  { %v2346_v44 = vmul.f32 %v3278_v41, %v2345_v40 }
 0x806   :  { %v2347_v48 = vadd.f32 %v2346_v44, %v2189_v43 }
 0x808   :  { %3279 = vtanh.f32 %v2347_v48 }
 0x809   :  { %3281 = vrcp.f32 %v2340_v36 }
 0x815   :  { %v3280_v27 = vpop.eup %3279 }
 0x816   :  { %v2349_v29 = vsub.f32 %v2184_v18, %v3280_v27  ;;  %v3282_v47 = vpop.eup %3281 }
 0x818   :  { %v2350_v26 = vmul.f32 %v3282_v47, %v2349_v29 }
 0x81a   :  { %v2351_v37 = vadd.f32 %v3280_v27, %v2350_v26 }
 0x81c   :  { %2353 = vst [vmem:[#allocation11 + $0x38] sm:$0xff] %v2351_v37  ;;  %2358 = vst [vmem:[#allocation12] sm:$0xff] %v2351_v37 }
 0x81d   :  { %3391 = shalt.err (!%p3388_p0)
}
 0x81e   :  { %s3439_s8 = smov 128   ;;  %s3440_s24 = smov 8  }
 0x81f   :  { %2370 = dma.vmem_to_hbm [thread:$0]  %s2365_s30, 1024, %s4504_s4, [#allocation8], %s3439_s8, %s3439_s8, %s3440_s24  }
 0x820   :  { %s3400_s28 = scalar_lea.vmem %s2378_s7, 128  ;;  %p3405_p2 = scmp.lt.s32.totalorder %s2378_s7, %s2378_s7 }
 0x821   :  { %p3401_p1 = scmp.ne.s32.totalorder %s2378_s7, %s3400_s28  ;;  %p3406_p3 = scmp.lt.s32.totalorder %s3400_s28, %s3400_s28 }
 0x823   :  { %p3407_p4 = por %p3406_p3, %p3405_p2 }
 0x825   :  { %p3408_p5 = pnand %p3407_p4, %p3401_p1 }
 0x827   :  { %3411 = shalt.err (!%p3408_p5)
}
 0x828   :  { %2380 = dma.vmem_to_hbm [thread:$0]  %s2378_s7, 128, %s4505_s5, [#allocation13]  }
 0x829   :  { %3426 = dma.done.wait [#allocation8], 1024  }
 0x82a   :  { %3427 = vsyncadd [#allocation8], 4294966272 }
 0x82b   :  { %3428 = dma.done.wait [#allocation13], 128  }
 0x82c   :  { %3429 = vsyncadd [#allocation13], 4294967168 }
 0x82d   :  { %2387 = vsyncpa [#allocation7], 1 }
 0x82e   :  { %2388 = vsyncpa [#allocation10], 1 }
 0x82f   :  { %2389 = vsyncpa [#allocation8], 1 }
 0x830   :  { %2390 = vsyncpa [#allocation13], 1 }

</bundles_post_ra>
